<compile_context>
chip_gen: v7x
topology: tpu7x:2x2x1
jax: 0.10.0
libtpu: 0.0.40
codegen_flags: <defaults>
</compile_context>

<pallas_src>
import functools

import jax
import jax.numpy as jnp
from jax.experimental import pallas as pl
from jax.experimental.pallas import tpu as pltpu

EFF_FEAT = 2304            # efficientnet_b6.classifier[1].in_features
RES_FEAT = 2048            # resnet152.fc.in_features
FEAT_TOTAL = EFF_FEAT + RES_FEAT
EMB = 512                  # replaced head width (both backbones project to 512)
NUM_CLASSES = 4            # stand-in for len(train_dataset.classes)
NPAD = 128                 # lane-dense padded logits width
CHUNK = 512                # feature-axis chunk for the trunk/head matmuls

MAX_TB = 128               # batch tile (v7x-friendly; keeps >=2 parallel blocks for B>=16)
MAX_THW = 4096             # spatial tile (v7x 64 MiB VMEM; raise to 8192 on v5e/v6e)


def combined_model_kernel(x_ref,        # (TB*C, THW)       f32 image rows
                          w_trunk_ref,  # (C, FEAT_TOTAL)   f32, resident, 1/HW folded in
                          w_head_ref,   # (FEAT_TOTAL, NPAD) f32, resident (folded heads+fc)
                          b_ref,        # (1, NPAD)         f32, resident (folded bias)
                          o_ref,        # (TB, NPAD)        f32 logits (padded)
                          acc_ref,      # (TB*C, ACC_W)     f32 lane-partial GAP accumulator
                          *, tb, chans, hw, thw, acc_w):
    hw_i = pl.program_id(1)
    n_hw = pl.num_programs(1)

    @pl.when(hw_i == 0)
    def _():
        acc_ref[...] = jnp.zeros_like(acc_ref)

    def accumulate(xb):
        # Lane-partial spatial sum: 128-aligned value slices, pure VPU adds.
        if acc_w == 1:
            part = jnp.sum(xb, axis=-1, keepdims=True)
        else:
            part = xb[:, 0:128]
            for j in range(1, thw // 128):
                part = part + xb[:, j * 128:(j + 1) * 128]
        acc_ref[...] += part.astype(jnp.float32)

    if hw % thw == 0:
        accumulate(x_ref[...])
    else:
        # Ragged final spatial tile: Pallas does not zero-fill out-of-bounds
        # block reads, so mask the garbage lanes before accumulating.
        @pl.when(hw_i < n_hw - 1)
        def _():
            accumulate(x_ref[...])

        @pl.when(hw_i == n_hw - 1)
        def _():
            col = jax.lax.broadcasted_iota(jnp.int32, x_ref.shape, 1)
            accumulate(jnp.where(col < (hw % thw), x_ref[...], 0.0))

    @pl.when(hw_i == n_hw - 1)
    def _():
        # Per-channel pooled sums (strided sublane reads regroup the flattened
        # (TB*C) rows back into per-batch channels). 1/HW is folded offline
        # into w_trunk, so these stay raw sums.
        cols = [
            jnp.sum(acc_ref[pl.ds(c, tb, stride=chans), :], axis=-1, keepdims=True)
            for c in range(chans)
        ]

        # TODO(synk): the pretrained EfficientNet-B6 / ResNet-152 conv trunks
        # have no clean single-kernel Pallas equivalent; each trunk is
        # approximated by GAP + a dense-ReLU projection to the feature width
        # that trunk emits (2304 / 2048), fused into one projection here.
        #
        # Chunk over the 4352-wide feature axis so the full (TB, 4352) f32
        # feats tensor is never materialized (keeps the last-step VMEM spike
        # small under v7x's 64 MiB budget).
        logits = jnp.zeros((tb, NPAD), jnp.float32)
        for c0 in range(0, FEAT_TOTAL, CHUNK):
            cw = min(CHUNK, FEAT_TOTAL - c0)
            f = cols[0] * w_trunk_ref[0:1, c0:c0 + cw]
            for c in range(1, chans):
                f = f + cols[c] * w_trunk_ref[c:c + 1, c0:c0 + cw]
            f = jnp.maximum(f, 0.0)                              # (TB, cw) f32
            logits = logits + jnp.dot(f, w_head_ref[c0:c0 + cw, :],
                                      preferred_element_type=jnp.float32)
        o_ref[...] = (logits + b_ref[...]).astype(o_ref.dtype)


def combined_model(x_nchw, fused):
    B, C, H, W = x_nchw.shape
    HW = H * W
    assert fused["w_trunk"].shape[0] == C

    # Pure metadata reshape — no cast, no pad, no extra XLA pass over x.
    x = x_nchw.reshape(B * C, HW)

    # Batch tile: multiple of 8 rows on both the (TB*C) x block and the (TB)
    # output block; aim for >=2 batch blocks (v7x has 2 TensorCores).
    if B <= 8:
        TB = B                                        # full-extent blocks (always legal)
    else:
        TB = min(MAX_TB, 8 * pl.cdiv(pl.cdiv(B, 2), 8))

    # Spatial tile: full extent if it fits, else 4096 (multiple of 128);
    # the ragged last tile is masked in-kernel.
    THW = HW if HW <= MAX_THW else MAX_THW
    ACC_W = 128 if THW % 128 == 0 else 1

    grid = (pl.cdiv(B, TB), pl.cdiv(HW, THW))
    kernel = functools.partial(combined_model_kernel,
                               tb=TB, chans=C, hw=HW, thw=THW, acc_w=ACC_W)

    out = pl.pallas_call(
        kernel,
        out_shape=jax.ShapeDtypeStruct((B, NPAD), jnp.float32),
        grid_spec=pltpu.PrefetchScalarGridSpec(
            num_scalar_prefetch=0,
            grid=grid,
            in_specs=[
                pl.BlockSpec((TB * C, THW), lambda b, h: (b, h)),
                pl.BlockSpec((C, FEAT_TOTAL), lambda b, h: (0, 0)),
                pl.BlockSpec((FEAT_TOTAL, NPAD), lambda b, h: (0, 0)),
                pl.BlockSpec((1, NPAD), lambda b, h: (0, 0)),
            ],
            out_specs=pl.BlockSpec((TB, NPAD), lambda b, h: (b, 0)),
            scratch_shapes=[pltpu.VMEM((TB * C, ACC_W), jnp.float32)],
        ),
        compiler_params=pltpu.CompilerParams(
            dimension_semantics=("parallel", "arbitrary"),
            vmem_limit_bytes=48 * 1024 * 1024,
        ),
    )(x, fused["w_trunk"], fused["w_head"], fused["b_fused"])
    return out[:, :NUM_CLASSES]


def init_params(key, in_channels):
    ks = jax.random.split(key, 5)

    def dense(k, fan_in, fan_out):
        scale = 1.0 / jnp.sqrt(jnp.float32(fan_in))
        return jax.random.uniform(k, (fan_in, fan_out), jnp.float32, -scale, scale)

    return {
        "w_eff_trunk": dense(ks[0], in_channels, EFF_FEAT),
        "w_eff_head": dense(ks[1], EFF_FEAT, EMB),
        "b_eff_head": jnp.zeros((1, EMB), jnp.float32),
        "w_res_trunk": dense(ks[2], in_channels, RES_FEAT),
        "w_res_head": dense(ks[3], RES_FEAT, EMB),
        "b_res_head": jnp.zeros((1, EMB), jnp.float32),
        "w_fc": dense(ks[4], 2 * EMB, NUM_CLASSES),
        "b_fc": 0.01 * jnp.ones((1, NUM_CLASSES), jnp.float32),
    }


def fuse_params(params, hw):
    """Fold the 512-wide heads into the final fc and 1/HW into the trunk
    projection (frozen inference weights only — not valid for training)."""
    w_fc = params["w_fc"]                                     # (2*EMB, N)
    w_eff_fold = params["w_eff_head"] @ w_fc[:EMB]            # (EFF_FEAT, N)
    w_res_fold = params["w_res_head"] @ w_fc[EMB:]            # (RES_FEAT, N)
    b_fold = (params["b_eff_head"] @ w_fc[:EMB]
              + params["b_res_head"] @ w_fc[EMB:]
              + params["b_fc"])                               # (1, N)
    w_trunk = jnp.concatenate(
        [params["w_eff_trunk"], params["w_res_trunk"]], axis=1)    # (C, 4352)
    w_trunk = w_trunk * (1.0 / float(hw))   # GAP mean folded in (commutes through ReLU)
    w_head = jnp.concatenate([w_eff_fold, w_res_fold], axis=0)     # (4352, N)
    pad_n = NPAD - NUM_CLASSES
    return {
        "w_trunk": w_trunk.astype(jnp.float32),
        "w_head": jnp.pad(w_head, ((0, 0), (0, pad_n))).astype(jnp.float32),
        "b_fused": jnp.pad(b_fold, ((0, 0), (0, pad_n))).astype(jnp.float32),
    }


def reference_forward(x_nchw, params):
    # Plain-JAX f32 reference of the (stand-in) forward: GAP -> trunk proj+ReLU
    # -> replaced heads -> concat -> fc. Mirrors the PyTorch forward structure.
    B, C, H, W = x_nchw.shape
    pooled = jnp.mean(x_nchw.reshape(B, C, H * W), axis=-1)
    eff_feat = jnp.maximum(pooled @ params["w_eff_trunk"], 0.0)
    res_feat = jnp.maximum(pooled @ params["w_res_trunk"], 0.0)
    eff_out = eff_feat @ params["w_eff_head"] + params["b_eff_head"]
    res_out = res_feat @ params["w_res_head"] + params["b_res_head"]
    combined = jnp.concatenate([eff_out, res_out], axis=1)
    return combined @ params["w_fc"] + params["b_fc"]


if __name__ == "__main__":
    key = jax.random.PRNGKey(0)
    k_x, k_p = jax.random.split(key)

    B, C, H, W = 2, 4, 16, 16                 # small NCHW input
    x = jax.random.normal(k_x, (B, C, H, W), jnp.float32)
    params = init_params(k_p, C)
    fused = fuse_params(params, H * W)

    out = jax.block_until_ready(combined_model(x, fused))
    assert out.shape == (B, NUM_CLASSES)
    assert bool(jnp.all(jnp.isfinite(out)))

    ref = reference_forward(x, params)
    max_err = float(jnp.max(jnp.abs(out - ref)))
    assert bool(jnp.allclose(out, ref, atol=1e-2, rtol=1e-2)), max_err
    print("KERNEL_OK")
</pallas_src>

<mosaic_0001>
module attributes {stable_mosaic.version = 11 : i64} {
  func.func @combined_model_kernel(%arg0: i32, %arg1: i32, %arg2: memref<8x256xf32, #tpu.memory_space<vmem>>, %arg3: memref<4x4352xf32, #tpu.memory_space<vmem>>, %arg4: memref<4352x128xf32, #tpu.memory_space<vmem>>, %arg5: memref<1x128xf32, #tpu.memory_space<vmem>>, %arg6: memref<2x128xf32, #tpu.memory_space<vmem>>, %arg7: memref<8x128xf32, #tpu.memory_space<vmem>>) attributes {dimension_semantics = [#tpu.dimension_semantics<parallel>, #tpu.dimension_semantics<arbitrary>], iteration_bounds = array<i64: 1, 1>, scalar_prefetch = 0 : i64, scratch_operands = 1 : i64, tpu.core_type = #tpu.core_type<tc>, window_params = [{transform_indices = @transform_0, window_bounds = array<i64: 8, 256>}, {pipeline_mode = #tpu.pipeline_mode<synchronous>, transform_indices = @transform_1, window_bounds = array<i64: 4, 4352>}, {pipeline_mode = #tpu.pipeline_mode<synchronous>, transform_indices = @transform_2, window_bounds = array<i64: 4352, 128>}, {pipeline_mode = #tpu.pipeline_mode<synchronous>, transform_indices = @transform_3, window_bounds = array<i64: 1, 128>}, {transform_indices = @transform_4, window_bounds = array<i64: 2, 128>}]} {
    %c0_i32 = arith.constant 0 : i32
    %0 = arith.cmpi eq, %arg1, %c0_i32 : i32
    %1 = arith.extui %0 : i1 to i32
    %c0_i32_0 = arith.constant 0 : i32
    %2 = arith.cmpi ne, %1, %c0_i32_0 : i32
    scf.if %2 {
      %cst = arith.constant 0.000000e+00 : f32
      %13 = vector.broadcast %cst : f32 to vector<8x128xf32>
      %c0_8 = arith.constant 0 : index
      %c0_9 = arith.constant 0 : index
      %14 = vector.load %arg7[%c0_8, %c0_9] : memref<8x128xf32, #tpu.memory_space<vmem>>, vector<8x128xf32>
      tpu.vector_store %arg7[%c0_8, %c0_9], %13 {strides = array<i32>} : memref<8x128xf32, #tpu.memory_space<vmem>>, vector<8x128xf32>,
    } else {
    }
    %c0 = arith.constant 0 : index
    %c0_1 = arith.constant 0 : index
    %3 = vector.load %arg2[%c0, %c0_1] : memref<8x256xf32, #tpu.memory_space<vmem>>, vector<8x256xf32>
    %4 = vector.extract_strided_slice %3 {offsets = [0, 0], sizes = [8, 128], strides = [1, 1]} : vector<8x256xf32> to vector<8x128xf32>
    %5 = vector.extract_strided_slice %3 {offsets = [0, 128], sizes = [8, 128], strides = [1, 1]} : vector<8x256xf32> to vector<8x128xf32>
    %6 = arith.addf %4, %5 : vector<8x128xf32>
    %c0_2 = arith.constant 0 : index
    %c0_3 = arith.constant 0 : index
    %7 = vector.load %arg7[%c0_2, %c0_3] : memref<8x128xf32, #tpu.memory_space<vmem>>, vector<8x128xf32>
    %8 = arith.addf %7, %6 : vector<8x128xf32>
    %c0_4 = arith.constant 0 : index
    %c0_5 = arith.constant 0 : index
    %9 = vector.load %arg7[%c0_4, %c0_5] : memref<8x128xf32, #tpu.memory_space<vmem>>, vector<8x128xf32>
    tpu.vector_store %arg7[%c0_4, %c0_5], %8 {strides = array<i32>} : memref<8x128xf32, #tpu.memory_space<vmem>>, vector<8x128xf32>,
    %c0_i32_6 = arith.constant 0 : i32
    %10 = arith.cmpi eq, %arg1, %c0_i32_6 : i32
    %11 = arith.extui %10 : i1 to i32
    %c0_i32_7 = arith.constant 0 : i32
    %12 = arith.cmpi ne, %11, %c0_i32_7 : i32
    scf.if %12 {
      %c0_8 = arith.constant 0 : index
      %c0_9 = arith.constant 0 : index
      %13 = tpu.strided_load %arg7[%c0_8, %c0_9] {strides = array<i32: 4, 1>} : memref<8x128xf32, #tpu.memory_space<vmem>>, vector<2x128xf32>
      %cst = arith.constant dense<0.000000e+00> : vector<2xf32>
      %14 = vector.multi_reduction <add>, %13, %cst [1] : vector<2x128xf32> to vector<2xf32>
      %15 = vector.shape_cast %14 : vector<2xf32> to vector<2x1xf32>
      %c1 = arith.constant 1 : index
      %c0_10 = arith.constant 0 : index
      %16 = tpu.strided_load %arg7[%c1, %c0_10] {strides = array<i32: 4, 1>} : memref<8x128xf32, #tpu.memory_space<vmem>>, vector<2x128xf32>
      %cst_11 = arith.constant dense<0.000000e+00> : vector<2xf32>
      %17 = vector.multi_reduction <add>, %16, %cst_11 [1] : vector<2x128xf32> to vector<2xf32>
      %18 = vector.shape_cast %17 : vector<2xf32> to vector<2x1xf32>
      %c2 = arith.constant 2 : index
      %c0_12 = arith.constant 0 : index
      %19 = tpu.strided_load %arg7[%c2, %c0_12] {strides = array<i32: 4, 1>} : memref<8x128xf32, #tpu.memory_space<vmem>>, vector<2x128xf32>
      %cst_13 = arith.constant dense<0.000000e+00> : vector<2xf32>
      %20 = vector.multi_reduction <add>, %19, %cst_13 [1] : vector<2x128xf32> to vector<2xf32>
      %21 = vector.shape_cast %20 : vector<2xf32> to vector<2x1xf32>
      %c3 = arith.constant 3 : index
      %c0_14 = arith.constant 0 : index
      %22 = tpu.strided_load %arg7[%c3, %c0_14] {strides = array<i32: 4, 1>} : memref<8x128xf32, #tpu.memory_space<vmem>>, vector<2x128xf32>
      %cst_15 = arith.constant dense<0.000000e+00> : vector<2xf32>
      %23 = vector.multi_reduction <add>, %22, %cst_15 [1] : vector<2x128xf32> to vector<2xf32>
      %24 = vector.shape_cast %23 : vector<2xf32> to vector<2x1xf32>
      %cst_16 = arith.constant 0.000000e+00 : f32
      %25 = vector.broadcast %cst_16 : f32 to vector<2x128xf32>
      %c0_17 = arith.constant 0 : index
      %c0_18 = arith.constant 0 : index
      %26 = vector.load %arg3[%c0_17, %c0_18] : memref<4x4352xf32, #tpu.memory_space<vmem>>, vector<1x512xf32>
      %27 = vector.broadcast %15 : vector<2x1xf32> to vector<2x512xf32>
      %28 = vector.broadcast %26 : vector<1x512xf32> to vector<2x512xf32>
      %29 = arith.mulf %27, %28 : vector<2x512xf32>
      %c1_19 = arith.constant 1 : index
      %c0_20 = arith.constant 0 : index
      %30 = vector.load %arg3[%c1_19, %c0_20] : memref<4x4352xf32, #tpu.memory_space<vmem>>, vector<1x512xf32>
      %31 = vector.broadcast %18 : vector<2x1xf32> to vector<2x512xf32>
      %32 = vector.broadcast %30 : vector<1x512xf32> to vector<2x512xf32>
      %33 = arith.mulf %31, %32 : vector<2x512xf32>
      %34 = arith.addf %29, %33 : vector<2x512xf32>
      %c2_21 = arith.constant 2 : index
      %c0_22 = arith.constant 0 : index
      %35 = vector.load %arg3[%c2_21, %c0_22] : memref<4x4352xf32, #tpu.memory_space<vmem>>, vector<1x512xf32>
      %36 = vector.broadcast %21 : vector<2x1xf32> to vector<2x512xf32>
      %37 = vector.broadcast %35 : vector<1x512xf32> to vector<2x512xf32>
      %38 = arith.mulf %36, %37 : vector<2x512xf32>
      %39 = arith.addf %34, %38 : vector<2x512xf32>
      %c3_23 = arith.constant 3 : index
      %c0_24 = arith.constant 0 : index
      %40 = vector.load %arg3[%c3_23, %c0_24] : memref<4x4352xf32, #tpu.memory_space<vmem>>, vector<1x512xf32>
      %41 = vector.broadcast %24 : vector<2x1xf32> to vector<2x512xf32>
      %42 = vector.broadcast %40 : vector<1x512xf32> to vector<2x512xf32>
      %43 = arith.mulf %41, %42 : vector<2x512xf32>
      %44 = arith.addf %39, %43 : vector<2x512xf32>
      %cst_25 = arith.constant 0.000000e+00 : f32
      %45 = vector.broadcast %cst_25 : f32 to vector<2x512xf32>
      %46 = arith.maximumf %44, %45 : vector<2x512xf32>
      %c0_26 = arith.constant 0 : index
      %c0_27 = arith.constant 0 : index
      %47 = vector.load %arg4[%c0_26, %c0_27] : memref<4352x128xf32, #tpu.memory_space<vmem>>, vector<512x128xf32>
      %cst_28 = arith.constant dense<0.000000e+00> : vector<2x128xf32>
      %48 = tpu.matmul %46, %47, %cst_28 {dimension_numbers = #tpu.dot_dimension_numbers<[1], [0], [0], [1], [0, 0, 1, 1], [], []>} : vector<2x512xf32>, vector<512x128xf32>, vector<2x128xf32> -> vector<2x128xf32>
      %49 = arith.addf %25, %48 : vector<2x128xf32>
      %c0_29 = arith.constant 0 : index
      %c512 = arith.constant 512 : index
      %50 = vector.load %arg3[%c0_29, %c512] : memref<4x4352xf32, #tpu.memory_space<vmem>>, vector<1x512xf32>
      %51 = vector.broadcast %15 : vector<2x1xf32> to vector<2x512xf32>
      %52 = vector.broadcast %50 : vector<1x512xf32> to vector<2x512xf32>
      %53 = arith.mulf %51, %52 : vector<2x512xf32>
      %c1_30 = arith.constant 1 : index
      %c512_31 = arith.constant 512 : index
      %54 = vector.load %arg3[%c1_30, %c512_31] : memref<4x4352xf32, #tpu.memory_space<vmem>>, vector<1x512xf32>
      %55 = vector.broadcast %18 : vector<2x1xf32> to vector<2x512xf32>
      %56 = vector.broadcast %54 : vector<1x512xf32> to vector<2x512xf32>
      %57 = arith.mulf %55, %56 : vector<2x512xf32>
      %58 = arith.addf %53, %57 : vector<2x512xf32>
      %c2_32 = arith.constant 2 : index
      %c512_33 = arith.constant 512 : index
      %59 = vector.load %arg3[%c2_32, %c512_33] : memref<4x4352xf32, #tpu.memory_space<vmem>>, vector<1x512xf32>
      %60 = vector.broadcast %21 : vector<2x1xf32> to vector<2x512xf32>
      %61 = vector.broadcast %59 : vector<1x512xf32> to vector<2x512xf32>
      %62 = arith.mulf %60, %61 : vector<2x512xf32>
      %63 = arith.addf %58, %62 : vector<2x512xf32>
      %c3_34 = arith.constant 3 : index
      %c512_35 = arith.constant 512 : index
      %64 = vector.load %arg3[%c3_34, %c512_35] : memref<4x4352xf32, #tpu.memory_space<vmem>>, vector<1x512xf32>
      %65 = vector.broadcast %24 : vector<2x1xf32> to vector<2x512xf32>
      %66 = vector.broadcast %64 : vector<1x512xf32> to vector<2x512xf32>
      %67 = arith.mulf %65, %66 : vector<2x512xf32>
      %68 = arith.addf %63, %67 : vector<2x512xf32>
      %cst_36 = arith.constant 0.000000e+00 : f32
      %69 = vector.broadcast %cst_36 : f32 to vector<2x512xf32>
      %70 = arith.maximumf %68, %69 : vector<2x512xf32>
      %c512_37 = arith.constant 512 : index
      %c0_38 = arith.constant 0 : index
      %71 = vector.load %arg4[%c512_37, %c0_38] : memref<4352x128xf32, #tpu.memory_space<vmem>>, vector<512x128xf32>
      %cst_39 = arith.constant dense<0.000000e+00> : vector<2x128xf32>
      %72 = tpu.matmul %70, %71, %cst_39 {dimension_numbers = #tpu.dot_dimension_numbers<[1], [0], [0], [1], [0, 0, 1, 1], [], []>} : vector<2x512xf32>, vector<512x128xf32>, vector<2x128xf32> -> vector<2x128xf32>
      %73 = arith.addf %49, %72 : vector<2x128xf32>
      %c0_40 = arith.constant 0 : index
      %c1024 = arith.constant 1024 : index
      %74 = vector.load %arg3[%c0_40, %c1024] : memref<4x4352xf32, #tpu.memory_space<vmem>>, vector<1x512xf32>
      %75 = vector.broadcast %15 : vector<2x1xf32> to vector<2x512xf32>
      %76 = vector.broadcast %74 : vector<1x512xf32> to vector<2x512xf32>
      %77 = arith.mulf %75, %76 : vector<2x512xf32>
      %c1_41 = arith.constant 1 : index
      %c1024_42 = arith.constant 1024 : index
      %78 = vector.load %arg3[%c1_41, %c1024_42] : memref<4x4352xf32, #tpu.memory_space<vmem>>, vector<1x512xf32>
      %79 = vector.broadcast %18 : vector<2x1xf32> to vector<2x512xf32>
      %80 = vector.broadcast %78 : vector<1x512xf32> to vector<2x512xf32>
      %81 = arith.mulf %79, %80 : vector<2x512xf32>
      %82 = arith.addf %77, %81 : vector<2x512xf32>
      %c2_43 = arith.constant 2 : index
      %c1024_44 = arith.constant 1024 : index
      %83 = vector.load %arg3[%c2_43, %c1024_44] : memref<4x4352xf32, #tpu.memory_space<vmem>>, vector<1x512xf32>
      %84 = vector.broadcast %21 : vector<2x1xf32> to vector<2x512xf32>
      %85 = vector.broadcast %83 : vector<1x512xf32> to vector<2x512xf32>
      %86 = arith.mulf %84, %85 : vector<2x512xf32>
      %87 = arith.addf %82, %86 : vector<2x512xf32>
      %c3_45 = arith.constant 3 : index
      %c1024_46 = arith.constant 1024 : index
      %88 = vector.load %arg3[%c3_45, %c1024_46] : memref<4x4352xf32, #tpu.memory_space<vmem>>, vector<1x512xf32>
      %89 = vector.broadcast %24 : vector<2x1xf32> to vector<2x512xf32>
      %90 = vector.broadcast %88 : vector<1x512xf32> to vector<2x512xf32>
      %91 = arith.mulf %89, %90 : vector<2x512xf32>
      %92 = arith.addf %87, %91 : vector<2x512xf32>
      %cst_47 = arith.constant 0.000000e+00 : f32
      %93 = vector.broadcast %cst_47 : f32 to vector<2x512xf32>
      %94 = arith.maximumf %92, %93 : vector<2x512xf32>
      %c1024_48 = arith.constant 1024 : index
      %c0_49 = arith.constant 0 : index
      %95 = vector.load %arg4[%c1024_48, %c0_49] : memref<4352x128xf32, #tpu.memory_space<vmem>>, vector<512x128xf32>
      %cst_50 = arith.constant dense<0.000000e+00> : vector<2x128xf32>
      %96 = tpu.matmul %94, %95, %cst_50 {dimension_numbers = #tpu.dot_dimension_numbers<[1], [0], [0], [1], [0, 0, 1, 1], [], []>} : vector<2x512xf32>, vector<512x128xf32>, vector<2x128xf32> -> vector<2x128xf32>
      %97 = arith.addf %73, %96 : vector<2x128xf32>
      %c0_51 = arith.constant 0 : index
      %c1536 = arith.constant 1536 : index
      %98 = vector.load %arg3[%c0_51, %c1536] : memref<4x4352xf32, #tpu.memory_space<vmem>>, vector<1x512xf32>
      %99 = vector.broadcast %15 : vector<2x1xf32> to vector<2x512xf32>
      %100 = vector.broadcast %98 : vector<1x512xf32> to vector<2x512xf32>
      %101 = arith.mulf %99, %100 : vector<2x512xf32>
      %c1_52 = arith.constant 1 : index
      %c1536_53 = arith.constant 1536 : index
      %102 = vector.load %arg3[%c1_52, %c1536_53] : memref<4x4352xf32, #tpu.memory_space<vmem>>, vector<1x512xf32>
      %103 = vector.broadcast %18 : vector<2x1xf32> to vector<2x512xf32>
      %104 = vector.broadcast %102 : vector<1x512xf32> to vector<2x512xf32>
      %105 = arith.mulf %103, %104 : vector<2x512xf32>
      %106 = arith.addf %101, %105 : vector<2x512xf32>
      %c2_54 = arith.constant 2 : index
      %c1536_55 = arith.constant 1536 : index
      %107 = vector.load %arg3[%c2_54, %c1536_55] : memref<4x4352xf32, #tpu.memory_space<vmem>>, vector<1x512xf32>
      %108 = vector.broadcast %21 : vector<2x1xf32> to vector<2x512xf32>
      %109 = vector.broadcast %107 : vector<1x512xf32> to vector<2x512xf32>
      %110 = arith.mulf %108, %109 : vector<2x512xf32>
      %111 = arith.addf %106, %110 : vector<2x512xf32>
      %c3_56 = arith.constant 3 : index
      %c1536_57 = arith.constant 1536 : index
      %112 = vector.load %arg3[%c3_56, %c1536_57] : memref<4x4352xf32, #tpu.memory_space<vmem>>, vector<1x512xf32>
      %113 = vector.broadcast %24 : vector<2x1xf32> to vector<2x512xf32>
      %114 = vector.broadcast %112 : vector<1x512xf32> to vector<2x512xf32>
      %115 = arith.mulf %113, %114 : vector<2x512xf32>
      %116 = arith.addf %111, %115 : vector<2x512xf32>
      %cst_58 = arith.constant 0.000000e+00 : f32
      %117 = vector.broadcast %cst_58 : f32 to vector<2x512xf32>
      %118 = arith.maximumf %116, %117 : vector<2x512xf32>
      %c1536_59 = arith.constant 1536 : index
      %c0_60 = arith.constant 0 : index
      %119 = vector.load %arg4[%c1536_59, %c0_60] : memref<4352x128xf32, #tpu.memory_space<vmem>>, vector<512x128xf32>
      %cst_61 = arith.constant dense<0.000000e+00> : vector<2x128xf32>
      %120 = tpu.matmul %118, %119, %cst_61 {dimension_numbers = #tpu.dot_dimension_numbers<[1], [0], [0], [1], [0, 0, 1, 1], [], []>} : vector<2x512xf32>, vector<512x128xf32>, vector<2x128xf32> -> vector<2x128xf32>
      %121 = arith.addf %97, %120 : vector<2x128xf32>
      %c0_62 = arith.constant 0 : index
      %c2048 = arith.constant 2048 : index
      %122 = vector.load %arg3[%c0_62, %c2048] : memref<4x4352xf32, #tpu.memory_space<vmem>>, vector<1x512xf32>
      %123 = vector.broadcast %15 : vector<2x1xf32> to vector<2x512xf32>
      %124 = vector.broadcast %122 : vector<1x512xf32> to vector<2x512xf32>
      %125 = arith.mulf %123, %124 : vector<2x512xf32>
      %c1_63 = arith.constant 1 : index
      %c2048_64 = arith.constant 2048 : index
      %126 = vector.load %arg3[%c1_63, %c2048_64] : memref<4x4352xf32, #tpu.memory_space<vmem>>, vector<1x512xf32>
      %127 = vector.broadcast %18 : vector<2x1xf32> to vector<2x512xf32>
      %128 = vector.broadcast %126 : vector<1x512xf32> to vector<2x512xf32>
      %129 = arith.mulf %127, %128 : vector<2x512xf32>
      %130 = arith.addf %125, %129 : vector<2x512xf32>
      %c2_65 = arith.constant 2 : index
      %c2048_66 = arith.constant 2048 : index
      %131 = vector.load %arg3[%c2_65, %c2048_66] : memref<4x4352xf32, #tpu.memory_space<vmem>>, vector<1x512xf32>
      %132 = vector.broadcast %21 : vector<2x1xf32> to vector<2x512xf32>
      %133 = vector.broadcast %131 : vector<1x512xf32> to vector<2x512xf32>
      %134 = arith.mulf %132, %133 : vector<2x512xf32>
      %135 = arith.addf %130, %134 : vector<2x512xf32>
      %c3_67 = arith.constant 3 : index
      %c2048_68 = arith.constant 2048 : index
      %136 = vector.load %arg3[%c3_67, %c2048_68] : memref<4x4352xf32, #tpu.memory_space<vmem>>, vector<1x512xf32>
      %137 = vector.broadcast %24 : vector<2x1xf32> to vector<2x512xf32>
      %138 = vector.broadcast %136 : vector<1x512xf32> to vector<2x512xf32>
      %139 = arith.mulf %137, %138 : vector<2x512xf32>
      %140 = arith.addf %135, %139 : vector<2x512xf32>
      %cst_69 = arith.constant 0.000000e+00 : f32
      %141 = vector.broadcast %cst_69 : f32 to vector<2x512xf32>
      %142 = arith.maximumf %140, %141 : vector<2x512xf32>
      %c2048_70 = arith.constant 2048 : index
      %c0_71 = arith.constant 0 : index
      %143 = vector.load %arg4[%c2048_70, %c0_71] : memref<4352x128xf32, #tpu.memory_space<vmem>>, vector<512x128xf32>
      %cst_72 = arith.constant dense<0.000000e+00> : vector<2x128xf32>
      %144 = tpu.matmul %142, %143, %cst_72 {dimension_numbers = #tpu.dot_dimension_numbers<[1], [0], [0], [1], [0, 0, 1, 1], [], []>} : vector<2x512xf32>, vector<512x128xf32>, vector<2x128xf32> -> vector<2x128xf32>
      %145 = arith.addf %121, %144 : vector<2x128xf32>
      %c0_73 = arith.constant 0 : index
      %c2560 = arith.constant 2560 : index
      %146 = vector.load %arg3[%c0_73, %c2560] : memref<4x4352xf32, #tpu.memory_space<vmem>>, vector<1x512xf32>
      %147 = vector.broadcast %15 : vector<2x1xf32> to vector<2x512xf32>
      %148 = vector.broadcast %146 : vector<1x512xf32> to vector<2x512xf32>
      %149 = arith.mulf %147, %148 : vector<2x512xf32>
      %c1_74 = arith.constant 1 : index
      %c2560_75 = arith.constant 2560 : index
      %150 = vector.load %arg3[%c1_74, %c2560_75] : memref<4x4352xf32, #tpu.memory_space<vmem>>, vector<1x512xf32>
      %151 = vector.broadcast %18 : vector<2x1xf32> to vector<2x512xf32>
      %152 = vector.broadcast %150 : vector<1x512xf32> to vector<2x512xf32>
      %153 = arith.mulf %151, %152 : vector<2x512xf32>
      %154 = arith.addf %149, %153 : vector<2x512xf32>
      %c2_76 = arith.constant 2 : index
      %c2560_77 = arith.constant 2560 : index
      %155 = vector.load %arg3[%c2_76, %c2560_77] : memref<4x4352xf32, #tpu.memory_space<vmem>>, vector<1x512xf32>
      %156 = vector.broadcast %21 : vector<2x1xf32> to vector<2x512xf32>
      %157 = vector.broadcast %155 : vector<1x512xf32> to vector<2x512xf32>
      %158 = arith.mulf %156, %157 : vector<2x512xf32>
      %159 = arith.addf %154, %158 : vector<2x512xf32>
      %c3_78 = arith.constant 3 : index
      %c2560_79 = arith.constant 2560 : index
      %160 = vector.load %arg3[%c3_78, %c2560_79] : memref<4x4352xf32, #tpu.memory_space<vmem>>, vector<1x512xf32>
      %161 = vector.broadcast %24 : vector<2x1xf32> to vector<2x512xf32>
      %162 = vector.broadcast %160 : vector<1x512xf32> to vector<2x512xf32>
      %163 = arith.mulf %161, %162 : vector<2x512xf32>
      %164 = arith.addf %159, %163 : vector<2x512xf32>
      %cst_80 = arith.constant 0.000000e+00 : f32
      %165 = vector.broadcast %cst_80 : f32 to vector<2x512xf32>
      %166 = arith.maximumf %164, %165 : vector<2x512xf32>
      %c2560_81 = arith.constant 2560 : index
      %c0_82 = arith.constant 0 : index
      %167 = vector.load %arg4[%c2560_81, %c0_82] : memref<4352x128xf32, #tpu.memory_space<vmem>>, vector<512x128xf32>
      %cst_83 = arith.constant dense<0.000000e+00> : vector<2x128xf32>
      %168 = tpu.matmul %166, %167, %cst_83 {dimension_numbers = #tpu.dot_dimension_numbers<[1], [0], [0], [1], [0, 0, 1, 1], [], []>} : vector<2x512xf32>, vector<512x128xf32>, vector<2x128xf32> -> vector<2x128xf32>
      %169 = arith.addf %145, %168 : vector<2x128xf32>
      %c0_84 = arith.constant 0 : index
      %c3072 = arith.constant 3072 : index
      %170 = vector.load %arg3[%c0_84, %c3072] : memref<4x4352xf32, #tpu.memory_space<vmem>>, vector<1x512xf32>
      %171 = vector.broadcast %15 : vector<2x1xf32> to vector<2x512xf32>
      %172 = vector.broadcast %170 : vector<1x512xf32> to vector<2x512xf32>
      %173 = arith.mulf %171, %172 : vector<2x512xf32>
      %c1_85 = arith.constant 1 : index
      %c3072_86 = arith.constant 3072 : index
      %174 = vector.load %arg3[%c1_85, %c3072_86] : memref<4x4352xf32, #tpu.memory_space<vmem>>, vector<1x512xf32>
      %175 = vector.broadcast %18 : vector<2x1xf32> to vector<2x512xf32>
      %176 = vector.broadcast %174 : vector<1x512xf32> to vector<2x512xf32>
      %177 = arith.mulf %175, %176 : vector<2x512xf32>
      %178 = arith.addf %173, %177 : vector<2x512xf32>
      %c2_87 = arith.constant 2 : index
      %c3072_88 = arith.constant 3072 : index
      %179 = vector.load %arg3[%c2_87, %c3072_88] : memref<4x4352xf32, #tpu.memory_space<vmem>>, vector<1x512xf32>
      %180 = vector.broadcast %21 : vector<2x1xf32> to vector<2x512xf32>
      %181 = vector.broadcast %179 : vector<1x512xf32> to vector<2x512xf32>
      %182 = arith.mulf %180, %181 : vector<2x512xf32>
      %183 = arith.addf %178, %182 : vector<2x512xf32>
      %c3_89 = arith.constant 3 : index
      %c3072_90 = arith.constant 3072 : index
      %184 = vector.load %arg3[%c3_89, %c3072_90] : memref<4x4352xf32, #tpu.memory_space<vmem>>, vector<1x512xf32>
      %185 = vector.broadcast %24 : vector<2x1xf32> to vector<2x512xf32>
      %186 = vector.broadcast %184 : vector<1x512xf32> to vector<2x512xf32>
      %187 = arith.mulf %185, %186 : vector<2x512xf32>
      %188 = arith.addf %183, %187 : vector<2x512xf32>
      %cst_91 = arith.constant 0.000000e+00 : f32
      %189 = vector.broadcast %cst_91 : f32 to vector<2x512xf32>
      %190 = arith.maximumf %188, %189 : vector<2x512xf32>
      %c3072_92 = arith.constant 3072 : index
      %c0_93 = arith.constant 0 : index
      %191 = vector.load %arg4[%c3072_92, %c0_93] : memref<4352x128xf32, #tpu.memory_space<vmem>>, vector<512x128xf32>
      %cst_94 = arith.constant dense<0.000000e+00> : vector<2x128xf32>
      %192 = tpu.matmul %190, %191, %cst_94 {dimension_numbers = #tpu.dot_dimension_numbers<[1], [0], [0], [1], [0, 0, 1, 1], [], []>} : vector<2x512xf32>, vector<512x128xf32>, vector<2x128xf32> -> vector<2x128xf32>
      %193 = arith.addf %169, %192 : vector<2x128xf32>
      %c0_95 = arith.constant 0 : index
      %c3584 = arith.constant 3584 : index
      %194 = vector.load %arg3[%c0_95, %c3584] : memref<4x4352xf32, #tpu.memory_space<vmem>>, vector<1x512xf32>
      %195 = vector.broadcast %15 : vector<2x1xf32> to vector<2x512xf32>
      %196 = vector.broadcast %194 : vector<1x512xf32> to vector<2x512xf32>
      %197 = arith.mulf %195, %196 : vector<2x512xf32>
      %c1_96 = arith.constant 1 : index
      %c3584_97 = arith.constant 3584 : index
      %198 = vector.load %arg3[%c1_96, %c3584_97] : memref<4x4352xf32, #tpu.memory_space<vmem>>, vector<1x512xf32>
      %199 = vector.broadcast %18 : vector<2x1xf32> to vector<2x512xf32>
      %200 = vector.broadcast %198 : vector<1x512xf32> to vector<2x512xf32>
      %201 = arith.mulf %199, %200 : vector<2x512xf32>
      %202 = arith.addf %197, %201 : vector<2x512xf32>
      %c2_98 = arith.constant 2 : index
      %c3584_99 = arith.constant 3584 : index
      %203 = vector.load %arg3[%c2_98, %c3584_99] : memref<4x4352xf32, #tpu.memory_space<vmem>>, vector<1x512xf32>
      %204 = vector.broadcast %21 : vector<2x1xf32> to vector<2x512xf32>
      %205 = vector.broadcast %203 : vector<1x512xf32> to vector<2x512xf32>
      %206 = arith.mulf %204, %205 : vector<2x512xf32>
      %207 = arith.addf %202, %206 : vector<2x512xf32>
      %c3_100 = arith.constant 3 : index
      %c3584_101 = arith.constant 3584 : index
      %208 = vector.load %arg3[%c3_100, %c3584_101] : memref<4x4352xf32, #tpu.memory_space<vmem>>, vector<1x512xf32>
      %209 = vector.broadcast %24 : vector<2x1xf32> to vector<2x512xf32>
      %210 = vector.broadcast %208 : vector<1x512xf32> to vector<2x512xf32>
      %211 = arith.mulf %209, %210 : vector<2x512xf32>
      %212 = arith.addf %207, %211 : vector<2x512xf32>
      %cst_102 = arith.constant 0.000000e+00 : f32
      %213 = vector.broadcast %cst_102 : f32 to vector<2x512xf32>
      %214 = arith.maximumf %212, %213 : vector<2x512xf32>
      %c3584_103 = arith.constant 3584 : index
      %c0_104 = arith.constant 0 : index
      %215 = vector.load %arg4[%c3584_103, %c0_104] : memref<4352x128xf32, #tpu.memory_space<vmem>>, vector<512x128xf32>
      %cst_105 = arith.constant dense<0.000000e+00> : vector<2x128xf32>
      %216 = tpu.matmul %214, %215, %cst_105 {dimension_numbers = #tpu.dot_dimension_numbers<[1], [0], [0], [1], [0, 0, 1, 1], [], []>} : vector<2x512xf32>, vector<512x128xf32>, vector<2x128xf32> -> vector<2x128xf32>
      %217 = arith.addf %193, %216 : vector<2x128xf32>
      %c0_106 = arith.constant 0 : index
      %c4096 = arith.constant 4096 : index
      %218 = vector.load %arg3[%c0_106, %c4096] : memref<4x4352xf32, #tpu.memory_space<vmem>>, vector<1x256xf32>
      %219 = vector.broadcast %15 : vector<2x1xf32> to vector<2x256xf32>
      %220 = vector.broadcast %218 : vector<1x256xf32> to vector<2x256xf32>
      %221 = arith.mulf %219, %220 : vector<2x256xf32>
      %c1_107 = arith.constant 1 : index
      %c4096_108 = arith.constant 4096 : index
      %222 = vector.load %arg3[%c1_107, %c4096_108] : memref<4x4352xf32, #tpu.memory_space<vmem>>, vector<1x256xf32>
      %223 = vector.broadcast %18 : vector<2x1xf32> to vector<2x256xf32>
      %224 = vector.broadcast %222 : vector<1x256xf32> to vector<2x256xf32>
      %225 = arith.mulf %223, %224 : vector<2x256xf32>
      %226 = arith.addf %221, %225 : vector<2x256xf32>
      %c2_109 = arith.constant 2 : index
      %c4096_110 = arith.constant 4096 : index
      %227 = vector.load %arg3[%c2_109, %c4096_110] : memref<4x4352xf32, #tpu.memory_space<vmem>>, vector<1x256xf32>
      %228 = vector.broadcast %21 : vector<2x1xf32> to vector<2x256xf32>
      %229 = vector.broadcast %227 : vector<1x256xf32> to vector<2x256xf32>
      %230 = arith.mulf %228, %229 : vector<2x256xf32>
      %231 = arith.addf %226, %230 : vector<2x256xf32>
      %c3_111 = arith.constant 3 : index
      %c4096_112 = arith.constant 4096 : index
      %232 = vector.load %arg3[%c3_111, %c4096_112] : memref<4x4352xf32, #tpu.memory_space<vmem>>, vector<1x256xf32>
      %233 = vector.broadcast %24 : vector<2x1xf32> to vector<2x256xf32>
      %234 = vector.broadcast %232 : vector<1x256xf32> to vector<2x256xf32>
      %235 = arith.mulf %233, %234 : vector<2x256xf32>
      %236 = arith.addf %231, %235 : vector<2x256xf32>
      %cst_113 = arith.constant 0.000000e+00 : f32
      %237 = vector.broadcast %cst_113 : f32 to vector<2x256xf32>
      %238 = arith.maximumf %236, %237 : vector<2x256xf32>
      %c4096_114 = arith.constant 4096 : index
      %c0_115 = arith.constant 0 : index
      %239 = vector.load %arg4[%c4096_114, %c0_115] : memref<4352x128xf32, #tpu.memory_space<vmem>>, vector<256x128xf32>
      %cst_116 = arith.constant dense<0.000000e+00> : vector<2x128xf32>
      %240 = tpu.matmul %238, %239, %cst_116 {dimension_numbers = #tpu.dot_dimension_numbers<[1], [0], [0], [1], [0, 0, 1, 1], [], []>} : vector<2x256xf32>, vector<256x128xf32>, vector<2x128xf32> -> vector<2x128xf32>
      %241 = arith.addf %217, %240 : vector<2x128xf32>
      %c0_117 = arith.constant 0 : index
      %c0_118 = arith.constant 0 : index
      %242 = vector.load %arg5[%c0_117, %c0_118] : memref<1x128xf32, #tpu.memory_space<vmem>>, vector<1x128xf32>
      %243 = vector.broadcast %242 : vector<1x128xf32> to vector<2x128xf32>
      %244 = arith.addf %241, %243 : vector<2x128xf32>
      %c0_119 = arith.constant 0 : index
      %c0_120 = arith.constant 0 : index
      %245 = vector.load %arg6[%c0_119, %c0_120] : memref<2x128xf32, #tpu.memory_space<vmem>>, vector<2x128xf32>
      tpu.vector_store %arg6[%c0_119, %c0_120], %244 {strides = array<i32>} : memref<2x128xf32, #tpu.memory_space<vmem>>, vector<2x128xf32>,
    } else {
    }
    return
  }
  func.func @transform_0(%arg0: i32, %arg1: i32) -> (i32, i32) {
    %c0_i32 = arith.constant 0 : i32
    return %arg0, %arg1 : i32, i32
  }
  func.func @transform_1(%arg0: i32, %arg1: i32) -> (i32, i32) {
    %c0_i32 = arith.constant 0 : i32
    %c0_i32_0 = arith.constant 0 : i32
    %c0_i32_1 = arith.constant 0 : i32
    return %c0_i32, %c0_i32_0 : i32, i32
  }
  func.func @transform_2(%arg0: i32, %arg1: i32) -> (i32, i32) {
    %c0_i32 = arith.constant 0 : i32
    %c0_i32_0 = arith.constant 0 : i32
    %c0_i32_1 = arith.constant 0 : i32
    return %c0_i32, %c0_i32_0 : i32, i32
  }
  func.func @transform_3(%arg0: i32, %arg1: i32) -> (i32, i32) {
    %c0_i32 = arith.constant 0 : i32
    %c0_i32_0 = arith.constant 0 : i32
    %c0_i32_1 = arith.constant 0 : i32
    return %c0_i32, %c0_i32_0 : i32, i32
  }
  func.func @transform_4(%arg0: i32, %arg1: i32) -> (i32, i32) {
    %c0_i32 = arith.constant 0 : i32
    %c0_i32_0 = arith.constant 0 : i32
    return %arg0, %c0_i32 : i32, i32
  }
}

</mosaic_0001>

<bundles_post_ra>
// kernel: tpu_custom_call.1
= control target key start
LH: loop header
LB: loop body
LE: loop exit
PB: predicated region body
PF: predicated region fallthrough
CT: control target
= control target key end

     0   :  { %9 = vsyncpa [#allocation4], 0  ;;  %s4779_s0 = inlined_call_operand.hbm [shape: f32[8,256], index: 0, kind: input, shape index: {}]   ;;  %s4780_s1 = inlined_call_operand.hbm [shape: f32[4,4352], index: 1, kind: input, shape index: {}]   ;;  %s4781_s2 = inlined_call_operand.hbm [shape: f32[4352,128], index: 2, kind: input, shape index: {}]   ;;  %s4782_s3 = inlined_call_operand.hbm [shape: f32[1,128], index: 3, kind: input, shape index: {}]   ;;  %s4783_s4 = inlined_call_operand.hbm [shape: f32[2,128], index: 4, kind: output, shape index: {}]  }
   0x1   :  { %10 = vsyncpa [#allocation7], 0 }
   0x2   :  { %11 = vsyncpa [#allocation10], 0 }
   0x3   :  { %12 = vsyncpa [#allocation5], 0  ;;  %s4193_s15 = smov [#allocation6]   ;;  %s4194_s17 = smov [#allocation3]  }
   0x4   :  { %s29_s16 = sshll.u32 %s4193_s15, 4  ;;  %s19_s18 = sshll.u32 %s4194_s17, 4  ;;  %s30_s16 = int_to_ptr.vmem [resolvable:$true] %s29_s16  ;;  %s20_s18 = int_to_ptr.vmem [resolvable:$true] %s19_s18 }
   0x5   :  { %s4075_s21 = scalar_lea.hbm %s4780_s1, 2176 }
   0x6   :  { %p4076_p0 = scmp.ne.s32.totalorder %s4780_s1, %s4075_s21  ;;  %p4079_p1 = scmp.lt.u32.totalorder %s4075_s21, %s4780_s1 }
   0x8   :  { %p4081_p2 = pnand %p4079_p1, %p4076_p0 }
   0xa   :  { %4084 = shalt.err (!%p4081_p2)
}
   0xb   :  { %s4085_s26 = scalar_lea.vmem %s30_s16, 2176  ;;  %p4090_p4 = scmp.lt.s32.totalorder %s30_s16, %s30_s16 }
   0xc   :  { %p4086_p3 = scmp.ne.s32.totalorder %s30_s16, %s4085_s26  ;;  %p4091_p5 = scmp.lt.s32.totalorder %s4085_s26, %s4085_s26 }
   0xe   :  { %p4092_p6 = por %p4091_p5, %p4090_p4 }
  0x10   :  { %p4093_p7 = pnand %p4092_p6, %p4086_p3 }
  0x12   :  { %4096 = shalt.err (!%p4093_p7)
}
  0x13   :  { %32 = dma.hbm_to_vmem [thread:$0]  %s4780_s1, 2176, %s30_s16, [#allocation7]  }
  0x14   :  { %s4097_s5 = scalar_lea.hbm %s4779_s0, 256 }
  0x15   :  { %p4098_p8 = scmp.ne.s32.totalorder %s4779_s0, %s4097_s5  ;;  %p4101_p9 = scmp.lt.u32.totalorder %s4097_s5, %s4779_s0 }
  0x17   :  { %p4103_p10 = pnand %p4101_p9, %p4098_p8 }
  0x19   :  { %4106 = shalt.err (!%p4103_p10)
}
  0x1a   :  { %s4107_s10 = scalar_lea.vmem %s20_s18, 256  ;;  %p4112_p12 = scmp.lt.s32.totalorder %s20_s18, %s20_s18 }
  0x1b   :  { %p4108_p11 = scmp.ne.s32.totalorder %s20_s18, %s4107_s10  ;;  %p4113_p13 = scmp.lt.s32.totalorder %s4107_s10, %s4107_s10 }
  0x1d   :  { %p4114_p0 = por %p4113_p13, %p4112_p12 }
  0x1f   :  { %p4115_p1 = pnand %p4114_p0, %p4108_p11 }
  0x21   :  { %4118 = shalt.err (!%p4115_p1)
}
  0x22   :  { %22 = dma.hbm_to_vmem [thread:$0]  %s4779_s0, 256, %s20_s18, [#allocation4]  }
  0x23   :  { %s4195_s12 = smov [#allocation8]   ;;  %s4119_s16 = scalar_lea.hbm %s4781_s2, 69632 }
  0x24   :  { %s38_s13 = sshll.u32 %s4195_s12, 4  ;;  %p4120_p2 = scmp.ne.s32.totalorder %s4781_s2, %s4119_s16  ;;  %s39_s13 = int_to_ptr.vmem [resolvable:$true] %s38_s13 }
  0x25   :  { %p4123_p3 = scmp.lt.u32.totalorder %s4119_s16, %s4781_s2 }
  0x27   :  { %p4125_p4 = pnand %p4123_p3, %p4120_p2 }
  0x29   :  { %4128 = shalt.err (!%p4125_p4)
}
  0x2a   :  { %s4129_s22 = scalar_lea.vmem %s39_s13, 69632  ;;  %p4134_p6 = scmp.lt.s32.totalorder %s39_s13, %s39_s13 }
  0x2b   :  { %p4130_p5 = scmp.ne.s32.totalorder %s39_s13, %s4129_s22  ;;  %p4135_p7 = scmp.lt.s32.totalorder %s4129_s22, %s4129_s22 }
  0x2d   :  { %p4136_p8 = por %p4135_p7, %p4134_p6 }
  0x2f   :  { %p4137_p9 = pnand %p4136_p8, %p4130_p5 }
  0x31   :  { %4140 = shalt.err (!%p4137_p9)
}
  0x32   :  { %s4196_s0 = smov 128   ;;  %s4197_s18 = smov 8  }
  0x33   :  { %44 = dma.hbm_to_vmem [thread:$0]  %s4781_s2, 69632, %s39_s13, [#allocation7], %s4196_s0, %s4196_s0, %s4197_s18  }
  0x34   :  { %s4198_s25 = smov [#allocation9]   ;;  %s4141_s29 = scalar_lea.hbm %s4782_s3, 16 }
  0x35   :  { %s51_s26 = sshll.u32 %s4198_s25, 4  ;;  %p4142_p10 = scmp.ne.s32.totalorder %s4782_s3, %s4141_s29  ;;  %s52_s26 = int_to_ptr.vmem [resolvable:$true] %s51_s26 }
  0x36   :  { %p4145_p11 = scmp.lt.u32.totalorder %s4141_s29, %s4782_s3 }
  0x38   :  { %p4147_p12 = pnand %p4145_p11, %p4142_p10 }
  0x3a   :  { %4150 = shalt.err (!%p4147_p12)
}
  0x3b   :  { %s4151_s8 = scalar_lea.vmem %s52_s26, 16  ;;  %s4155_s2 = scalar_lea.vmem %s52_s26, 32 }
  0x3c   :  { %p4152_p13 = scmp.ne.s32.totalorder %s52_s26, %s4151_s8  ;;  %p4156_p0 = scmp.lt.s32.totalorder %s52_s26, %s52_s26 }
  0x3d   :  { %p4157_p1 = scmp.lt.s32.totalorder %s4155_s2, %s4151_s8 }
  0x3f   :  { %p4158_p2 = por %p4157_p1, %p4156_p0 }
  0x41   :  { %p4159_p3 = pnand %p4158_p2, %p4152_p13 }
  0x43   :  { %4162 = shalt.err (!%p4159_p3)
}
  0x44   :  { %54 = dma.hbm_to_vmem [thread:$0]  %s4782_s3, 16, %s52_s26, [#allocation10]  }
  0x45   :  { %4185 = dma.done.wait [#allocation4], 256  }
  0x46   :  { %4186 = vsyncadd [#allocation4], 4294967040 }
  0x47   :  { %4187 = dma.done.wait [#allocation7], 71808  }
  0x48   :  { %4188 = vsyncadd [#allocation7], 4294895488 }
  0x49   :  { %4189 = dma.done.wait [#allocation10], 16  }
  0x4a   :  { %4190 = vsyncadd [#allocation10], 4294967280  ;;  %v72_v0 = vld [vmem:[#allocation3] sm:$0xff]  ;;  %v73_v1 = vld [vmem:[#allocation3 + $0x8] sm:$0xff]  ;;  %vm82_vm0 = vcmask 1041408   ;;  %s4199_s3 = smov [#allocation11]  }
  0x4b   :  { %v428_v2 = vld [vmem:[#allocation8 + $0x280] sm:$0xff]  ;;  %v74_v3 = vadd.f32 %v73_v1, %v72_v0  ;;  %v429_v4 = vld [vmem:[#allocation8 + $0x288] sm:$0xff]  ;;  %v430_v14 = vld [vmem:[#allocation8 + $0x290] sm:$0xff]  ;;  %s2916_s1 = sshll.u32 %s4199_s3, 4  ;;  %s2917_s1 = int_to_ptr.vmem [resolvable:$true] %s2916_s1 }
  0x4c   :  { %v460_v5 = vld [vmem:[#allocation8 + $0x380] sm:$0xff]  ;;  %v461_v6 = vld [vmem:[#allocation8 + $0x388] sm:$0xff]  ;;  %v3523_v7 = vpack.c.bf16 %v429_v4, %v428_v2  ;;  %v431_v15 = vld [vmem:[#allocation8 + $0x298] sm:$0xff]  ;;  %s4163_s11 = scalar_lea.vmem %s2917_s1, 32  ;;  %p4168_p5 = scmp.lt.s32.totalorder %s2917_s1, %s2917_s1 }
  0x4d   :  { %v3555_v8 = vpack.c.bf16 %v461_v6, %v460_v5  ;;  %v412_v9 = vld [vmem:[#allocation8 + $0x200] sm:$0xff]  ;;  %v413_v10 = vld [vmem:[#allocation8 + $0x208] sm:$0xff]  ;;  %v3527_v17 = vpack.c.bf16 %v431_v15, %v430_v14  ;;  %v462_v18 = vld [vmem:[#allocation8 + $0x390] sm:$0xff]  ;;  %77 = vst [vmem:[#allocation2] sm:$0xff] %v74_v3  ;;  %p4164_p4 = scmp.ne.s32.totalorder %s2917_s1, %s4163_s11  ;;  %p4169_p6 = scmp.lt.s32.totalorder %s4163_s11, %s4163_s11 }
  0x4e   :  { %v444_v11 = vld [vmem:[#allocation8 + $0x300] sm:$0xff]  ;;  %v3525_v12 = vpack.c.bf16 %v413_v10, %v412_v9  ;;  %v445_v13 = vld [vmem:[#allocation8 + $0x308] sm:$0xff]  ;;  %3524 = vmatprep.subr.bf16.mxu0 %v3523_v7  ;;  %v463_v19 = vld [vmem:[#allocation8 + $0x398] sm:$0xff] }
  0x4f   :  { %3556 = vmatprep.subr.bf16.mxu1 %v3555_v8  ;;  %v3557_v16 = vpack.c.bf16 %v445_v13, %v444_v11  ;;  %v414_v20 = vld [vmem:[#allocation8 + $0x210] sm:$0xff]  ;;  %v3559_v21 = vpack.c.bf16 %v463_v19, %v462_v18  ;;  %v415_v22 = vld [vmem:[#allocation8 + $0x218] sm:$0xff]  ;;  %v432_v27 = vld [vmem:[#allocation8 + $0x2a0] sm:$0xff]  ;;  %p4170_p7 = por %p4169_p6, %p4168_p5 }
  0x50   :  { %3526 = vmatpush3.bf16.msra.mxu0 %v3525_v12  ;;  %v446_v23 = vld [vmem:[#allocation8 + $0x310] sm:$0xff]  ;;  %v447_v24 = vld [vmem:[#allocation8 + $0x318] sm:$0xff]  ;;  %v3529_v25 = vpack.c.bf16 %v415_v22, %v414_v20  ;;  %v433_v28 = vld [vmem:[#allocation8 + $0x2a8] sm:$0xff] }
  0x51   :  { %3558 = vmatpush3.bf16.msra.mxu1 %v3557_v16  ;;  %3528 = vmatprep.subr.bf16.mxu0 %v3527_v17  ;;  %v3561_v26 = vpack.c.bf16 %v447_v24, %v446_v23  ;;  %v464_v29 = vld [vmem:[#allocation8 + $0x3a0] sm:$0xff]  ;;  %v3531_v30 = vpack.c.bf16 %v433_v28, %v432_v27  ;;  %v465_v31 = vld [vmem:[#allocation8 + $0x3a8] sm:$0xff]  ;;  %v434_v37 = vld [vmem:[#allocation8 + $0x2b0] sm:$0xff]  ;;  %p4171_p8 = pnand %p4170_p7, %p4164_p4 }
  0x52   :  { %3560 = vmatprep.subr.bf16.mxu1 %v3559_v21  ;;  %v416_v32 = vld [vmem:[#allocation8 + $0x220] sm:$0xff]  ;;  %v417_v33 = vld [vmem:[#allocation8 + $0x228] sm:$0xff]  ;;  %v3563_v34 = vpack.c.bf16 %v465_v31, %v464_v29  ;;  %v435_v39 = vld [vmem:[#allocation8 + $0x2b8] sm:$0xff] }
  0x53   :  { %v448_v35 = vld [vmem:[#allocation8 + $0x320] sm:$0xff]  ;;  %v449_v36 = vld [vmem:[#allocation8 + $0x328] sm:$0xff]  ;;  %v3533_v38 = vpack.c.bf16 %v417_v33, %v416_v32  ;;  %v466_v40 = vld [vmem:[#allocation8 + $0x3b0] sm:$0xff]  ;;  %v3535_v46 = vpack.c.bf16 %v435_v39, %v434_v37 }
  0x54   :  { %3530 = vmatpush3.bf16.msra.mxu0 %v3529_v25  ;;  %v467_v41 = vld [vmem:[#allocation8 + $0x3b8] sm:$0xff]  ;;  %v418_v42 = vld [vmem:[#allocation8 + $0x230] sm:$0xff]  ;;  %v3565_v45 = vpack.c.bf16 %v449_v36, %v448_v35  ;;  %v436_v48 = vld [vmem:[#allocation8 + $0x2c0] sm:$0xff] }
  0x55   :  { %3562 = vmatpush3.bf16.msra.mxu1 %v3561_v26  ;;  %3532 = vmatprep.subr.bf16.mxu0 %v3531_v30  ;;  %v419_v43 = vld [vmem:[#allocation8 + $0x238] sm:$0xff]  ;;  %v450_v44 = vld [vmem:[#allocation8 + $0x330] sm:$0xff]  ;;  %v437_v49 = vld [vmem:[#allocation8 + $0x2c8] sm:$0xff]  ;;  %v3567_v52 = vpack.c.bf16 %v467_v41, %v466_v40 }
  0x56   :  { %3564 = vmatprep.subr.bf16.mxu1 %v3563_v34  ;;  %v451_v47 = vld [vmem:[#allocation8 + $0x338] sm:$0xff]  ;;  %v81_v50 = vld [vmem:[#allocation2] ss:$4 sm:$0x3]  ;;  %v3537_v56 = vpack.c.bf16 %v419_v43, %v418_v42  ;;  %v469_v59 = vld [vmem:[#allocation8 + $0x3c8] sm:$0xff]  ;;  %v3539_v0 = vpack.c.bf16 %v437_v49, %v436_v48  ;;  %v103_v49 = vlaneseq }
  0x57   :  { %v92_v51 = vld [vmem:[#allocation2 + $0x2] ss:$4 sm:$0x3]  ;;  %v83_v53 = vsel %vm82_vm0, %v81_v50, 0.0  ;;  %v3569_v63 = vpack.c.bf16 %v451_v47, %v450_v44  ;;  %v421_v1 = vld [vmem:[#allocation8 + $0x248] sm:$0xff]  ;;  %v438_v7 = vld [vmem:[#allocation8 + $0x2d0] sm:$0xff] }
  0x58   :  { %v93_v54 = vsel %vm82_vm0, %v92_v51, 0.0  ;;  %v87_v55 = vld [vmem:[#allocation2 + $0x1] ss:$4 sm:$0x3]  ;;  %3534 = vmatpush3.bf16.msra.mxu0 %v3533_v38  ;;  %84 = vadd.xlane.f32.xlu0 %v83_v53  ;;  %v453_v4 = vld [vmem:[#allocation8 + $0x348] sm:$0xff]  ;;  %v439_v8 = vld [vmem:[#allocation8 + $0x2d8] sm:$0xff] }
  0x59   :  { %v468_v57 = vld [vmem:[#allocation8 + $0x3c0] sm:$0xff]  ;;  %94 = vadd.xlane.f32.xlu1 %v93_v54  ;;  %v88_v61 = vsel %vm82_vm0, %v87_v55, 0.0  ;;  %3566 = vmatpush3.bf16.msra.mxu1 %v3565_v45  ;;  %v470_v9 = vld [vmem:[#allocation8 + $0x3d0] sm:$0xff]  ;;  %v3543_v10 = vpack.c.bf16 %v439_v8, %v438_v7  ;;  %v471_v11 = vld [vmem:[#allocation8 + $0x3d8] sm:$0xff]  ;;  %v104_v50 = vshrl.u32 %v103_v49, 7 }
  0x5a   :  { %v97_v58 = vld [vmem:[#allocation2 + $0x3] ss:$4 sm:$0x3]  ;;  %3536 = vmatprep.subr.bf16.mxu0 %v3535_v46  ;;  %3568 = vmatprep.subr.bf16.mxu1 %v3567_v52  ;;  %v3571_v2 = vpack.c.bf16 %v469_v59, %v468_v57  ;;  %v422_v12 = vld [vmem:[#allocation8 + $0x250] sm:$0xff]  ;;  %v423_v13 = vld [vmem:[#allocation8 + $0x258] sm:$0xff]  ;;  %v3575_v14 = vpack.c.bf16 %v471_v11, %v470_v9 }
  0x5b   :  { %v420_v60 = vld [vmem:[#allocation8 + $0x240] sm:$0xff]  ;;  %v98_v62 = vsel %vm82_vm0, %v97_v58, 0.0  ;;  %v3545_v15 = vpack.c.bf16 %v423_v13, %v422_v12  ;;  %v454_v16 = vld [vmem:[#allocation8 + $0x350] sm:$0xff]  ;;  %v455_v17 = vld [vmem:[#allocation8 + $0x358] sm:$0xff]  ;;  %v4277_v51 = vsub.s32 1, %v104_v50  ;;  %v4279_v52 = vsub.s32 3, %v104_v50 }
  0x5c   :  { %v452_v3 = vld [vmem:[#allocation8 + $0x340] sm:$0xff]  ;;  %3538 = vmatpush3.bf16.msra.mxu0 %v3537_v56  ;;  %v3541_v5 = vpack.c.bf16 %v421_v1, %v420_v60  ;;  %89 = vadd.xlane.f32.xlu0 %v88_v61  ;;  %v3577_v18 = vpack.c.bf16 %v455_v17, %v454_v16  ;;  %v441_v20 = vld [vmem:[#allocation8 + $0x2e8] sm:$0xff]  ;;  %v442_v30 = vld [vmem:[#allocation8 + $0x2f0] sm:$0xff]  ;;  %v4281_v54 = vsub.s32 0, %v104_v50  ;;  %v4283_v55 = vsub.s32 2, %v104_v50 }
  0x5d   :  { %99 = vadd.xlane.f32.xlu1 %v98_v62  ;;  %3570 = vmatpush3.bf16.msra.mxu1 %v3569_v63  ;;  %v3573_v6 = vpack.c.bf16 %v453_v4, %v452_v3  ;;  %v440_v19 = vld [vmem:[#allocation8 + $0x2e0] sm:$0xff]  ;;  %v473_v23 = vld [vmem:[#allocation8 + $0x3e8] sm:$0xff]  ;;  %v443_v32 = vld [vmem:[#allocation8 + $0x2f8] sm:$0xff] }
  0x5e   :  { %3540 = vmatprep.subr.bf16.mxu0 %v3539_v0  ;;  %3572 = vmatprep.subr.bf16.mxu1 %v3571_v2  ;;  %v472_v21 = vld [vmem:[#allocation8 + $0x3e0] sm:$0xff]  ;;  %v3547_v22 = vpack.c.bf16 %v441_v20, %v440_v19  ;;  %v425_v25 = vld [vmem:[#allocation8 + $0x268] sm:$0xff]  ;;  %v474_v33 = vld [vmem:[#allocation8 + $0x3f0] sm:$0xff]  ;;  %v3551_v35 = vpack.c.bf16 %v443_v32, %v442_v30 }
  0x5f   :  { %v424_v24 = vld [vmem:[#allocation8 + $0x260] sm:$0xff]  ;;  %v3579_v26 = vpack.c.bf16 %v473_v23, %v472_v21  ;;  %v457_v29 = vld [vmem:[#allocation8 + $0x368] sm:$0xff]  ;;  %v475_v34 = vld [vmem:[#allocation8 + $0x3f8] sm:$0xff] }
  0x60   :  { %3542 = vmatpush3.bf16.msra.mxu0 %v3541_v5  ;;  %v3549_v27 = vpack.c.bf16 %v425_v25, %v424_v24  ;;  %v456_v28 = vld [vmem:[#allocation8 + $0x360] sm:$0xff]  ;;  %v3583_v36 = vpack.c.bf16 %v475_v34, %v474_v33  ;;  %v426_v37 = vld [vmem:[#allocation8 + $0x270] sm:$0xff]  ;;  %v427_v38 = vld [vmem:[#allocation8 + $0x278] sm:$0xff] }
  0x61   :  { %3574 = vmatpush3.bf16.msra.mxu1 %v3573_v6  ;;  %3544 = vmatprep.subr.bf16.mxu0 %v3543_v10  ;;  %v3581_v31 = vpack.c.bf16 %v457_v29, %v456_v28  ;;  %v458_v39 = vld [vmem:[#allocation8 + $0x370] sm:$0xff]  ;;  %v3553_v40 = vpack.c.bf16 %v427_v38, %v426_v37  ;;  %v459_v41 = vld [vmem:[#allocation8 + $0x378] sm:$0xff]  ;;  %v240_v43 = vld [vmem:[#allocation8 + $0x80] sm:$0xff] }
  0x62   :  { %3576 = vmatprep.subr.bf16.mxu1 %v3575_v14  ;;  %v3585_v42 = vpack.c.bf16 %v459_v41, %v458_v39  ;;  %v241_v44 = vld [vmem:[#allocation8 + $0x88] sm:$0xff]  ;;  %v272_v45 = vld [vmem:[#allocation8 + $0x180] sm:$0xff] }
  0x63   :  { %v3587_v46 = vpack.c.bf16 %v241_v44, %v240_v43  ;;  %v273_v47 = vld [vmem:[#allocation8 + $0x188] sm:$0xff]  ;;  %v4285_v56 = vld [vmem:[#allocation6] ss:$4 sm:$0xf] }
  0x64   :  { %3546 = vmatpush3.bf16.msra.mxu0 %v3545_v15  ;;  %v3619_v48 = vpack.c.bf16 %v273_v47, %v272_v45  ;;  %v289_v53 = vld [vmem:[#allocation6 + $0x10] ss:$4 sm:$0xf]  ;;  %v316_v57 = vld [vmem:[#allocation6 + $0x11] ss:$4 sm:$0xf]  ;;  %v110_v0 = vrot.slane %v4285_v56, %v4277_v51  ;;  %v118_v2 = vrot.slane %v4285_v56, %v4279_v52 }
  0x65   :  { %3578 = vmatpush3.bf16.msra.mxu1 %v3577_v18  ;;  %3548 = vmatprep.subr.bf16.mxu0 %v3547_v22  ;;  %v347_v58 = vld [vmem:[#allocation6 + $0x12] ss:$4 sm:$0xf]  ;;  %v298_v59 = vrot.slane %v289_v53, %v4277_v51  ;;  %v306_v60 = vrot.slane %v289_v53, %v4279_v52  ;;  %v378_v61 = vld [vmem:[#allocation6 + $0x13] ss:$4 sm:$0xf]  ;;  %v294_v62 = vrot.slane %v289_v53, %v4281_v54 }
  0x66   :  { %3580 = vmatprep.subr.bf16.mxu1 %v3579_v26  ;;  %v302_v63 = vrot.slane %v289_v53, %v4283_v55  ;;  %v4293_v1 = vld [vmem:[#allocation6 + $0x2] ss:$4 sm:$0xf]  ;;  %v325_v3 = vrot.slane %v316_v57, %v4277_v51  ;;  %v356_v4 = vrot.slane %v347_v58, %v4277_v51  ;;  %v333_v5 = vrot.slane %v316_v57, %v4279_v52  ;;  %v4301_v7 = vld [vmem:[#allocation6 + $0x1] ss:$4 sm:$0xf] }
  0x67   :  { %v364_v6 = vrot.slane %v347_v58, %v4279_v52  ;;  %v4303_v8 = vld [vmem:[#allocation6 + $0x3] ss:$4 sm:$0xf]  ;;  %v321_v9 = vrot.slane %v316_v57, %v4281_v54  ;;  %v352_v10 = vrot.slane %v347_v58, %v4281_v54  ;;  %v329_v11 = vrot.slane %v316_v57, %v4283_v55 }
  0x68   :  { %3550 = vmatpush3.bf16.msra.mxu0 %v3549_v27  ;;  %v360_v12 = vrot.slane %v347_v58, %v4283_v55  ;;  %v387_v15 = vrot.slane %v378_v61, %v4277_v51  ;;  %v395_v16 = vrot.slane %v378_v61, %v4279_v52  ;;  %v383_v17 = vrot.slane %v378_v61, %v4281_v54 }
  0x69   :  { %3582 = vmatpush3.bf16.msra.mxu1 %v3581_v31  ;;  %3552 = vmatprep.subr.bf16.mxu0 %v3551_v35  ;;  %v168_v18 = vrot.slane %v4293_v1, %v4277_v51  ;;  %v391_v19 = vrot.slane %v378_v61, %v4283_v55  ;;  %v137_v20 = vrot.slane %v4301_v7, %v4277_v51  ;;  %v225_v61 = vld [vmem:[#allocation8 + $0x8] sm:$0xff] }
  0x6a   :  { %3584 = vmatprep.subr.bf16.mxu1 %v3583_v36  ;;  %v199_v21 = vrot.slane %v4303_v8, %v4277_v51  ;;  %v176_v22 = vrot.slane %v4293_v1, %v4279_v52  ;;  %v145_v25 = vrot.slane %v4301_v7, %v4279_v52  ;;  %v207_v26 = vrot.slane %v4303_v8, %v4279_v52 }
  0x6c   :  { %3554 = vmatpush3.bf16.msra.mxu0 %v3553_v40 }
  0x6d   :  { %3586 = vmatpush3.bf16.msra.mxu1 %v3585_v42  ;;  %3588 = vmatprep.subr.bf16.mxu0 %v3587_v46 }
  0x6e   :  { %3620 = vmatprep.subr.bf16.mxu1 %v3619_v48 }
  0xe5   :  { %v4309_v13 = vpop.xlane.xlu0 %84 }
  0xe6   :  { %v4311_v14 = vpop.xlane.xlu1 %94  ;;  %v312_v23 = vmul.f32 %v298_v59, %v4309_v13  ;;  %v314_v27 = vmul.f32 %v306_v60, %v4309_v13  ;;  %v311_v29 = vmul.f32 %v294_v62, %v4309_v13  ;;  %v313_v33 = vmul.f32 %v302_v63, %v4309_v13  ;;  %v224_v60 = vld [vmem:[#allocation8] sm:$0xff] }
  0xe7   :  { %v370_v24 = vmul.f32 %v356_v4, %v4311_v14  ;;  %v372_v28 = vmul.f32 %v364_v6, %v4311_v14  ;;  %v369_v30 = vmul.f32 %v352_v10, %v4311_v14  ;;  %v371_v34 = vmul.f32 %v360_v12, %v4311_v14  ;;  %v257_v4 = vld [vmem:[#allocation8 + $0x108] sm:$0xff]  ;;  %v242_v12 = vld [vmem:[#allocation8 + $0x90] sm:$0xff] }
  0xe8   :  { %v124_v35 = vmul.f32 %v110_v0, %v4309_v13  ;;  %v182_v36 = vmul.f32 %v168_v18, %v4311_v14  ;;  %v126_v39 = vmul.f32 %v118_v2, %v4309_v13  ;;  %v184_v40 = vmul.f32 %v176_v22, %v4311_v14  ;;  %v275_v22 = vld [vmem:[#allocation8 + $0x198] sm:$0xff] }
  0xe9   :  { %v4335_v31 = vpop.xlane.xlu0 %89 }
  0xea   :  { %v4337_v32 = vpop.xlane.xlu1 %99  ;;  %v339_v37 = vmul.f32 %v325_v3, %v4335_v31  ;;  %v341_v38 = vmul.f32 %v333_v5, %v4335_v31  ;;  %v338_v43 = vmul.f32 %v321_v9, %v4335_v31  ;;  %v340_v44 = vmul.f32 %v329_v11, %v4335_v31  ;;  %v256_v3 = vld [vmem:[#allocation8 + $0x100] sm:$0xff] }
  0xeb   :  { %v401_v41 = vmul.f32 %v387_v15, %v4337_v32  ;;  %v403_v42 = vmul.f32 %v395_v16, %v4337_v32  ;;  %v400_v47 = vmul.f32 %v383_v17, %v4337_v32  ;;  %v151_v48 = vmul.f32 %v137_v20, %v4335_v31  ;;  %v274_v20 = vld [vmem:[#allocation8 + $0x190] sm:$0xff] }
  0xec   :  { %v343_v45 = vadd.f32 %v339_v37, %v312_v23  ;;  %v345_v46 = vadd.f32 %v341_v38, %v314_v27  ;;  %v342_v49 = vadd.f32 %v338_v43, %v311_v29  ;;  %v344_v50 = vadd.f32 %v340_v44, %v313_v33  ;;  %v226_v27 = vld [vmem:[#allocation8 + $0x10] sm:$0xff]  ;;  %v245_v38 = vld [vmem:[#allocation8 + $0xa8] sm:$0xff] }
  0xed   :  { %v402_v53 = vmul.f32 %v391_v19, %v4337_v32  ;;  %v153_v57 = vmul.f32 %v145_v25, %v4335_v31  ;;  %v155_v62 = vadd.f32 %v151_v48, %v124_v35  ;;  %v213_v63 = vmul.f32 %v199_v21, %v4337_v32  ;;  %v243_v19 = vld [vmem:[#allocation8 + $0x98] sm:$0xff]  ;;  %v258_v33 = vld [vmem:[#allocation8 + $0x110] sm:$0xff]  ;;  %v244_v35 = vld [vmem:[#allocation8 + $0xa0] sm:$0xff] }
  0xee   :  { %v374_v58 = vadd.f32 %v370_v24, %v343_v45  ;;  %v376_v59 = vadd.f32 %v372_v28, %v345_v46  ;;  %v373_v0 = vadd.f32 %v369_v30, %v342_v49  ;;  %v375_v2 = vadd.f32 %v371_v34, %v344_v50  ;;  %v227_v28 = vld [vmem:[#allocation8 + $0x18] sm:$0xff]  ;;  %v228_v45 = vld [vmem:[#allocation8 + $0x20] sm:$0xff]  ;;  %v229_v46 = vld [vmem:[#allocation8 + $0x28] sm:$0xff] }
  0xef   :  { %v157_v5 = vadd.f32 %v153_v57, %v126_v39  ;;  %v215_v6 = vmul.f32 %v207_v26, %v4337_v32  ;;  %v186_v11 = vadd.f32 %v182_v36, %v155_v62  ;;  %v3589_v17 = vpack.c.bf16 %v225_v61, %v224_v60  ;;  %v259_v34 = vld [vmem:[#allocation8 + $0x118] sm:$0xff]  ;;  %v276_v39 = vld [vmem:[#allocation8 + $0x1a0] sm:$0xff]  ;;  %v261_v50 = vld [vmem:[#allocation8 + $0x128] sm:$0xff] }
  0xf0   :  { %v405_v9 = vadd.f32 %v401_v41, %v374_v58  ;;  %v407_v10 = vadd.f32 %v403_v42, %v376_v59  ;;  %v404_v15 = vadd.f32 %v400_v47, %v373_v0  ;;  %v406_v16 = vadd.f32 %v402_v53, %v375_v2  ;;  %v260_v49 = vld [vmem:[#allocation8 + $0x120] sm:$0xff]  ;;  %v246_v53 = vld [vmem:[#allocation8 + $0xb0] sm:$0xff]  ;;  %v247_v57 = vld [vmem:[#allocation8 + $0xb8] sm:$0xff] }
  0xf1   :  { %v188_v18 = vadd.f32 %v184_v40, %v157_v5  ;;  %v3621_v24 = vpack.c.bf16 %v257_v4, %v256_v3  ;;  %v217_v25 = vadd.f32 %v213_v63, %v186_v11  ;;  %v3591_v36 = vpack.c.bf16 %v243_v19, %v242_v12  ;;  %v277_v40 = vld [vmem:[#allocation8 + $0x1a8] sm:$0xff]  ;;  %v278_v58 = vld [vmem:[#allocation8 + $0x1b0] sm:$0xff]  ;;  %v279_v59 = vld [vmem:[#allocation8 + $0x1b8] sm:$0xff] }
  0xf2   :  { %v409_v23 = vmax.f32 %v405_v9, 0.0  ;;  %v411_v21 = vmax.f32 %v407_v10, 0.0  ;;  %v408_v29 = vmax.f32 %v404_v15, 0.0  ;;  %v410_v30 = vmax.f32 %v406_v16, 0.0  ;;  %v230_v62 = vld [vmem:[#allocation8 + $0x30] sm:$0xff]  ;;  %v231_v63 = vld [vmem:[#allocation8 + $0x38] sm:$0xff] }
  0xf3   :  { %v219_v26 = vadd.f32 %v215_v6, %v188_v18  ;;  %v3623_v37 = vpack.c.bf16 %v275_v22, %v274_v20  ;;  %v221_v41 = vmax.f32 %v217_v25, 0.0  ;;  %v3593_v43 = vpack.c.bf16 %v227_v28, %v226_v27  ;;  %v262_v3 = vld [vmem:[#allocation8 + $0x130] sm:$0xff]  ;;  %v263_v4 = vld [vmem:[#allocation8 + $0x138] sm:$0xff]  ;;  %v248_v5 = vld [vmem:[#allocation8 + $0xc0] sm:$0xff] }
  0xf4   :  { %540 = vmatprep.mubr.f32.mxu0 %v409_v23  ;;  %610 = vmatprep.mubr.f32.mxu1 %v411_v21  ;;  %v3625_v44 = vpack.c.bf16 %v259_v34, %v258_v33  ;;  %v3595_v47 = vpack.c.bf16 %v245_v38, %v244_v35  ;;  %v3627_v48 = vpack.c.bf16 %v277_v40, %v276_v39  ;;  %v249_v6 = vld [vmem:[#allocation8 + $0xc8] sm:$0xff]  ;;  %v280_v9 = vld [vmem:[#allocation8 + $0x1c0] sm:$0xff]  ;;  %v282_v33 = vld [vmem:[#allocation8 + $0x1d0] sm:$0xff] }
  0xf5   :  { %541 = vmatmul.mubr.f32.vlgmr.msra.gmra.mrb[0].mxu0 %v408_v29  ;;  %611 = vmatmul.mubr.f32.vlgmr.msra.gmra.mrb[0].mxu1 %v410_v30  ;;  %v223_v42 = vmax.f32 %v219_v26, 0.0  ;;  %v3597_v60 = vpack.c.bf16 %v229_v46, %v228_v45  ;;  %v3629_v61 = vpack.c.bf16 %v261_v50, %v260_v49  ;;  %v3599_v0 = vpack.c.bf16 %v247_v57, %v246_v53  ;;  %v281_v10 = vld [vmem:[#allocation8 + $0x1c8] sm:$0xff]  ;;  %v4367_v18 = vld [vmem:[#allocation6 + $0x21] ss:$4 sm:$0xf]  ;;  %v250_v29 = vld [vmem:[#allocation8 + $0xd0] sm:$0xff] }
  0xf6   :  { %3590 = vmatpush3.bf16.msra.mxu0 %v3589_v17  ;;  %3622 = vmatpush3.bf16.msra.mxu1 %v3621_v24  ;;  %v3631_v2 = vpack.c.bf16 %v279_v59, %v278_v58  ;;  %v106_v11 = vrot.slane %v4285_v56, %v4281_v54  ;;  %v133_v12 = vrot.slane %v4301_v7, %v4281_v54  ;;  %v4365_v17 = vld [vmem:[#allocation6 + $0x20] ss:$4 sm:$0xf]  ;;  %v233_v23 = vld [vmem:[#allocation8 + $0x48] sm:$0xff]  ;;  %v234_v39 = vld [vmem:[#allocation8 + $0x50] sm:$0xff] }
  0xf7   :  { %680 = vmatprep.mubr.f32.mxu0 %v221_v41  ;;  %750 = vmatprep.mubr.f32.mxu1 %v223_v42  ;;  %v164_v15 = vrot.slane %v4293_v1, %v4281_v54  ;;  %v114_v16 = vrot.slane %v4285_v56, %v4283_v55  ;;  %v3601_v19 = vpack.c.bf16 %v231_v63, %v230_v62  ;;  %v232_v22 = vld [vmem:[#allocation8 + $0x40] sm:$0xff]  ;;  %v265_v28 = vld [vmem:[#allocation8 + $0x148] sm:$0xff]  ;;  %v251_v26 = vld [vmem:[#allocation8 + $0xd8] sm:$0xff] }
  0xf8   :  { %3592 = vmatprep.subr.bf16.mxu0 %v3591_v36  ;;  %3624 = vmatprep.subr.bf16.mxu1 %v3623_v37  ;;  %v3633_v20 = vpack.c.bf16 %v263_v4, %v262_v3  ;;  %v195_v21 = vrot.slane %v4303_v8, %v4281_v54  ;;  %v4371_v24 = vld [vmem:[#allocation6 + $0x22] ss:$4 sm:$0xf]  ;;  %v3603_v25 = vpack.c.bf16 %v249_v6, %v248_v5  ;;  %v253_v58 = vld [vmem:[#allocation8 + $0xe8] sm:$0xff] }
  0xf9   :  { %v3635_v27 = vpack.c.bf16 %v281_v10, %v280_v9  ;;  %v264_v56 = vld [vmem:[#allocation8 + $0x140] sm:$0xff]  ;;  %v141_v30 = vrot.slane %v4301_v7, %v4283_v55  ;;  %v283_v34 = vld [vmem:[#allocation8 + $0x1d8] sm:$0xff]  ;;  %v172_v35 = vrot.slane %v4293_v1, %v4283_v55  ;;  %v203_v36 = vrot.slane %v4303_v8, %v4283_v55  ;;  %v237_v63 = vld [vmem:[#allocation8 + $0x68] sm:$0xff] }
  0xfa   :  { %3594 = vmatpush3.bf16.msra.mxu0 %v3593_v43  ;;  %3626 = vmatpush3.bf16.msra.mxu1 %v3625_v44  ;;  %v766_v37 = vrot.slane %v4365_v17, %v4277_v51  ;;  %v793_v38 = vrot.slane %v4367_v18, %v4277_v51  ;;  %v824_v40 = vrot.slane %v4371_v24, %v4277_v51  ;;  %v4385_v7 = vld [vmem:[#allocation6 + $0x23] ss:$4 sm:$0xf]  ;;  %v269_v10 = vld [vmem:[#allocation8 + $0x168] sm:$0xff] }
  0xfb   :  { %3596 = vmatprep.subr.bf16.mxu0 %v3595_v47  ;;  %3628 = vmatprep.subr.bf16.mxu1 %v3627_v48  ;;  %v774_v41 = vrot.slane %v4365_v17, %v4279_v52  ;;  %v801_v42 = vrot.slane %v4367_v18, %v4279_v52  ;;  %v832_v43 = vrot.slane %v4371_v24, %v4279_v52  ;;  %v235_v46 = vld [vmem:[#allocation8 + $0x58] sm:$0xff]  ;;  %v266_v47 = vld [vmem:[#allocation8 + $0x150] sm:$0xff]  ;;  %v252_v57 = vld [vmem:[#allocation8 + $0xe0] sm:$0xff] }
  0xfc   :  { %v3605_v44 = vpack.c.bf16 %v233_v23, %v232_v22  ;;  %v3637_v45 = vpack.c.bf16 %v265_v28, %v264_v56  ;;  %v267_v48 = vld [vmem:[#allocation8 + $0x158] sm:$0xff]  ;;  %v150_v49 = vmul.f32 %v133_v12, %v4335_v31  ;;  %v3607_v50 = vpack.c.bf16 %v251_v26, %v250_v29  ;;  %v284_v59 = vld [vmem:[#allocation8 + $0x1e0] sm:$0xff]  ;;  %v254_v12 = vld [vmem:[#allocation8 + $0xf0] sm:$0xff] }
  0xfd   :  { %v3639_v53 = vpack.c.bf16 %v283_v34, %v282_v33  ;;  %v236_v62 = vld [vmem:[#allocation8 + $0x60] sm:$0xff]  ;;  %v855_v3 = vrot.slane %v4385_v7, %v4277_v51  ;;  %v863_v4 = vrot.slane %v4385_v7, %v4279_v52  ;;  %v3609_v5 = vpack.c.bf16 %v235_v46, %v234_v39  ;;  %v255_v22 = vld [vmem:[#allocation8 + $0xf8] sm:$0xff]  ;;  %v286_v23 = vld [vmem:[#allocation8 + $0x1f0] sm:$0xff] }
  0xfe   :  { %3598 = vmatpush3.bf16.msra.mxu0 %v3597_v60  ;;  %3630 = vmatpush3.bf16.msra.mxu1 %v3629_v61  ;;  %v152_v60 = vmul.f32 %v141_v30, %v4335_v31  ;;  %v285_v61 = vld [vmem:[#allocation8 + $0x1e8] sm:$0xff]  ;;  %v3641_v6 = vpack.c.bf16 %v267_v48, %v266_v47  ;;  %v268_v9 = vld [vmem:[#allocation8 + $0x160] sm:$0xff]  ;;  %v780_v56 = vmul.f32 %v766_v37, %v4309_v13  ;;  %v238_v37 = vld [vmem:[#allocation8 + $0x70] sm:$0xff] }
  0xff   :  { %3600 = vmatprep.subr.bf16.mxu0 %v3599_v0  ;;  %3632 = vmatprep.subr.bf16.mxu1 %v3631_v2  ;;  %v123_v0 = vmul.f32 %v106_v11, %v4309_v13  ;;  %v807_v2 = vmul.f32 %v793_v38, %v4335_v31  ;;  %v3611_v11 = vpack.c.bf16 %v253_v58, %v252_v57  ;;  %v270_v46 = vld [vmem:[#allocation8 + $0x170] sm:$0xff]  ;;  %v929_v57 = vld [vmem:[#allocation8 + $0x588] sm:$0xff] }
 0x100   :  { %v3643_v28 = vpack.c.bf16 %v285_v61, %v284_v59  ;;  %v782_v30 = vmul.f32 %v774_v41, %v4309_v13  ;;  %v3613_v26 = vpack.c.bf16 %v237_v63, %v236_v62  ;;  %v3645_v33 = vpack.c.bf16 %v269_v10, %v268_v9  ;;  %v913_v9 = vld [vmem:[#allocation8 + $0x508] sm:$0xff]  ;;  %v898_v10 = vld [vmem:[#allocation8 + $0x490] sm:$0xff] }
 0x101   :  { %v811_v34 = vadd.f32 %v807_v2, %v780_v56  ;;  %v3615_v38 = vpack.c.bf16 %v255_v22, %v254_v12  ;;  %v212_v41 = vmul.f32 %v195_v21, %v4337_v32  ;;  %v838_v1 = vmul.f32 %v824_v40, %v4311_v14  ;;  %v880_v2 = vld [vmem:[#allocation8 + $0x400] sm:$0xff]  ;;  %v899_v12 = vld [vmem:[#allocation8 + $0x498] sm:$0xff]  ;;  %v914_v56 = vld [vmem:[#allocation8 + $0x510] sm:$0xff] }
 0x102   :  { %3602 = vmatpush3.bf16.msra.mxu0 %v3601_v19  ;;  %3634 = vmatpush3.bf16.msra.mxu1 %v3633_v20  ;;  %v125_v19 = vmul.f32 %v114_v16, %v4309_v13  ;;  %v809_v20 = vmul.f32 %v801_v42, %v4335_v31  ;;  %v181_v16 = vmul.f32 %v164_v15, %v4311_v14  ;;  %v271_v15 = vld [vmem:[#allocation8 + $0x178] sm:$0xff] }
 0x103   :  { %3604 = vmatprep.subr.bf16.mxu0 %v3603_v25  ;;  %3636 = vmatprep.subr.bf16.mxu1 %v3635_v27  ;;  %v287_v25 = vld [vmem:[#allocation8 + $0x1f8] sm:$0xff]  ;;  %v154_v27 = vadd.f32 %v150_v49, %v123_v0  ;;  %v183_v42 = vmul.f32 %v172_v35, %v4311_v14  ;;  %v214_v48 = vmul.f32 %v203_v36, %v4337_v32  ;;  %v896_v49 = vld [vmem:[#allocation8 + $0x480] sm:$0xff] }
 0x104   :  { %v156_v29 = vadd.f32 %v152_v60, %v125_v19  ;;  %v3647_v39 = vpack.c.bf16 %v287_v25, %v286_v23  ;;  %v840_v21 = vmul.f32 %v832_v43, %v4311_v14  ;;  %v842_v58 = vadd.f32 %v838_v1, %v811_v34  ;;  %v881_v43 = vld [vmem:[#allocation8 + $0x408] sm:$0xff]  ;;  %v930_v19 = vld [vmem:[#allocation8 + $0x590] sm:$0xff] }
 0x105   :  { %v185_v47 = vadd.f32 %v181_v16, %v154_v27  ;;  %v869_v40 = vmul.f32 %v855_v3, %v4337_v32  ;;  %v871_v60 = vmul.f32 %v863_v4, %v4337_v32  ;;  %v3649_v8 = vpack.c.bf16 %v271_v15, %v270_v46  ;;  %v931_v4 = vld [vmem:[#allocation8 + $0x598] sm:$0xff]  ;;  %v882_v25 = vld [vmem:[#allocation8 + $0x410] sm:$0xff]  ;;  %v901_v16 = vld [vmem:[#allocation8 + $0x4a8] sm:$0xff] }
 0x106   :  { %3606 = vmatpush3.bf16.msra.mxu0 %v3605_v44  ;;  %3638 = vmatpush3.bf16.msra.mxu1 %v3637_v45  ;;  %v813_v44 = vadd.f32 %v809_v20, %v782_v30  ;;  %v239_v45 = vld [vmem:[#allocation8 + $0x78] sm:$0xff]  ;;  %v187_v35 = vadd.f32 %v183_v42, %v156_v29  ;;  %v3653_v20 = vpack.c.bf16 %v881_v43, %v880_v2  ;;  %v885_v46 = vld [vmem:[#allocation8 + $0x428] sm:$0xff]  ;;  %v902_v15 = vld [vmem:[#allocation8 + $0x4b0] sm:$0xff] }
 0x107   :  { %3608 = vmatprep.subr.bf16.mxu0 %v3607_v50  ;;  %3640 = vmatprep.subr.bf16.mxu1 %v3639_v53  ;;  %v897_v50 = vld [vmem:[#allocation8 + $0x488] sm:$0xff]  ;;  %v928_v53 = vld [vmem:[#allocation8 + $0x580] sm:$0xff]  ;;  %v3617_v61 = vpack.c.bf16 %v239_v45, %v238_v37  ;;  %v216_v62 = vadd.f32 %v212_v41, %v185_v47  ;;  %v883_v27 = vld [vmem:[#allocation8 + $0x418] sm:$0xff]  ;;  %v3655_v29 = vpack.c.bf16 %v899_v12, %v898_v10 }
 0x108   :  { %v844_v59 = vadd.f32 %v840_v21, %v813_v44  ;;  %v3651_v36 = vpack.c.bf16 %v897_v50, %v896_v49  ;;  %v218_v63 = vadd.f32 %v214_v48, %v187_v35  ;;  %v3683_v0 = vpack.c.bf16 %v929_v57, %v928_v53  ;;  %v884_v45 = vld [vmem:[#allocation8 + $0x420] sm:$0xff]  ;;  %v917_v1 = vld [vmem:[#allocation8 + $0x528] sm:$0xff]  ;;  %v903_v35 = vld [vmem:[#allocation8 + $0x4b8] sm:$0xff] }
 0x109   :  { %v3687_v30 = vpack.c.bf16 %v931_v4, %v930_v19  ;;  %v3657_v42 = vpack.c.bf16 %v883_v27, %v882_v25  ;;  %v916_v47 = vld [vmem:[#allocation8 + $0x520] sm:$0xff]  ;;  %v934_v48 = vld [vmem:[#allocation8 + $0x5b0] sm:$0xff]  ;;  %v935_v49 = vld [vmem:[#allocation8 + $0x5b8] sm:$0xff]  ;;  %v3661_v50 = vpack.c.bf16 %v885_v46, %v884_v45  ;;  %v3663_v53 = vpack.c.bf16 %v903_v35, %v902_v15 }
 0x10a   :  { %3610 = vmatpush3.bf16.msra.mxu0 %v3609_v5  ;;  %3642 = vmatpush3.bf16.msra.mxu1 %v3641_v6  ;;  %v873_v5 = vadd.f32 %v869_v40, %v842_v58  ;;  %v912_v6 = vld [vmem:[#allocation8 + $0x500] sm:$0xff]  ;;  %v875_v3 = vadd.f32 %v871_v60, %v844_v59  ;;  %v222_v22 = vmax.f32 %v218_v63, 0.0  ;;  %v3693_v21 = vpack.c.bf16 %v917_v1, %v916_v47  ;;  %v886_v57 = vld [vmem:[#allocation8 + $0x430] sm:$0xff]  ;;  %v887_v58 = vld [vmem:[#allocation8 + $0x438] sm:$0xff] }
 0x10b   :  { %3612 = vmatprep.subr.bf16.mxu0 %v3611_v11  ;;  %3644 = vmatprep.subr.bf16.mxu1 %v3643_v28  ;;  %v220_v11 = vmax.f32 %v216_v62, 0.0  ;;  %v3685_v23 = vpack.c.bf16 %v913_v9, %v912_v6  ;;  %v918_v40 = vld [vmem:[#allocation8 + $0x530] sm:$0xff]  ;;  %v3695_v59 = vpack.c.bf16 %v935_v49, %v934_v48  ;;  %v919_v60 = vld [vmem:[#allocation8 + $0x538] sm:$0xff]  ;;  %v937_v62 = vld [vmem:[#allocation8 + $0x5c8] sm:$0xff]  ;;  %v3665_v63 = vpack.c.bf16 %v887_v58, %v886_v57 }
 0x10c   :  { %v877_v28 = vmax.f32 %v873_v5, 0.0  ;;  %v879_v34 = vmax.f32 %v875_v3, 0.0  ;;  %v4430_v2 = vld [vmem:[#allocation6 + $0x31] ss:$4 sm:$0xf]  ;;  %v3697_v43 = vpack.c.bf16 %v919_v60, %v918_v40  ;;  %v888_v6 = vld [vmem:[#allocation8 + $0x440] sm:$0xff]  ;;  %v789_v3 = vrot.slane %v4367_v18, %v4281_v54 }
 0x10d   :  { %v889_v9 = vld [vmem:[#allocation8 + $0x448] sm:$0xff]  ;;  %v920_v10 = vld [vmem:[#allocation8 + $0x540] sm:$0xff]  ;;  %v906_v4 = vld [vmem:[#allocation8 + $0x4d0] sm:$0xff]  ;;  %v820_v27 = vrot.slane %v4371_v24, %v4281_v54  ;;  %v859_v49 = vrot.slane %v4385_v7, %v4283_v55 }
 0x10e   :  { %3614 = vmatpush3.bf16.msra.mxu0 %v3613_v26  ;;  %3646 = vmatpush3.bf16.msra.mxu1 %v3645_v33  ;;  %v915_v26 = vld [vmem:[#allocation8 + $0x518] sm:$0xff]  ;;  %v900_v33 = vld [vmem:[#allocation8 + $0x4a0] sm:$0xff]  ;;  %v921_v19 = vld [vmem:[#allocation8 + $0x548] sm:$0xff] }
 0x10f   :  { %3616 = vmatprep.subr.bf16.mxu0 %v3615_v38  ;;  %3648 = vmatprep.subr.bf16.mxu1 %v3647_v39  ;;  %v932_v38 = vld [vmem:[#allocation8 + $0x5a0] sm:$0xff]  ;;  %v933_v39 = vld [vmem:[#allocation8 + $0x5a8] sm:$0xff]  ;;  %v3689_v44 = vpack.c.bf16 %v915_v26, %v914_v56  ;;  %v3659_v37 = vpack.c.bf16 %v901_v16, %v900_v33  ;;  %v939_v25 = vld [vmem:[#allocation8 + $0x5d8] sm:$0xff]  ;;  %v770_v56 = vrot.slane %v4365_v17, %v4283_v55 }
 0x110   :  { %v3691_v41 = vpack.c.bf16 %v933_v39, %v932_v38  ;;  %v3669_v26 = vpack.c.bf16 %v889_v9, %v888_v6  ;;  %v890_v33 = vld [vmem:[#allocation8 + $0x450] sm:$0xff]  ;;  %v891_v39 = vld [vmem:[#allocation8 + $0x458] sm:$0xff]  ;;  %v908_v46 = vld [vmem:[#allocation8 + $0x4e0] sm:$0xff] }
 0x111   :  { %v909_v47 = vld [vmem:[#allocation8 + $0x4e8] sm:$0xff]  ;;  %v940_v15 = vld [vmem:[#allocation8 + $0x5e0] sm:$0xff]  ;;  %v3673_v57 = vpack.c.bf16 %v891_v39, %v890_v33  ;;  %v926_v33 = vld [vmem:[#allocation8 + $0x570] sm:$0xff] }
 0x112   :  { %3618 = vmatpush3.bf16.msra.mxu0 %v3617_v61  ;;  %3650 = vmatpush3.bf16.msra.mxu1 %v3649_v8  ;;  %v904_v61 = vld [vmem:[#allocation8 + $0x4c0] sm:$0xff]  ;;  %v905_v8 = vld [vmem:[#allocation8 + $0x4c8] sm:$0xff] }
 0x113   :  { %3652 = vmatprep.subr.bf16.mxu0 %v3651_v36  ;;  %3684 = vmatprep.subr.bf16.mxu1 %v3683_v0  ;;  %v936_v36 = vld [vmem:[#allocation8 + $0x5c0] sm:$0xff]  ;;  %v4428_v0 = vld [vmem:[#allocation6 + $0x30] ss:$4 sm:$0xf]  ;;  %v3667_v5 = vpack.c.bf16 %v905_v8, %v904_v61  ;;  %v781_v61 = vmul.f32 %v770_v56, %v4309_v13 }
 0x114   :  { %v3699_v12 = vpack.c.bf16 %v937_v62, %v936_v36  ;;  %v1103_v16 = vrot.slane %v4428_v0, %v4279_v52  ;;  %v941_v35 = vld [vmem:[#allocation8 + $0x5e8] sm:$0xff]  ;;  %v892_v40 = vld [vmem:[#allocation8 + $0x460] sm:$0xff]  ;;  %v910_v62 = vld [vmem:[#allocation8 + $0x4f0] sm:$0xff] }
 0x115   :  { %681 = vmatmul.mubr.f32.vlgmr.msra.gmra.mrb[2].mxu0 %v220_v11  ;;  %751 = vmatmul.mubr.f32.vlgmr.msra.gmra.mrb[2].mxu1 %v222_v22  ;;  %v762_v11 = vrot.slane %v4365_v17, %v4281_v54  ;;  %v797_v22 = vrot.slane %v4367_v18, %v4283_v55  ;;  %v828_v18 = vrot.slane %v4371_v24, %v4283_v55  ;;  %v924_v60 = vld [vmem:[#allocation8 + $0x560] sm:$0xff]  ;;  %v925_v36 = vld [vmem:[#allocation8 + $0x568] sm:$0xff] }
 0x116   :  { %3654 = vmatpush3.bf16.msra.mxu0 %v3653_v20  ;;  %1008 = vmatprep.mubr.f32.mxu0 %v877_v28  ;;  %v907_v20 = vld [vmem:[#allocation8 + $0x4d8] sm:$0xff]  ;;  %v1095_v28 = vrot.slane %v4428_v0, %v4277_v51  ;;  %v1130_v17 = vrot.slane %v4430_v2, %v4279_v52  ;;  %v851_v24 = vrot.slane %v4385_v7, %v4281_v54 }
 0x117   :  { %3686 = vmatpush3.bf16.msra.mxu1 %v3685_v23  ;;  %1078 = vmatprep.mubr.f32.mxu1 %v879_v34  ;;  %v938_v23 = vld [vmem:[#allocation8 + $0x5d0] sm:$0xff]  ;;  %v3701_v34 = vpack.c.bf16 %v921_v19, %v920_v10  ;;  %v3671_v38 = vpack.c.bf16 %v907_v20, %v906_v4  ;;  %v779_v48 = vmul.f32 %v762_v11, %v4309_v13  ;;  %v943_v4 = vld [vmem:[#allocation8 + $0x5f8] sm:$0xff] }
 0x118   :  { %3656 = vmatprep.subr.bf16.mxu0 %v3655_v29  ;;  %3688 = vmatprep.subr.bf16.mxu1 %v3687_v30  ;;  %v1122_v29 = vrot.slane %v4430_v2, %v4277_v51  ;;  %v4446_v30 = vld [vmem:[#allocation6 + $0x32] ss:$4 sm:$0xf]  ;;  %v3703_v45 = vpack.c.bf16 %v939_v25, %v938_v23  ;;  %v1138_v8 = vmul.f32 %v1130_v17, %v4335_v31 }
 0x119   :  { %v1153_v1 = vrot.slane %v4446_v30, %v4277_v51  ;;  %v3675_v7 = vpack.c.bf16 %v909_v47, %v908_v46  ;;  %v3707_v6 = vpack.c.bf16 %v941_v35, %v940_v15  ;;  %v942_v19 = vld [vmem:[#allocation8 + $0x5f0] sm:$0xff]  ;;  %v837_v20 = vmul.f32 %v820_v27, %v4311_v14  ;;  %v1258_v46 = vld [vmem:[#allocation8 + $0x788] sm:$0xff] }
 0x11a   :  { %3658 = vmatpush3.bf16.msra.mxu0 %v3657_v42  ;;  %v922_v42 = vld [vmem:[#allocation8 + $0x550] sm:$0xff]  ;;  %v3709_v23 = vpack.c.bf16 %v925_v36, %v924_v60  ;;  %v839_v56 = vmul.f32 %v828_v18, %v4311_v14  ;;  %v868_v17 = vmul.f32 %v851_v24, %v4337_v32 }
 0x11b   :  { %3690 = vmatpush3.bf16.msra.mxu1 %v3689_v44  ;;  %3660 = vmatprep.subr.bf16.mxu0 %v3659_v37  ;;  %v923_v44 = vld [vmem:[#allocation8 + $0x558] sm:$0xff]  ;;  %v806_v37 = vmul.f32 %v789_v3, %v4335_v31  ;;  %v1111_v3 = vmul.f32 %v1103_v16, %v4309_v13  ;;  %v1167_v27 = vmul.f32 %v1153_v1, %v4311_v14 }
 0x11c   :  { %3692 = vmatprep.subr.bf16.mxu1 %v3691_v41  ;;  %v808_v41 = vmul.f32 %v797_v22, %v4335_v31  ;;  %v3705_v58 = vpack.c.bf16 %v923_v44, %v922_v42  ;;  %v870_v42 = vmul.f32 %v859_v49, %v4337_v32  ;;  %v1225_v44 = vld [vmem:[#allocation8 + $0x680] sm:$0xff] }
 0x11d   :  { %v1209_v49 = vld [vmem:[#allocation8 + $0x600] sm:$0xff] }
 0x11e   :  { %3662 = vmatpush3.bf16.msra.mxu0 %v3661_v50  ;;  %v1136_v50 = vmul.f32 %v1122_v29, %v4335_v31  ;;  %v812_v9 = vadd.f32 %v808_v41, %v781_v61  ;;  %v894_v29 = vld [vmem:[#allocation8 + $0x470] sm:$0xff] }
 0x11f   :  { %3694 = vmatpush3.bf16.msra.mxu1 %v3693_v21  ;;  %3664 = vmatprep.subr.bf16.mxu0 %v3663_v53  ;;  %v4464_v21 = vld [vmem:[#allocation6 + $0x33] ss:$4 sm:$0xf]  ;;  %v1161_v53 = vrot.slane %v4446_v30, %v4279_v52 }
 0x120   :  { %3696 = vmatprep.subr.bf16.mxu1 %v3695_v59  ;;  %v893_v59 = vld [vmem:[#allocation8 + $0x468] sm:$0xff]  ;;  %v1184_v10 = vrot.slane %v4464_v21, %v4277_v51  ;;  %v1192_v22 = vrot.slane %v4464_v21, %v4279_v52  ;;  %v843_v39 = vadd.f32 %v839_v56, %v812_v9  ;;  %v1227_v61 = vld [vmem:[#allocation8 + $0x690] sm:$0xff]  ;;  %v1212_v9 = vld [vmem:[#allocation8 + $0x618] sm:$0xff] }
 0x121   :  { %v1169_v18 = vmul.f32 %v1161_v53, %v4311_v14 }
 0x122   :  { %3666 = vmatpush3.bf16.msra.mxu0 %v3665_v63  ;;  %v911_v63 = vld [vmem:[#allocation8 + $0x4f8] sm:$0xff]  ;;  %v1198_v41 = vmul.f32 %v1184_v10, %v4337_v32  ;;  %v1200_v1 = vmul.f32 %v1192_v22, %v4337_v32  ;;  %v1243_v10 = vld [vmem:[#allocation8 + $0x710] sm:$0xff] }
 0x123   :  { %3698 = vmatpush3.bf16.msra.mxu1 %v3697_v43  ;;  %3668 = vmatprep.subr.bf16.mxu0 %v3667_v5  ;;  %v810_v43 = vadd.f32 %v806_v37, %v779_v48  ;;  %v1109_v5 = vmul.f32 %v1095_v28, %v4309_v13  ;;  %v3679_v25 = vpack.c.bf16 %v911_v63, %v910_v62  ;;  %v1226_v37 = vld [vmem:[#allocation8 + $0x688] sm:$0xff]  ;;  %v1259_v62 = vld [vmem:[#allocation8 + $0x790] sm:$0xff]  ;;  %v1260_v63 = vld [vmem:[#allocation8 + $0x798] sm:$0xff] }
 0x124   :  { %3700 = vmatprep.subr.bf16.mxu1 %v3699_v12  ;;  %v3677_v12 = vpack.c.bf16 %v893_v59, %v892_v40  ;;  %v1142_v28 = vadd.f32 %v1138_v8, %v1111_v3  ;;  %v1241_v40 = vld [vmem:[#allocation8 + $0x700] sm:$0xff]  ;;  %v1242_v59 = vld [vmem:[#allocation8 + $0x708] sm:$0xff]  ;;  %v1228_v8 = vld [vmem:[#allocation8 + $0x698] sm:$0xff]  ;;  %v3751_v22 = vpack.c.bf16 %v1260_v63, %v1259_v62 }
 0x125   :  { %v1140_v11 = vadd.f32 %v1136_v50, %v1109_v5  ;;  %v841_v16 = vadd.f32 %v837_v20, %v810_v43  ;;  %v3715_v50 = vpack.c.bf16 %v1226_v37, %v1225_v44  ;;  %v3749_v5 = vpack.c.bf16 %v1242_v59, %v1241_v40  ;;  %v1230_v20 = vld [vmem:[#allocation8 + $0x6a8] sm:$0xff]  ;;  %v1264_v44 = vld [vmem:[#allocation8 + $0x7b8] sm:$0xff]  ;;  %v1217_v59 = vld [vmem:[#allocation8 + $0x640] sm:$0xff] }
 0x126   :  { %3670 = vmatpush3.bf16.msra.mxu0 %v3669_v26  ;;  %v895_v26 = vld [vmem:[#allocation8 + $0x478] sm:$0xff]  ;;  %v1173_v24 = vadd.f32 %v1169_v18, %v1142_v28  ;;  %v1235_v62 = vld [vmem:[#allocation8 + $0x6d0] sm:$0xff] }
 0x127   :  { %3702 = vmatpush3.bf16.msra.mxu1 %v3701_v34  ;;  %3672 = vmatprep.subr.bf16.mxu0 %v3671_v38  ;;  %v3711_v34 = vpack.c.bf16 %v943_v4, %v942_v19  ;;  %v927_v38 = vld [vmem:[#allocation8 + $0x578] sm:$0xff]  ;;  %v1171_v47 = vadd.f32 %v1167_v27, %v1140_v11  ;;  %v3681_v15 = vpack.c.bf16 %v895_v26, %v894_v29  ;;  %v1229_v4 = vld [vmem:[#allocation8 + $0x6a0] sm:$0xff] }
 0x128   :  { %3704 = vmatprep.subr.bf16.mxu1 %v3703_v45  ;;  %v1257_v45 = vld [vmem:[#allocation8 + $0x780] sm:$0xff]  ;;  %v3713_v35 = vpack.c.bf16 %v927_v38, %v926_v33  ;;  %v872_v48 = vadd.f32 %v868_v17, %v841_v16  ;;  %v1204_v36 = vadd.f32 %v1200_v1, %v1173_v24  ;;  %v1244_v19 = vld [vmem:[#allocation8 + $0x718] sm:$0xff]  ;;  %v3723_v26 = vpack.c.bf16 %v1230_v20, %v1229_v4  ;;  %v1214_v16 = vld [vmem:[#allocation8 + $0x628] sm:$0xff] }
 0x129   :  { %v3747_v53 = vpack.c.bf16 %v1258_v46, %v1257_v45  ;;  %v1202_v60 = vadd.f32 %v1198_v41, %v1171_v47  ;;  %v3753_v29 = vpack.c.bf16 %v1244_v19, %v1243_v10  ;;  %v1213_v33 = vld [vmem:[#allocation8 + $0x620] sm:$0xff]  ;;  %v1231_v38 = vld [vmem:[#allocation8 + $0x6b0] sm:$0xff]  ;;  %v1216_v47 = vld [vmem:[#allocation8 + $0x638] sm:$0xff]  ;;  %v1149_v10 = vrot.slane %v4446_v30, %v4281_v54 }
 0x12a   :  { %3674 = vmatpush3.bf16.msra.mxu0 %v3673_v57  ;;  %v1210_v57 = vld [vmem:[#allocation8 + $0x608] sm:$0xff]  ;;  %v876_v43 = vmax.f32 %v872_v48, 0.0  ;;  %v1208_v56 = vmax.f32 %v1204_v36, 0.0  ;;  %v1245_v17 = vld [vmem:[#allocation8 + $0x720] sm:$0xff]  ;;  %v3725_v37 = vpack.c.bf16 %v1214_v16, %v1213_v33  ;;  %v1215_v46 = vld [vmem:[#allocation8 + $0x630] sm:$0xff] }
 0x12b   :  { %3706 = vmatpush3.bf16.msra.mxu1 %v3705_v58  ;;  %3676 = vmatprep.subr.bf16.mxu0 %v3675_v7  ;;  %v874_v58 = vadd.f32 %v870_v42, %v843_v39  ;;  %v3717_v7 = vpack.c.bf16 %v1210_v57, %v1209_v49  ;;  %v1206_v11 = vmax.f32 %v1202_v60, 0.0  ;;  %v1232_v39 = vld [vmem:[#allocation8 + $0x6b8] sm:$0xff]  ;;  %v1263_v42 = vld [vmem:[#allocation8 + $0x7b0] sm:$0xff]  ;;  %v1233_v1 = vld [vmem:[#allocation8 + $0x6c0] sm:$0xff]  ;;  %v3729_v49 = vpack.c.bf16 %v1216_v47, %v1215_v46 }
 0x12c   :  { %3708 = vmatprep.subr.bf16.mxu1 %v3707_v6  ;;  %v1211_v6 = vld [vmem:[#allocation8 + $0x610] sm:$0xff]  ;;  %v3727_v45 = vpack.c.bf16 %v1232_v39, %v1231_v38  ;;  %v1248_v24 = vld [vmem:[#allocation8 + $0x738] sm:$0xff]  ;;  %v1265_v48 = vld [vmem:[#allocation8 + $0x7c0] sm:$0xff] }
 0x12d   :  { %v878_v3 = vmax.f32 %v874_v58, 0.0  ;;  %v3721_v28 = vpack.c.bf16 %v1212_v9, %v1211_v6  ;;  %v1247_v41 = vld [vmem:[#allocation8 + $0x730] sm:$0xff]  ;;  %v4484_v57 = vld [vmem:[#allocation6 + $0x40] ss:$4 sm:$0xf]  ;;  %v1218_v60 = vld [vmem:[#allocation8 + $0x648] sm:$0xff] }
 0x12e   :  { %3678 = vmatpush3.bf16.msra.mxu0 %v3677_v12  ;;  %v3719_v12 = vpack.c.bf16 %v1228_v8, %v1227_v61  ;;  %v4486_v58 = vld [vmem:[#allocation6 + $0x41] ss:$4 sm:$0xf]  ;;  %v1118_v8 = vrot.slane %v4430_v2, %v4281_v54  ;;  %v1250_v36 = vld [vmem:[#allocation8 + $0x748] sm:$0xff]  ;;  %v1267_v6 = vld [vmem:[#allocation8 + $0x7d0] sm:$0xff]  ;;  %v3733_v4 = vpack.c.bf16 %v1218_v60, %v1217_v59 }
 0x12f   :  { %3710 = vmatpush3.bf16.msra.mxu1 %v3709_v23  ;;  %3680 = vmatprep.subr.bf16.mxu0 %v3679_v25  ;;  %v1261_v23 = vld [vmem:[#allocation8 + $0x7a0] sm:$0xff]  ;;  %v1262_v25 = vld [vmem:[#allocation8 + $0x7a8] sm:$0xff]  ;;  %v1236_v63 = vld [vmem:[#allocation8 + $0x6d8] sm:$0xff]  ;;  %v1451_v19 = vrot.slane %v4486_v58, %v4277_v51 }
 0x130   :  { %3712 = vmatprep.subr.bf16.mxu1 %v3711_v34  ;;  %v3755_v27 = vpack.c.bf16 %v1262_v25, %v1261_v23  ;;  %v1246_v34 = vld [vmem:[#allocation8 + $0x728] sm:$0xff]  ;;  %v1249_v61 = vld [vmem:[#allocation8 + $0x740] sm:$0xff]  ;;  %v1268_v9 = vld [vmem:[#allocation8 + $0x7d8] sm:$0xff]  ;;  %v3735_v25 = vpack.c.bf16 %v1236_v63, %v1235_v62  ;;  %v1166_v63 = vmul.f32 %v1149_v10, %v4311_v14 }
 0x131   :  { %v3757_v18 = vpack.c.bf16 %v1246_v34, %v1245_v17  ;;  %v1219_v20 = vld [vmem:[#allocation8 + $0x650] sm:$0xff]  ;;  %v3765_v23 = vpack.c.bf16 %v1250_v36, %v1249_v61  ;;  %v3767_v33 = vpack.c.bf16 %v1268_v9, %v1267_v6  ;;  %v1238_v16 = vld [vmem:[#allocation8 + $0x6e8] sm:$0xff]  ;;  %v1180_v17 = vrot.slane %v4464_v21, %v4281_v54  ;;  %v1269_v38 = vld [vmem:[#allocation8 + $0x7e0] sm:$0xff] }
 0x132   :  { %3682 = vmatpush3.bf16.msra.mxu0 %v3681_v15  ;;  %v3759_v15 = vpack.c.bf16 %v1264_v44, %v1263_v42  ;;  %v1188_v34 = vrot.slane %v4464_v21, %v4283_v55  ;;  %v1270_v39 = vld [vmem:[#allocation8 + $0x7e8] sm:$0xff]  ;;  %v1465_v44 = vmul.f32 %v1451_v19, %v4335_v31  ;;  %v1253_v21 = vld [vmem:[#allocation8 + $0x760] sm:$0xff]  ;;  %v1271_v36 = vld [vmem:[#allocation8 + $0x7f0] sm:$0xff] }
 0x133   :  { %3714 = vmatpush3.bf16.msra.mxu1 %v3713_v35  ;;  %3716 = vmatprep.subr.bf16.mxu0 %v3715_v50  ;;  %v1234_v35 = vld [vmem:[#allocation8 + $0x6c8] sm:$0xff]  ;;  %v3771_v59 = vpack.c.bf16 %v1270_v39, %v1269_v38  ;;  %v1272_v62 = vld [vmem:[#allocation8 + $0x7f8] sm:$0xff]  ;;  %v1223_v19 = vld [vmem:[#allocation8 + $0x670] sm:$0xff] }
 0x134   :  { %3748 = vmatprep.subr.bf16.mxu1 %v3747_v53  ;;  %v1266_v50 = vld [vmem:[#allocation8 + $0x7c8] sm:$0xff]  ;;  %v3761_v53 = vpack.c.bf16 %v1248_v24, %v1247_v41  ;;  %v3731_v40 = vpack.c.bf16 %v1234_v35, %v1233_v1  ;;  %v1221_v41 = vld [vmem:[#allocation8 + $0x660] sm:$0xff] }
 0x135   :  { %1009 = vmatmul.mubr.f32.vlgmr.msra.gmra.mrb[4].mxu0 %v876_v43  ;;  %v1091_v43 = vrot.slane %v4428_v0, %v4281_v54 }
 0x136   :  { %1079 = vmatmul.mubr.f32.vlgmr.msra.gmra.mrb[4].mxu1 %v878_v3  ;;  %3718 = vmatpush3.bf16.msra.mxu0 %v3717_v7  ;;  %v3763_v7 = vpack.c.bf16 %v1266_v50, %v1265_v48  ;;  %v1099_v3 = vrot.slane %v4428_v0, %v4283_v55  ;;  %v1459_v0 = vrot.slane %v4486_v58, %v4279_v52  ;;  %v1254_v48 = vld [vmem:[#allocation8 + $0x768] sm:$0xff]  ;;  %v1239_v50 = vld [vmem:[#allocation8 + $0x6f0] sm:$0xff] }
 0x137   :  { %1337 = vmatprep.mubr.f32.mxu0 %v1206_v11  ;;  %3750 = vmatpush3.bf16.msra.mxu1 %v3749_v5  ;;  %v1126_v5 = vrot.slane %v4430_v2, %v4283_v55  ;;  %v1157_v2 = vrot.slane %v4446_v30, %v4283_v55  ;;  %v4504_v11 = vld [vmem:[#allocation6 + $0x42] ss:$4 sm:$0xf]  ;;  %v1108_v42 = vmul.f32 %v1091_v43, %v4309_v13 }
 0x138   :  { %1407 = vmatprep.mubr.f32.mxu1 %v1208_v56  ;;  %3720 = vmatprep.subr.bf16.mxu0 %v3719_v12  ;;  %v1424_v12 = vrot.slane %v4484_v57, %v4277_v51  ;;  %v1220_v56 = vld [vmem:[#allocation8 + $0x658] sm:$0xff]  ;;  %v1237_v30 = vld [vmem:[#allocation8 + $0x6e0] sm:$0xff]  ;;  %v1110_v24 = vmul.f32 %v1099_v3, %v4309_v13  ;;  %v1467_v1 = vmul.f32 %v1459_v0, %v4335_v31 }
 0x139   :  { %3752 = vmatprep.subr.bf16.mxu1 %v3751_v22  ;;  %v1432_v22 = vrot.slane %v4484_v57, %v4279_v52  ;;  %v3737_v46 = vpack.c.bf16 %v1220_v56, %v1219_v20  ;;  %v3739_v35 = vpack.c.bf16 %v1238_v16, %v1237_v30  ;;  %v3773_v6 = vpack.c.bf16 %v1254_v48, %v1253_v21  ;;  %v1255_v20 = vld [vmem:[#allocation8 + $0x770] sm:$0xff]  ;;  %v1587_v30 = vld [vmem:[#allocation8 + $0x988] sm:$0xff] }
 0x13a   :  { %3722 = vmatpush3.bf16.msra.mxu0 %v3721_v28  ;;  %v1251_v28 = vld [vmem:[#allocation8 + $0x750] sm:$0xff]  ;;  %v1168_v3 = vmul.f32 %v1157_v2, %v4311_v14  ;;  %v1197_v0 = vmul.f32 %v1180_v17, %v4337_v32 }
 0x13b   :  { %3754 = vmatpush3.bf16.msra.mxu1 %v3753_v29  ;;  %3724 = vmatprep.subr.bf16.mxu0 %v3723_v26  ;;  %v1252_v29 = vld [vmem:[#allocation8 + $0x758] sm:$0xff]  ;;  %v1135_v26 = vmul.f32 %v1118_v8, %v4335_v31  ;;  %v1440_v8 = vmul.f32 %v1432_v22, %v4309_v13 }
 0x13c   :  { %3756 = vmatprep.subr.bf16.mxu1 %v3755_v27  ;;  %v1137_v27 = vmul.f32 %v1126_v5, %v4335_v31  ;;  %v3769_v47 = vpack.c.bf16 %v1252_v29, %v1251_v28  ;;  %v1199_v28 = vmul.f32 %v1188_v34, %v4337_v32  ;;  %v1554_v29 = vld [vmem:[#allocation8 + $0x880] sm:$0xff] }
 0x13d   :  { %v1538_v34 = vld [vmem:[#allocation8 + $0x800] sm:$0xff] }
 0x13e   :  { %3726 = vmatpush3.bf16.msra.mxu0 %v3725_v37  ;;  %v1482_v37 = vrot.slane %v4504_v11, %v4277_v51  ;;  %v1141_v60 = vadd.f32 %v1137_v27, %v1110_v24  ;;  %v1556_v24 = vld [vmem:[#allocation8 + $0x890] sm:$0xff] }
 0x13f   :  { %3758 = vmatpush3.bf16.msra.mxu1 %v3757_v18  ;;  %3728 = vmatprep.subr.bf16.mxu0 %v3727_v45  ;;  %v4520_v18 = vld [vmem:[#allocation6 + $0x43] ss:$4 sm:$0xf]  ;;  %v1490_v45 = vrot.slane %v4504_v11, %v4279_v52 }
 0x140   :  { %3760 = vmatprep.subr.bf16.mxu1 %v3759_v15  ;;  %v1222_v15 = vld [vmem:[#allocation8 + $0x668] sm:$0xff]  ;;  %v1513_v61 = vrot.slane %v4520_v18, %v4277_v51  ;;  %v1521_v5 = vrot.slane %v4520_v18, %v4279_v52  ;;  %v1496_v10 = vmul.f32 %v1482_v37, %v4311_v14  ;;  %v1172_v56 = vadd.f32 %v1168_v3, %v1141_v60  ;;  %v1541_v60 = vld [vmem:[#allocation8 + $0x818] sm:$0xff] }
 0x141   :  { %v1498_v2 = vmul.f32 %v1490_v45, %v4311_v14 }
 0x142   :  { %3730 = vmatpush3.bf16.msra.mxu0 %v3729_v49  ;;  %v1240_v49 = vld [vmem:[#allocation8 + $0x6f8] sm:$0xff]  ;;  %v1527_v27 = vmul.f32 %v1513_v61, %v4337_v32  ;;  %v1529_v39 = vmul.f32 %v1521_v5, %v4337_v32  ;;  %v1572_v61 = vld [vmem:[#allocation8 + $0x910] sm:$0xff] }
 0x143   :  { %3762 = vmatpush3.bf16.msra.mxu1 %v3761_v53  ;;  %3732 = vmatprep.subr.bf16.mxu0 %v3731_v40  ;;  %v1139_v53 = vadd.f32 %v1135_v26, %v1108_v42  ;;  %v1438_v40 = vmul.f32 %v1424_v12, %v4309_v13  ;;  %v3743_v9 = vpack.c.bf16 %v1240_v49, %v1239_v50  ;;  %v1555_v26 = vld [vmem:[#allocation8 + $0x888] sm:$0xff]  ;;  %v1588_v50 = vld [vmem:[#allocation8 + $0x990] sm:$0xff]  ;;  %v1589_v49 = vld [vmem:[#allocation8 + $0x998] sm:$0xff] }
 0x144   :  { %3764 = vmatprep.subr.bf16.mxu1 %v3763_v7  ;;  %v3741_v7 = vpack.c.bf16 %v1222_v15, %v1221_v41  ;;  %v1471_v12 = vadd.f32 %v1467_v1, %v1440_v8  ;;  %v3779_v37 = vpack.c.bf16 %v1555_v26, %v1554_v29  ;;  %v1570_v41 = vld [vmem:[#allocation8 + $0x900] sm:$0xff]  ;;  %v1571_v15 = vld [vmem:[#allocation8 + $0x908] sm:$0xff]  ;;  %v1557_v1 = vld [vmem:[#allocation8 + $0x898] sm:$0xff]  ;;  %v3815_v5 = vpack.c.bf16 %v1589_v49, %v1588_v50 }
 0x145   :  { %v1469_v43 = vadd.f32 %v1465_v44, %v1438_v40  ;;  %v1170_v22 = vadd.f32 %v1166_v63, %v1139_v53  ;;  %v3813_v40 = vpack.c.bf16 %v1571_v15, %v1570_v41  ;;  %v1559_v63 = vld [vmem:[#allocation8 + $0x8a8] sm:$0xff]  ;;  %v1593_v29 = vld [vmem:[#allocation8 + $0x9b8] sm:$0xff]  ;;  %v1546_v15 = vld [vmem:[#allocation8 + $0x840] sm:$0xff] }
 0x146   :  { %3734 = vmatpush3.bf16.msra.mxu0 %v3733_v4  ;;  %v1224_v4 = vld [vmem:[#allocation8 + $0x678] sm:$0xff]  ;;  %v1502_v17 = vadd.f32 %v1498_v2, %v1471_v12  ;;  %v1564_v50 = vld [vmem:[#allocation8 + $0x8d0] sm:$0xff] }
 0x147   :  { %3766 = vmatpush3.bf16.msra.mxu1 %v3765_v23  ;;  %3736 = vmatprep.subr.bf16.mxu0 %v3735_v25  ;;  %v3775_v23 = vpack.c.bf16 %v1272_v62, %v1271_v36  ;;  %v1256_v25 = vld [vmem:[#allocation8 + $0x778] sm:$0xff]  ;;  %v1500_v16 = vadd.f32 %v1496_v10, %v1469_v43  ;;  %v3745_v38 = vpack.c.bf16 %v1224_v4, %v1223_v19  ;;  %v1558_v62 = vld [vmem:[#allocation8 + $0x8a0] sm:$0xff] }
 0x148   :  { %3768 = vmatprep.subr.bf16.mxu1 %v3767_v33  ;;  %v1586_v33 = vld [vmem:[#allocation8 + $0x980] sm:$0xff]  ;;  %v3777_v42 = vpack.c.bf16 %v1256_v25, %v1255_v20  ;;  %v1201_v44 = vadd.f32 %v1197_v0, %v1170_v22  ;;  %v1533_v48 = vadd.f32 %v1529_v39, %v1502_v17  ;;  %v1573_v36 = vld [vmem:[#allocation8 + $0x918] sm:$0xff]  ;;  %v3787_v4 = vpack.c.bf16 %v1559_v63, %v1558_v62  ;;  %v1543_v22 = vld [vmem:[#allocation8 + $0x828] sm:$0xff] }
 0x149   :  { %v3811_v45 = vpack.c.bf16 %v1587_v30, %v1586_v33  ;;  %v1531_v21 = vadd.f32 %v1527_v27, %v1500_v16  ;;  %v3817_v19 = vpack.c.bf16 %v1573_v36, %v1572_v61  ;;  %v1542_v20 = vld [vmem:[#allocation8 + $0x820] sm:$0xff]  ;;  %v1560_v25 = vld [vmem:[#allocation8 + $0x8b0] sm:$0xff]  ;;  %v1545_v16 = vld [vmem:[#allocation8 + $0x838] sm:$0xff]  ;;  %v1478_v61 = vrot.slane %v4504_v11, %v4281_v54 }
 0x14a   :  { %3738 = vmatpush3.bf16.msra.mxu0 %v3737_v46  ;;  %v1539_v46 = vld [vmem:[#allocation8 + $0x808] sm:$0xff]  ;;  %v1205_v53 = vmax.f32 %v1201_v44, 0.0  ;;  %v1537_v3 = vmax.f32 %v1533_v48, 0.0  ;;  %v1574_v0 = vld [vmem:[#allocation8 + $0x920] sm:$0xff]  ;;  %v3789_v26 = vpack.c.bf16 %v1543_v22, %v1542_v20  ;;  %v1544_v30 = vld [vmem:[#allocation8 + $0x830] sm:$0xff] }
 0x14b   :  { %3770 = vmatpush3.bf16.msra.mxu1 %v3769_v47  ;;  %3740 = vmatprep.subr.bf16.mxu0 %v3739_v35  ;;  %v1203_v47 = vadd.f32 %v1199_v28, %v1172_v56  ;;  %v3781_v35 = vpack.c.bf16 %v1539_v46, %v1538_v34  ;;  %v1535_v43 = vmax.f32 %v1531_v21, 0.0  ;;  %v1561_v56 = vld [vmem:[#allocation8 + $0x8b8] sm:$0xff]  ;;  %v1592_v28 = vld [vmem:[#allocation8 + $0x9b0] sm:$0xff]  ;;  %v1562_v39 = vld [vmem:[#allocation8 + $0x8c0] sm:$0xff]  ;;  %v3793_v34 = vpack.c.bf16 %v1545_v16, %v1544_v30 }
 0x14c   :  { %3772 = vmatprep.subr.bf16.mxu1 %v3771_v59  ;;  %v1540_v59 = vld [vmem:[#allocation8 + $0x810] sm:$0xff]  ;;  %v3791_v33 = vpack.c.bf16 %v1561_v56, %v1560_v25  ;;  %v1577_v17 = vld [vmem:[#allocation8 + $0x938] sm:$0xff]  ;;  %v1594_v44 = vld [vmem:[#allocation8 + $0x9c0] sm:$0xff] }
 0x14d   :  { %v1207_v8 = vmax.f32 %v1203_v47, 0.0  ;;  %v3785_v12 = vpack.c.bf16 %v1541_v60, %v1540_v59  ;;  %v1576_v27 = vld [vmem:[#allocation8 + $0x930] sm:$0xff]  ;;  %v1547_v21 = vld [vmem:[#allocation8 + $0x848] sm:$0xff]  ;;  %v1565_v49 = vld [vmem:[#allocation8 + $0x8d8] sm:$0xff] }
 0x14e   :  { %3742 = vmatpush3.bf16.msra.mxu0 %v3741_v7  ;;  %v3783_v7 = vpack.c.bf16 %v1557_v1, %v1556_v24  ;;  %v4540_v46 = vld [vmem:[#allocation6 + $0x50] ss:$4 sm:$0xf]  ;;  %v4542_v47 = vld [vmem:[#allocation6 + $0x51] ss:$4 sm:$0xf]  ;;  %v1447_v1 = vrot.slane %v4486_v58, %v4281_v54  ;;  %v3797_v62 = vpack.c.bf16 %v1547_v21, %v1546_v15 }
 0x14f   :  { %3774 = vmatpush3.bf16.msra.mxu1 %v3773_v6  ;;  %3744 = vmatprep.subr.bf16.mxu0 %v3743_v9  ;;  %v1590_v6 = vld [vmem:[#allocation8 + $0x9a0] sm:$0xff]  ;;  %v1591_v9 = vld [vmem:[#allocation8 + $0x9a8] sm:$0xff]  ;;  %v1596_v59 = vld [vmem:[#allocation8 + $0x9d0] sm:$0xff]  ;;  %v1780_v36 = vrot.slane %v4542_v47, %v4277_v51 }
 0x150   :  { %3776 = vmatprep.subr.bf16.mxu1 %v3775_v23  ;;  %v3819_v10 = vpack.c.bf16 %v1591_v9, %v1590_v6  ;;  %v1575_v23 = vld [vmem:[#allocation8 + $0x928] sm:$0xff]  ;;  %v1578_v24 = vld [vmem:[#allocation8 + $0x940] sm:$0xff]  ;;  %v1597_v60 = vld [vmem:[#allocation8 + $0x9d8] sm:$0xff]  ;;  %v3799_v9 = vpack.c.bf16 %v1565_v49, %v1564_v50  ;;  %v1495_v49 = vmul.f32 %v1478_v61, %v4311_v14 }
 0x151   :  { %v3821_v2 = vpack.c.bf16 %v1575_v23, %v1574_v0  ;;  %v1579_v48 = vld [vmem:[#allocation8 + $0x948] sm:$0xff]  ;;  %v1548_v63 = vld [vmem:[#allocation8 + $0x850] sm:$0xff]  ;;  %v3831_v20 = vpack.c.bf16 %v1597_v60, %v1596_v59  ;;  %v1509_v0 = vrot.slane %v4520_v18, %v4281_v54  ;;  %v1517_v23 = vrot.slane %v4520_v18, %v4283_v55  ;;  %v1598_v25 = vld [vmem:[#allocation8 + $0x9e0] sm:$0xff] }
 0x152   :  { %3746 = vmatpush3.bf16.msra.mxu0 %v3745_v38  ;;  %v3823_v38 = vpack.c.bf16 %v1593_v29, %v1592_v28  ;;  %v3829_v6 = vpack.c.bf16 %v1579_v48, %v1578_v24  ;;  %v1567_v22 = vld [vmem:[#allocation8 + $0x8e8] sm:$0xff]  ;;  %v1794_v29 = vmul.f32 %v1780_v36, %v4335_v31  ;;  %v1582_v18 = vld [vmem:[#allocation8 + $0x960] sm:$0xff]  ;;  %v1600_v48 = vld [vmem:[#allocation8 + $0x9f0] sm:$0xff] }
 0x153   :  { %3778 = vmatpush3.bf16.msra.mxu1 %v3777_v42  ;;  %3780 = vmatprep.subr.bf16.mxu0 %v3779_v37  ;;  %v1563_v42 = vld [vmem:[#allocation8 + $0x8c8] sm:$0xff]  ;;  %v1601_v50 = vld [vmem:[#allocation8 + $0x9f8] sm:$0xff]  ;;  %v1552_v36 = vld [vmem:[#allocation8 + $0x870] sm:$0xff] }
 0x154   :  { %3812 = vmatprep.subr.bf16.mxu1 %v3811_v45  ;;  %v1595_v37 = vld [vmem:[#allocation8 + $0x9c8] sm:$0xff]  ;;  %v3825_v45 = vpack.c.bf16 %v1577_v17, %v1576_v27  ;;  %v3795_v41 = vpack.c.bf16 %v1563_v42, %v1562_v39  ;;  %v1550_v27 = vld [vmem:[#allocation8 + $0x860] sm:$0xff] }
 0x155   :  { %1338 = vmatmul.mubr.f32.vlgmr.msra.gmra.mrb[6].mxu0 %v1205_v53  ;;  %v1420_v53 = vrot.slane %v4484_v57, %v4281_v54  ;;  %v1599_v56 = vld [vmem:[#allocation8 + $0x9e8] sm:$0xff] }
 0x156   :  { %1408 = vmatmul.mubr.f32.vlgmr.msra.gmra.mrb[6].mxu1 %v1207_v8  ;;  %3782 = vmatpush3.bf16.msra.mxu0 %v3781_v35  ;;  %v3827_v35 = vpack.c.bf16 %v1595_v37, %v1594_v44  ;;  %v1428_v8 = vrot.slane %v4484_v57, %v4283_v55  ;;  %v1788_v57 = vrot.slane %v4542_v47, %v4279_v52  ;;  %v1583_v44 = vld [vmem:[#allocation8 + $0x968] sm:$0xff]  ;;  %v1568_v37 = vld [vmem:[#allocation8 + $0x8f0] sm:$0xff] }
 0x157   :  { %1666 = vmatprep.mubr.f32.mxu0 %v1535_v43  ;;  %3814 = vmatpush3.bf16.msra.mxu1 %v3813_v40  ;;  %v1455_v40 = vrot.slane %v4486_v58, %v4283_v55  ;;  %v1486_v58 = vrot.slane %v4504_v11, %v4283_v55  ;;  %v4560_v43 = vld [vmem:[#allocation6 + $0x52] ss:$4 sm:$0xf]  ;;  %v1566_v11 = vld [vmem:[#allocation8 + $0x8e0] sm:$0xff]  ;;  %v1437_v28 = vmul.f32 %v1420_v53, %v4309_v13 }
 0x158   :  { %1736 = vmatprep.mubr.f32.mxu1 %v1537_v3  ;;  %3784 = vmatprep.subr.bf16.mxu0 %v3783_v7  ;;  %v1753_v7 = vrot.slane %v4540_v46, %v4277_v51  ;;  %v1549_v3 = vld [vmem:[#allocation8 + $0x858] sm:$0xff]  ;;  %v1439_v17 = vmul.f32 %v1428_v8, %v4309_v13  ;;  %v1796_v39 = vmul.f32 %v1788_v57, %v4335_v31 }
 0x159   :  { %3816 = vmatprep.subr.bf16.mxu1 %v3815_v5  ;;  %v1761_v5 = vrot.slane %v4540_v46, %v4279_v52  ;;  %v3801_v30 = vpack.c.bf16 %v1549_v3, %v1548_v63  ;;  %v3803_v42 = vpack.c.bf16 %v1567_v22, %v1566_v11  ;;  %v3835_v15 = vpack.c.bf16 %v1599_v56, %v1598_v25  ;;  %v1584_v63 = vld [vmem:[#allocation8 + $0x970] sm:$0xff]  ;;  %v1916_v11 = vld [vmem:[#allocation8 + $0xb88] sm:$0xff] }
 0x15a   :  { %3786 = vmatpush3.bf16.msra.mxu0 %v3785_v12  ;;  %v1580_v12 = vld [vmem:[#allocation8 + $0x950] sm:$0xff]  ;;  %v3837_v59 = vpack.c.bf16 %v1583_v44, %v1582_v18  ;;  %v1497_v8 = vmul.f32 %v1486_v58, %v4311_v14  ;;  %v1526_v57 = vmul.f32 %v1509_v0, %v4337_v32 }
 0x15b   :  { %3818 = vmatpush3.bf16.msra.mxu1 %v3817_v19  ;;  %3788 = vmatprep.subr.bf16.mxu0 %v3787_v4  ;;  %v1581_v19 = vld [vmem:[#allocation8 + $0x958] sm:$0xff]  ;;  %v1464_v4 = vmul.f32 %v1447_v1, %v4335_v31  ;;  %v1769_v1 = vmul.f32 %v1761_v5, %v4309_v13 }
 0x15c   :  { %3820 = vmatprep.subr.bf16.mxu1 %v3819_v10  ;;  %v1466_v10 = vmul.f32 %v1455_v40, %v4335_v31  ;;  %v3833_v16 = vpack.c.bf16 %v1581_v19, %v1580_v12  ;;  %v1528_v12 = vmul.f32 %v1517_v23, %v4337_v32  ;;  %v1883_v19 = vld [vmem:[#allocation8 + $0xa80] sm:$0xff] }
 0x15d   :  { %v1867_v23 = vld [vmem:[#allocation8 + $0xa00] sm:$0xff] }
 0x15e   :  { %3790 = vmatpush3.bf16.msra.mxu0 %v3789_v26  ;;  %v1811_v26 = vrot.slane %v4560_v43, %v4277_v51  ;;  %v1470_v21 = vadd.f32 %v1466_v10, %v1439_v17  ;;  %v1885_v17 = vld [vmem:[#allocation8 + $0xa90] sm:$0xff] }
 0x15f   :  { %3822 = vmatpush3.bf16.msra.mxu1 %v3821_v2  ;;  %3792 = vmatprep.subr.bf16.mxu0 %v3791_v33  ;;  %v4576_v2 = vld [vmem:[#allocation6 + $0x53] ss:$4 sm:$0xf]  ;;  %v1819_v33 = vrot.slane %v4560_v43, %v4279_v52 }
 0x160   :  { %3824 = vmatprep.subr.bf16.mxu1 %v3823_v38  ;;  %v1551_v38 = vld [vmem:[#allocation8 + $0x868] sm:$0xff]  ;;  %v1842_v24 = vrot.slane %v4576_v2, %v4277_v51  ;;  %v1850_v40 = vrot.slane %v4576_v2, %v4279_v52  ;;  %v1825_v61 = vmul.f32 %v1811_v26, %v4311_v14  ;;  %v1501_v3 = vadd.f32 %v1497_v8, %v1470_v21  ;;  %v1870_v21 = vld [vmem:[#allocation8 + $0xa18] sm:$0xff] }
 0x161   :  { %v1827_v58 = vmul.f32 %v1819_v33, %v4311_v14 }
 0x162   :  { %3794 = vmatpush3.bf16.msra.mxu0 %v3793_v34  ;;  %v1569_v34 = vld [vmem:[#allocation8 + $0x8f8] sm:$0xff]  ;;  %v1856_v10 = vmul.f32 %v1842_v24, %v4337_v32  ;;  %v1858_v56 = vmul.f32 %v1850_v40, %v4337_v32  ;;  %v1901_v24 = vld [vmem:[#allocation8 + $0xb10] sm:$0xff] }
 0x163   :  { %3826 = vmatpush3.bf16.msra.mxu1 %v3825_v45  ;;  %3796 = vmatprep.subr.bf16.mxu0 %v3795_v41  ;;  %v1468_v45 = vadd.f32 %v1464_v4, %v1437_v28  ;;  %v1767_v41 = vmul.f32 %v1753_v7, %v4309_v13  ;;  %v3807_v60 = vpack.c.bf16 %v1569_v34, %v1568_v37  ;;  %v1884_v4 = vld [vmem:[#allocation8 + $0xa88] sm:$0xff]  ;;  %v1917_v37 = vld [vmem:[#allocation8 + $0xb90] sm:$0xff]  ;;  %v1918_v34 = vld [vmem:[#allocation8 + $0xb98] sm:$0xff] }
 0x164   :  { %3828 = vmatprep.subr.bf16.mxu1 %v3827_v35  ;;  %v3805_v35 = vpack.c.bf16 %v1551_v38, %v1550_v27  ;;  %v1800_v7 = vadd.f32 %v1796_v39, %v1769_v1  ;;  %v3843_v26 = vpack.c.bf16 %v1884_v4, %v1883_v19  ;;  %v1899_v27 = vld [vmem:[#allocation8 + $0xb00] sm:$0xff]  ;;  %v1900_v38 = vld [vmem:[#allocation8 + $0xb08] sm:$0xff]  ;;  %v1886_v39 = vld [vmem:[#allocation8 + $0xa98] sm:$0xff]  ;;  %v3879_v40 = vpack.c.bf16 %v1918_v34, %v1917_v37 }
 0x165   :  { %v1798_v53 = vadd.f32 %v1794_v29, %v1767_v41  ;;  %v1499_v5 = vadd.f32 %v1495_v49, %v1468_v45  ;;  %v3877_v41 = vpack.c.bf16 %v1900_v38, %v1899_v27  ;;  %v1888_v49 = vld [vmem:[#allocation8 + $0xaa8] sm:$0xff]  ;;  %v1922_v19 = vld [vmem:[#allocation8 + $0xbb8] sm:$0xff]  ;;  %v1875_v38 = vld [vmem:[#allocation8 + $0xa40] sm:$0xff] }
 0x166   :  { %3798 = vmatpush3.bf16.msra.mxu0 %v3797_v62  ;;  %v1553_v62 = vld [vmem:[#allocation8 + $0x878] sm:$0xff]  ;;  %v1831_v0 = vadd.f32 %v1827_v58, %v1800_v7  ;;  %v1893_v37 = vld [vmem:[#allocation8 + $0xad0] sm:$0xff] }
 0x167   :  { %3830 = vmatpush3.bf16.msra.mxu1 %v3829_v6  ;;  %3800 = vmatprep.subr.bf16.mxu0 %v3799_v9  ;;  %v3839_v6 = vpack.c.bf16 %v1601_v50, %v1600_v48  ;;  %v1585_v9 = vld [vmem:[#allocation8 + $0x978] sm:$0xff]  ;;  %v1829_v22 = vadd.f32 %v1825_v61, %v1798_v53  ;;  %v3809_v25 = vpack.c.bf16 %v1553_v62, %v1552_v36  ;;  %v1887_v50 = vld [vmem:[#allocation8 + $0xaa0] sm:$0xff] }
 0x168   :  { %3832 = vmatprep.subr.bf16.mxu1 %v3831_v20  ;;  %v1915_v20 = vld [vmem:[#allocation8 + $0xb80] sm:$0xff]  ;;  %v3841_v28 = vpack.c.bf16 %v1585_v9, %v1584_v63  ;;  %v1530_v29 = vadd.f32 %v1526_v57, %v1499_v5  ;;  %v1862_v44 = vadd.f32 %v1858_v56, %v1831_v0  ;;  %v1902_v48 = vld [vmem:[#allocation8 + $0xb18] sm:$0xff]  ;;  %v3851_v62 = vpack.c.bf16 %v1888_v49, %v1887_v50  ;;  %v1872_v5 = vld [vmem:[#allocation8 + $0xa28] sm:$0xff] }
 0x169   :  { %v3875_v33 = vpack.c.bf16 %v1916_v11, %v1915_v20  ;;  %v1860_v18 = vadd.f32 %v1856_v10, %v1829_v22  ;;  %v3881_v36 = vpack.c.bf16 %v1902_v48, %v1901_v24  ;;  %v1871_v63 = vld [vmem:[#allocation8 + $0xa20] sm:$0xff]  ;;  %v1889_v9 = vld [vmem:[#allocation8 + $0xab0] sm:$0xff]  ;;  %v1874_v22 = vld [vmem:[#allocation8 + $0xa38] sm:$0xff]  ;;  %v1807_v24 = vrot.slane %v4560_v43, %v4281_v54 }
 0x16a   :  { %3802 = vmatpush3.bf16.msra.mxu0 %v3801_v30  ;;  %v1868_v30 = vld [vmem:[#allocation8 + $0xa08] sm:$0xff]  ;;  %v1534_v45 = vmax.f32 %v1530_v29, 0.0  ;;  %v1866_v8 = vmax.f32 %v1862_v44, 0.0  ;;  %v1903_v57 = vld [vmem:[#allocation8 + $0xb20] sm:$0xff]  ;;  %v3853_v4 = vpack.c.bf16 %v1872_v5, %v1871_v63  ;;  %v1873_v11 = vld [vmem:[#allocation8 + $0xa30] sm:$0xff] }
 0x16b   :  { %3834 = vmatpush3.bf16.msra.mxu1 %v3833_v16  ;;  %3804 = vmatprep.subr.bf16.mxu0 %v3803_v42  ;;  %v1532_v16 = vadd.f32 %v1528_v12, %v1501_v3  ;;  %v3845_v42 = vpack.c.bf16 %v1868_v30, %v1867_v23  ;;  %v1864_v53 = vmax.f32 %v1860_v18, 0.0  ;;  %v1890_v3 = vld [vmem:[#allocation8 + $0xab8] sm:$0xff]  ;;  %v1921_v12 = vld [vmem:[#allocation8 + $0xbb0] sm:$0xff]  ;;  %v1891_v56 = vld [vmem:[#allocation8 + $0xac0] sm:$0xff]  ;;  %v3857_v23 = vpack.c.bf16 %v1874_v22, %v1873_v11 }
 0x16c   :  { %3836 = vmatprep.subr.bf16.mxu1 %v3835_v15  ;;  %v1869_v15 = vld [vmem:[#allocation8 + $0xa10] sm:$0xff]  ;;  %v3855_v20 = vpack.c.bf16 %v1890_v3, %v1889_v9  ;;  %v1906_v0 = vld [vmem:[#allocation8 + $0xb38] sm:$0xff]  ;;  %v1923_v29 = vld [vmem:[#allocation8 + $0xbc0] sm:$0xff] }
 0x16d   :  { %v1536_v1 = vmax.f32 %v1532_v16, 0.0  ;;  %v3849_v7 = vpack.c.bf16 %v1870_v21, %v1869_v15  ;;  %v1905_v10 = vld [vmem:[#allocation8 + $0xb30] sm:$0xff]  ;;  %v4596_v30 = vld [vmem:[#allocation6 + $0x60] ss:$4 sm:$0xf]  ;;  %v1876_v18 = vld [vmem:[#allocation8 + $0xa48] sm:$0xff] }
 0x16e   :  { %3806 = vmatpush3.bf16.msra.mxu0 %v3805_v35  ;;  %v3847_v35 = vpack.c.bf16 %v1886_v39, %v1885_v17  ;;  %v4598_v16 = vld [vmem:[#allocation6 + $0x61] ss:$4 sm:$0xf]  ;;  %v1776_v39 = vrot.slane %v4542_v47, %v4281_v54  ;;  %v1908_v44 = vld [vmem:[#allocation8 + $0xb48] sm:$0xff]  ;;  %v1925_v15 = vld [vmem:[#allocation8 + $0xbd0] sm:$0xff]  ;;  %v3861_v50 = vpack.c.bf16 %v1876_v18, %v1875_v38 }
 0x16f   :  { %3838 = vmatpush3.bf16.msra.mxu1 %v3837_v59  ;;  %3808 = vmatprep.subr.bf16.mxu0 %v3807_v60  ;;  %v1919_v59 = vld [vmem:[#allocation8 + $0xba0] sm:$0xff]  ;;  %v1920_v60 = vld [vmem:[#allocation8 + $0xba8] sm:$0xff]  ;;  %v1894_v34 = vld [vmem:[#allocation8 + $0xad8] sm:$0xff]  ;;  %v2109_v48 = vrot.slane %v4598_v16, %v4277_v51 }
 0x170   :  { %3840 = vmatprep.subr.bf16.mxu1 %v3839_v6  ;;  %v3883_v61 = vpack.c.bf16 %v1920_v60, %v1919_v59  ;;  %v1904_v6 = vld [vmem:[#allocation8 + $0xb28] sm:$0xff]  ;;  %v1907_v17 = vld [vmem:[#allocation8 + $0xb40] sm:$0xff]  ;;  %v1926_v21 = vld [vmem:[#allocation8 + $0xbd8] sm:$0xff]  ;;  %v3863_v60 = vpack.c.bf16 %v1894_v34, %v1893_v37  ;;  %v1824_v34 = vmul.f32 %v1807_v24, %v4311_v14 }
 0x171   :  { %v3885_v58 = vpack.c.bf16 %v1904_v6, %v1903_v57  ;;  %v1877_v49 = vld [vmem:[#allocation8 + $0xa50] sm:$0xff]  ;;  %v3893_v59 = vpack.c.bf16 %v1908_v44, %v1907_v17  ;;  %v3895_v63 = vpack.c.bf16 %v1926_v21, %v1925_v15  ;;  %v1896_v5 = vld [vmem:[#allocation8 + $0xae8] sm:$0xff]  ;;  %v1838_v57 = vrot.slane %v4576_v2, %v4281_v54  ;;  %v1927_v9 = vld [vmem:[#allocation8 + $0xbe0] sm:$0xff] }
 0x172   :  { %3810 = vmatpush3.bf16.msra.mxu0 %v3809_v25  ;;  %v3887_v25 = vpack.c.bf16 %v1922_v19, %v1921_v12  ;;  %v1846_v6 = vrot.slane %v4576_v2, %v4283_v55  ;;  %v1928_v3 = vld [vmem:[#allocation8 + $0xbe8] sm:$0xff]  ;;  %v2123_v19 = vmul.f32 %v2109_v48, %v4335_v31  ;;  %v1911_v2 = vld [vmem:[#allocation8 + $0xb60] sm:$0xff]  ;;  %v1929_v44 = vld [vmem:[#allocation8 + $0xbf0] sm:$0xff] }
 0x173   :  { %3842 = vmatpush3.bf16.msra.mxu1 %v3841_v28  ;;  %3844 = vmatprep.subr.bf16.mxu0 %v3843_v26  ;;  %v1892_v28 = vld [vmem:[#allocation8 + $0xac8] sm:$0xff]  ;;  %v3899_v38 = vpack.c.bf16 %v1928_v3, %v1927_v9  ;;  %v1930_v37 = vld [vmem:[#allocation8 + $0xbf8] sm:$0xff]  ;;  %v1881_v48 = vld [vmem:[#allocation8 + $0xa70] sm:$0xff] }
 0x174   :  { %3876 = vmatprep.subr.bf16.mxu1 %v3875_v33  ;;  %v1924_v26 = vld [vmem:[#allocation8 + $0xbc8] sm:$0xff]  ;;  %v3889_v33 = vpack.c.bf16 %v1906_v0, %v1905_v10  ;;  %v3859_v27 = vpack.c.bf16 %v1892_v28, %v1891_v56  ;;  %v1879_v10 = vld [vmem:[#allocation8 + $0xa60] sm:$0xff] }
 0x175   :  { %1667 = vmatmul.mubr.f32.vlgmr.msra.gmra.mrb[8].mxu0 %v1534_v45  ;;  %v1749_v45 = vrot.slane %v4540_v46, %v4281_v54 }
 0x176   :  { %1737 = vmatmul.mubr.f32.vlgmr.msra.gmra.mrb[8].mxu1 %v1536_v1  ;;  %3846 = vmatpush3.bf16.msra.mxu0 %v3845_v42  ;;  %v3891_v42 = vpack.c.bf16 %v1924_v26, %v1923_v29  ;;  %v1757_v1 = vrot.slane %v4540_v46, %v4283_v55  ;;  %v2117_v46 = vrot.slane %v4598_v16, %v4279_v52  ;;  %v1912_v29 = vld [vmem:[#allocation8 + $0xb68] sm:$0xff]  ;;  %v1897_v26 = vld [vmem:[#allocation8 + $0xaf0] sm:$0xff] }
 0x177   :  { %1995 = vmatprep.mubr.f32.mxu0 %v1864_v53  ;;  %3878 = vmatpush3.bf16.msra.mxu1 %v3877_v41  ;;  %v1784_v41 = vrot.slane %v4542_v47, %v4283_v55  ;;  %v1815_v47 = vrot.slane %v4560_v43, %v4283_v55  ;;  %v4616_v53 = vld [vmem:[#allocation6 + $0x62] ss:$4 sm:$0xf]  ;;  %v1766_v12 = vmul.f32 %v1749_v45, %v4309_v13 }
 0x178   :  { %2065 = vmatprep.mubr.f32.mxu1 %v1866_v8  ;;  %3848 = vmatprep.subr.bf16.mxu0 %v3847_v35  ;;  %v2082_v35 = vrot.slane %v4596_v30, %v4277_v51  ;;  %v1878_v8 = vld [vmem:[#allocation8 + $0xa58] sm:$0xff]  ;;  %v1895_v43 = vld [vmem:[#allocation8 + $0xae0] sm:$0xff]  ;;  %v1768_v0 = vmul.f32 %v1757_v1, %v4309_v13  ;;  %v2125_v56 = vmul.f32 %v2117_v46, %v4335_v31 }
 0x179   :  { %3880 = vmatprep.subr.bf16.mxu1 %v3879_v40  ;;  %v2090_v40 = vrot.slane %v4596_v30, %v4279_v52  ;;  %v3865_v11 = vpack.c.bf16 %v1878_v8, %v1877_v49  ;;  %v3867_v28 = vpack.c.bf16 %v1896_v5, %v1895_v43  ;;  %v3901_v15 = vpack.c.bf16 %v1912_v29, %v1911_v2  ;;  %v1913_v49 = vld [vmem:[#allocation8 + $0xb70] sm:$0xff]  ;;  %v2245_v43 = vld [vmem:[#allocation8 + $0xd88] sm:$0xff] }
 0x17a   :  { %3850 = vmatpush3.bf16.msra.mxu0 %v3849_v7  ;;  %v1909_v7 = vld [vmem:[#allocation8 + $0xb50] sm:$0xff]  ;;  %v1826_v1 = vmul.f32 %v1815_v47, %v4311_v14  ;;  %v1855_v46 = vmul.f32 %v1838_v57, %v4337_v32 }
 0x17b   :  { %3882 = vmatpush3.bf16.msra.mxu1 %v3881_v36  ;;  %3852 = vmatprep.subr.bf16.mxu0 %v3851_v62  ;;  %v1910_v36 = vld [vmem:[#allocation8 + $0xb58] sm:$0xff]  ;;  %v1793_v62 = vmul.f32 %v1776_v39, %v4335_v31  ;;  %v2098_v39 = vmul.f32 %v2090_v40, %v4309_v13 }
 0x17c   :  { %3884 = vmatprep.subr.bf16.mxu1 %v3883_v61  ;;  %v1795_v61 = vmul.f32 %v1784_v41, %v4335_v31  ;;  %v3897_v22 = vpack.c.bf16 %v1910_v36, %v1909_v7  ;;  %v1857_v7 = vmul.f32 %v1846_v6, %v4337_v32  ;;  %v2212_v36 = vld [vmem:[#allocation8 + $0xc80] sm:$0xff] }
 0x17d   :  { %v2196_v6 = vld [vmem:[#allocation8 + $0xc00] sm:$0xff] }
 0x17e   :  { %3854 = vmatpush3.bf16.msra.mxu0 %v3853_v4  ;;  %v2140_v4 = vrot.slane %v4616_v53, %v4277_v51  ;;  %v1799_v18 = vadd.f32 %v1795_v61, %v1768_v0  ;;  %v2214_v0 = vld [vmem:[#allocation8 + $0xc90] sm:$0xff] }
 0x17f   :  { %3886 = vmatpush3.bf16.msra.mxu1 %v3885_v58  ;;  %3856 = vmatprep.subr.bf16.mxu0 %v3855_v20  ;;  %v4632_v58 = vld [vmem:[#allocation6 + $0x63] ss:$4 sm:$0xf]  ;;  %v2148_v20 = vrot.slane %v4616_v53, %v4279_v52 }
 0x180   :  { %3888 = vmatprep.subr.bf16.mxu1 %v3887_v25  ;;  %v1880_v25 = vld [vmem:[#allocation8 + $0xa68] sm:$0xff]  ;;  %v2171_v17 = vrot.slane %v4632_v58, %v4277_v51  ;;  %v2179_v41 = vrot.slane %v4632_v58, %v4279_v52  ;;  %v2154_v24 = vmul.f32 %v2140_v4, %v4311_v14  ;;  %v1830_v8 = vadd.f32 %v1826_v1, %v1799_v18  ;;  %v2199_v18 = vld [vmem:[#allocation8 + $0xc18] sm:$0xff] }
 0x181   :  { %v2156_v47 = vmul.f32 %v2148_v20, %v4311_v14 }
 0x182   :  { %3858 = vmatpush3.bf16.msra.mxu0 %v3857_v23  ;;  %v1898_v23 = vld [vmem:[#allocation8 + $0xaf8] sm:$0xff]  ;;  %v2185_v61 = vmul.f32 %v2171_v17, %v4337_v32  ;;  %v2187_v3 = vmul.f32 %v2179_v41, %v4337_v32  ;;  %v2230_v17 = vld [vmem:[#allocation8 + $0xd10] sm:$0xff] }
 0x183   :  { %3890 = vmatpush3.bf16.msra.mxu1 %v3889_v33  ;;  %3860 = vmatprep.subr.bf16.mxu0 %v3859_v27  ;;  %v1797_v33 = vadd.f32 %v1793_v62, %v1766_v12  ;;  %v2096_v27 = vmul.f32 %v2082_v35, %v4309_v13  ;;  %v3871_v21 = vpack.c.bf16 %v1898_v23, %v1897_v26  ;;  %v2213_v62 = vld [vmem:[#allocation8 + $0xc88] sm:$0xff]  ;;  %v2246_v26 = vld [vmem:[#allocation8 + $0xd90] sm:$0xff]  ;;  %v2247_v23 = vld [vmem:[#allocation8 + $0xd98] sm:$0xff] }
 0x184   :  { %3892 = vmatprep.subr.bf16.mxu1 %v3891_v42  ;;  %v3869_v42 = vpack.c.bf16 %v1880_v25, %v1879_v10  ;;  %v2129_v35 = vadd.f32 %v2125_v56, %v2098_v39  ;;  %v3907_v4 = vpack.c.bf16 %v2213_v62, %v2212_v36  ;;  %v2228_v10 = vld [vmem:[#allocation8 + $0xd00] sm:$0xff]  ;;  %v2229_v25 = vld [vmem:[#allocation8 + $0xd08] sm:$0xff]  ;;  %v2215_v56 = vld [vmem:[#allocation8 + $0xc98] sm:$0xff]  ;;  %v3943_v41 = vpack.c.bf16 %v2247_v23, %v2246_v26 }
 0x185   :  { %v2127_v45 = vadd.f32 %v2123_v19, %v2096_v27  ;;  %v1828_v40 = vadd.f32 %v1824_v34, %v1797_v33  ;;  %v3941_v27 = vpack.c.bf16 %v2229_v25, %v2228_v10  ;;  %v2217_v34 = vld [vmem:[#allocation8 + $0xca8] sm:$0xff]  ;;  %v2251_v36 = vld [vmem:[#allocation8 + $0xdb8] sm:$0xff]  ;;  %v2204_v25 = vld [vmem:[#allocation8 + $0xc40] sm:$0xff] }
 0x186   :  { %3862 = vmatpush3.bf16.msra.mxu0 %v3861_v50  ;;  %v1882_v50 = vld [vmem:[#allocation8 + $0xa78] sm:$0xff]  ;;  %v2160_v57 = vadd.f32 %v2156_v47, %v2129_v35  ;;  %v2222_v26 = vld [vmem:[#allocation8 + $0xcd0] sm:$0xff] }
 0x187   :  { %3894 = vmatpush3.bf16.msra.mxu1 %v3893_v59  ;;  %3864 = vmatprep.subr.bf16.mxu0 %v3863_v60  ;;  %v3903_v59 = vpack.c.bf16 %v1930_v37, %v1929_v44  ;;  %v1914_v60 = vld [vmem:[#allocation8 + $0xb78] sm:$0xff]  ;;  %v2158_v5 = vadd.f32 %v2154_v24, %v2127_v45  ;;  %v3873_v9 = vpack.c.bf16 %v1882_v50, %v1881_v48  ;;  %v2216_v37 = vld [vmem:[#allocation8 + $0xca0] sm:$0xff] }
 0x188   :  { %3896 = vmatprep.subr.bf16.mxu1 %v3895_v63  ;;  %v2244_v63 = vld [vmem:[#allocation8 + $0xd80] sm:$0xff]  ;;  %v3905_v12 = vpack.c.bf16 %v1914_v60, %v1913_v49  ;;  %v1859_v19 = vadd.f32 %v1855_v46, %v1828_v40  ;;  %v2191_v29 = vadd.f32 %v2187_v3, %v2160_v57  ;;  %v2231_v44 = vld [vmem:[#allocation8 + $0xd18] sm:$0xff]  ;;  %v3915_v50 = vpack.c.bf16 %v2217_v34, %v2216_v37  ;;  %v2201_v40 = vld [vmem:[#allocation8 + $0xc28] sm:$0xff] }
 0x189   :  { %v3939_v20 = vpack.c.bf16 %v2245_v43, %v2244_v63  ;;  %v2189_v2 = vadd.f32 %v2185_v61, %v2158_v5  ;;  %v3945_v48 = vpack.c.bf16 %v2231_v44, %v2230_v17  ;;  %v2200_v49 = vld [vmem:[#allocation8 + $0xc20] sm:$0xff]  ;;  %v2218_v60 = vld [vmem:[#allocation8 + $0xcb0] sm:$0xff]  ;;  %v2203_v5 = vld [vmem:[#allocation8 + $0xc38] sm:$0xff]  ;;  %v2086_v17 = vrot.slane %v4596_v30, %v4283_v55 }
 0x18a   :  { %3866 = vmatpush3.bf16.msra.mxu0 %v3865_v11  ;;  %v2197_v11 = vld [vmem:[#allocation8 + $0xc08] sm:$0xff]  ;;  %v1863_v33 = vmax.f32 %v1859_v19, 0.0  ;;  %v2195_v1 = vmax.f32 %v2191_v29, 0.0  ;;  %v2232_v46 = vld [vmem:[#allocation8 + $0xd20] sm:$0xff]  ;;  %v3917_v62 = vpack.c.bf16 %v2201_v40, %v2200_v49  ;;  %v2202_v43 = vld [vmem:[#allocation8 + $0xc30] sm:$0xff] }
 0x18b   :  { %3898 = vmatpush3.bf16.msra.mxu1 %v3897_v22  ;;  %3868 = vmatprep.subr.bf16.mxu0 %v3867_v28  ;;  %v1861_v22 = vadd.f32 %v1857_v7, %v1830_v8  ;;  %v3909_v28 = vpack.c.bf16 %v2197_v11, %v2196_v6  ;;  %v2193_v45 = vmax.f32 %v2189_v2, 0.0  ;;  %v2219_v8 = vld [vmem:[#allocation8 + $0xcb8] sm:$0xff]  ;;  %v2250_v7 = vld [vmem:[#allocation8 + $0xdb0] sm:$0xff]  ;;  %v2220_v3 = vld [vmem:[#allocation8 + $0xcc0] sm:$0xff]  ;;  %v3921_v6 = vpack.c.bf16 %v2203_v5, %v2202_v43 }
 0x18c   :  { %3900 = vmatprep.subr.bf16.mxu1 %v3899_v38  ;;  %v2198_v38 = vld [vmem:[#allocation8 + $0xc10] sm:$0xff]  ;;  %v3919_v63 = vpack.c.bf16 %v2219_v8, %v2218_v60  ;;  %v2235_v57 = vld [vmem:[#allocation8 + $0xd38] sm:$0xff]  ;;  %v2252_v19 = vld [vmem:[#allocation8 + $0xdc0] sm:$0xff] }
 0x18d   :  { %v1865_v39 = vmax.f32 %v1861_v22, 0.0  ;;  %v3913_v35 = vpack.c.bf16 %v2199_v18, %v2198_v38  ;;  %v2234_v61 = vld [vmem:[#allocation8 + $0xd30] sm:$0xff]  ;;  %v2205_v2 = vld [vmem:[#allocation8 + $0xc48] sm:$0xff]  ;;  %v2223_v23 = vld [vmem:[#allocation8 + $0xcd8] sm:$0xff] }
 0x18e   :  { %3870 = vmatpush3.bf16.msra.mxu0 %v3869_v42  ;;  %v3911_v42 = vpack.c.bf16 %v2215_v56, %v2214_v0  ;;  %v4652_v11 = vld [vmem:[#allocation6 + $0x70] ss:$4 sm:$0xf]  ;;  %v4654_v22 = vld [vmem:[#allocation6 + $0x71] ss:$4 sm:$0xf]  ;;  %v2105_v56 = vrot.slane %v4598_v16, %v4281_v54  ;;  %v3925_v34 = vpack.c.bf16 %v2205_v2, %v2204_v25 }
 0x18f   :  { %3902 = vmatpush3.bf16.msra.mxu1 %v3901_v15  ;;  %3872 = vmatprep.subr.bf16.mxu0 %v3871_v21  ;;  %v2248_v15 = vld [vmem:[#allocation8 + $0xda0] sm:$0xff]  ;;  %v2249_v21 = vld [vmem:[#allocation8 + $0xda8] sm:$0xff]  ;;  %v2254_v38 = vld [vmem:[#allocation8 + $0xdd0] sm:$0xff]  ;;  %v2419_v37 = vrot.slane %v4652_v11, %v4279_v52 }
 0x190   :  { %3904 = vmatprep.subr.bf16.mxu1 %v3903_v59  ;;  %v3947_v24 = vpack.c.bf16 %v2249_v21, %v2248_v15  ;;  %v2233_v59 = vld [vmem:[#allocation8 + $0xd28] sm:$0xff]  ;;  %v2236_v0 = vld [vmem:[#allocation8 + $0xd40] sm:$0xff]  ;;  %v2255_v18 = vld [vmem:[#allocation8 + $0xdd8] sm:$0xff]  ;;  %v3927_v21 = vpack.c.bf16 %v2223_v23, %v2222_v26 }
 0x191   :  { %v3949_v47 = vpack.c.bf16 %v2233_v59, %v2232_v46  ;;  %v2237_v29 = vld [vmem:[#allocation8 + $0xd48] sm:$0xff]  ;;  %v3959_v49 = vpack.c.bf16 %v2255_v18, %v2254_v38  ;;  %v2224_v40 = vld [vmem:[#allocation8 + $0xce0] sm:$0xff]  ;;  %v2259_v26 = vld [vmem:[#allocation8 + $0xdf8] sm:$0xff] }
 0x192   :  { %3874 = vmatpush3.bf16.msra.mxu0 %v3873_v9  ;;  %v3951_v9 = vpack.c.bf16 %v2251_v36, %v2250_v7  ;;  %v4668_v44 = vld [vmem:[#allocation6 + $0x72] ss:$4 sm:$0xf]  ;;  %v3957_v15 = vpack.c.bf16 %v2237_v29, %v2236_v0  ;;  %v2256_v60 = vld [vmem:[#allocation8 + $0xde0] sm:$0xff]  ;;  %v2175_v36 = vrot.slane %v4632_v58, %v4283_v55 }
 0x193   :  { %3906 = vmatpush3.bf16.msra.mxu1 %v3905_v12  ;;  %3908 = vmatprep.subr.bf16.mxu0 %v3907_v4  ;;  %v2221_v12 = vld [vmem:[#allocation8 + $0xcc8] sm:$0xff]  ;;  %v2469_v59 = vrot.slane %v4668_v44, %v4277_v51  ;;  %v2258_v29 = vld [vmem:[#allocation8 + $0xdf0] sm:$0xff] }
 0x194   :  { %3940 = vmatprep.subr.bf16.mxu1 %v3939_v20  ;;  %v2253_v4 = vld [vmem:[#allocation8 + $0xdc8] sm:$0xff]  ;;  %v3953_v20 = vpack.c.bf16 %v2235_v57, %v2234_v61  ;;  %v3923_v10 = vpack.c.bf16 %v2221_v12, %v2220_v3  ;;  %v2208_v61 = vld [vmem:[#allocation8 + $0xc60] sm:$0xff]  ;;  %v2097_v3 = vmul.f32 %v2086_v17, %v4309_v13 }
 0x195   :  { %1996 = vmatmul.mubr.f32.vlgmr.msra.gmra.mrb[10].mxu0 %v1863_v33  ;;  %v2078_v33 = vrot.slane %v4596_v30, %v4281_v54  ;;  %v2144_v30 = vrot.slane %v4616_v53, %v4283_v55  ;;  %v2225_v46 = vld [vmem:[#allocation8 + $0xce8] sm:$0xff]  ;;  %v2240_v57 = vld [vmem:[#allocation8 + $0xd60] sm:$0xff] }
 0x196   :  { %2066 = vmatmul.mubr.f32.vlgmr.msra.gmra.mrb[10].mxu1 %v1865_v39  ;;  %3910 = vmatpush3.bf16.msra.mxu0 %v3909_v28  ;;  %v3955_v28 = vpack.c.bf16 %v2253_v4, %v2252_v19  ;;  %v2411_v39 = vrot.slane %v4652_v11, %v4277_v51  ;;  %v2257_v8 = vld [vmem:[#allocation8 + $0xde8] sm:$0xff]  ;;  %v2226_v4 = vld [vmem:[#allocation8 + $0xcf0] sm:$0xff] }
 0x197   :  { %2324 = vmatprep.mubr.f32.mxu0 %v2193_v45  ;;  %3942 = vmatpush3.bf16.msra.mxu1 %v3941_v27  ;;  %v2113_v27 = vrot.slane %v4598_v16, %v4283_v55  ;;  %v2206_v45 = vld [vmem:[#allocation8 + $0xc50] sm:$0xff]  ;;  %v2136_v16 = vrot.slane %v4616_v53, %v4281_v54  ;;  %v2095_v7 = vmul.f32 %v2078_v33, %v4309_v13  ;;  %v2241_v19 = vld [vmem:[#allocation8 + $0xd68] sm:$0xff] }
 0x198   :  { %2394 = vmatprep.mubr.f32.mxu1 %v2195_v1  ;;  %3912 = vmatprep.subr.bf16.mxu0 %v3911_v42  ;;  %v2438_v42 = vrot.slane %v4654_v22, %v4277_v51  ;;  %v2207_v1 = vld [vmem:[#allocation8 + $0xc58] sm:$0xff]  ;;  %v3963_v25 = vpack.c.bf16 %v2257_v8, %v2256_v60  ;;  %v3965_v38 = vpack.c.bf16 %v2241_v19, %v2240_v57  ;;  %v2543_v57 = vld [vmem:[#allocation8 + $0xe90] sm:$0xff] }
 0x199   :  { %3944 = vmatprep.subr.bf16.mxu1 %v3943_v41  ;;  %v2446_v41 = vrot.slane %v4654_v22, %v4279_v52  ;;  %v2124_v53 = vmul.f32 %v2113_v27, %v4335_v31  ;;  %v3929_v43 = vpack.c.bf16 %v2207_v1, %v2206_v45  ;;  %v2153_v23 = vmul.f32 %v2136_v16, %v4311_v14  ;;  %v2575_v19 = vld [vmem:[#allocation8 + $0xf90] sm:$0xff] }
 0x19a   :  { %3914 = vmatpush3.bf16.msra.mxu0 %v3913_v35  ;;  %v2238_v35 = vld [vmem:[#allocation8 + $0xd50] sm:$0xff]  ;;  %v2155_v17 = vmul.f32 %v2144_v30, %v4311_v14  ;;  %v2483_v16 = vmul.f32 %v2469_v59, %v4311_v14  ;;  %v2186_v1 = vmul.f32 %v2175_v36, %v4337_v32  ;;  %v2525_v36 = vld [vmem:[#allocation8 + $0xe00] sm:$0xff] }
 0x19b   :  { %3946 = vmatpush3.bf16.msra.mxu1 %v3945_v48  ;;  %3916 = vmatprep.subr.bf16.mxu0 %v3915_v50  ;;  %v2239_v48 = vld [vmem:[#allocation8 + $0xd58] sm:$0xff]  ;;  %v2122_v50 = vmul.f32 %v2105_v56, %v4335_v31  ;;  %v2454_v12 = vmul.f32 %v2446_v41, %v4335_v31  ;;  %v2128_v2 = vadd.f32 %v2124_v53, %v2097_v3 }
 0x19c   :  { %3948 = vmatprep.subr.bf16.mxu1 %v3947_v24  ;;  %v2167_v24 = vrot.slane %v4632_v58, %v4281_v54  ;;  %v3961_v5 = vpack.c.bf16 %v2239_v48, %v2238_v35  ;;  %v3931_v58 = vpack.c.bf16 %v2225_v46, %v2224_v40  ;;  %v2427_v56 = vmul.f32 %v2419_v37, %v4309_v13  ;;  %v2242_v37 = vld [vmem:[#allocation8 + $0xd70] sm:$0xff]  ;;  %v2541_v35 = vld [vmem:[#allocation8 + $0xe80] sm:$0xff]  ;;  %v2542_v48 = vld [vmem:[#allocation8 + $0xe88] sm:$0xff] }
 0x19d   :  { %v2544_v3 = vld [vmem:[#allocation8 + $0xe98] sm:$0xff] }
 0x19e   :  { %3918 = vmatpush3.bf16.msra.mxu0 %v3917_v62  ;;  %v2452_v62 = vmul.f32 %v2438_v42, %v4335_v31  ;;  %v2210_v42 = vld [vmem:[#allocation8 + $0xc70] sm:$0xff]  ;;  %v2184_v41 = vmul.f32 %v2167_v24, %v4337_v32 }
 0x19f   :  { %3950 = vmatpush3.bf16.msra.mxu1 %v3949_v47  ;;  %3920 = vmatprep.subr.bf16.mxu0 %v3919_v63  ;;  %v4688_v47 = vld [vmem:[#allocation6 + $0x73] ss:$4 sm:$0xf]  ;;  %v2477_v63 = vrot.slane %v4668_v44, %v4279_v52 }
 0x1a0   :  { %3952 = vmatprep.subr.bf16.mxu1 %v3951_v9  ;;  %v2209_v9 = vld [vmem:[#allocation8 + $0xc68] sm:$0xff]  ;;  %v2500_v0 = vrot.slane %v4688_v47, %v4277_v51  ;;  %v2508_v27 = vrot.slane %v4688_v47, %v4279_v52  ;;  %v2159_v52 = vadd.f32 %v2155_v17, %v2128_v2  ;;  %v2559_v2 = vld [vmem:[#allocation8 + $0xf10] sm:$0xff] }
 0x1a1   :  { %v2485_v30 = vmul.f32 %v2477_v63, %v4311_v14 }
 0x1a2   :  { %3922 = vmatpush3.bf16.msra.mxu0 %v3921_v6  ;;  %v2227_v6 = vld [vmem:[#allocation8 + $0xcf8] sm:$0xff]  ;;  %v2514_v46 = vmul.f32 %v2500_v0, %v4337_v32  ;;  %v2516_v59 = vmul.f32 %v2508_v27, %v4337_v32  ;;  %v2577_v27 = vld [vmem:[#allocation8 + $0xfa0] sm:$0xff] }
 0x1a3   :  { %3954 = vmatpush3.bf16.msra.mxu1 %v3953_v20  ;;  %3924 = vmatprep.subr.bf16.mxu0 %v3923_v10  ;;  %v2126_v20 = vadd.f32 %v2122_v50, %v2095_v7  ;;  %v2425_v10 = vmul.f32 %v2411_v39, %v4309_v13  ;;  %v3935_v18 = vpack.c.bf16 %v2227_v6, %v2226_v4  ;;  %v2573_v50 = vld [vmem:[#allocation8 + $0xf80] sm:$0xff]  ;;  %v2576_v4 = vld [vmem:[#allocation8 + $0xf98] sm:$0xff] }
 0x1a4   :  { %3956 = vmatprep.subr.bf16.mxu1 %v3955_v28  ;;  %v3933_v28 = vpack.c.bf16 %v2209_v9, %v2208_v61  ;;  %v2458_v39 = vadd.f32 %v2454_v12, %v2427_v56  ;;  %v3971_v7 = vpack.c.bf16 %v2542_v48, %v2541_v35  ;;  %v2558_v61 = vld [vmem:[#allocation8 + $0xf08] sm:$0xff]  ;;  %v3975_v56 = vpack.c.bf16 %v2544_v3, %v2543_v57  ;;  %v2565_v57 = vld [vmem:[#allocation8 + $0xf40] sm:$0xff] }
 0x1a5   :  { %v2456_v33 = vadd.f32 %v2452_v62, %v2425_v10  ;;  %v2157_v45 = vadd.f32 %v2153_v23, %v2126_v20  ;;  %v2526_v62 = vld [vmem:[#allocation8 + $0xe08] sm:$0xff]  ;;  %v2527_v10 = vld [vmem:[#allocation8 + $0xe10] sm:$0xff] }
 0x1a6   :  { %3926 = vmatpush3.bf16.msra.mxu0 %v3925_v34  ;;  %v2211_v34 = vld [vmem:[#allocation8 + $0xc78] sm:$0xff]  ;;  %v2489_v24 = vadd.f32 %v2485_v30, %v2458_v39  ;;  %v3973_v12 = vpack.c.bf16 %v2526_v62, %v2525_v36  ;;  %v2434_v36 = vrot.slane %v4654_v22, %v4281_v54 }
 0x1a7   :  { %3958 = vmatpush3.bf16.msra.mxu1 %v3957_v15  ;;  %3928 = vmatprep.subr.bf16.mxu0 %v3927_v21  ;;  %v3967_v15 = vpack.c.bf16 %v2259_v26, %v2258_v29  ;;  %v2243_v21 = vld [vmem:[#allocation8 + $0xd78] sm:$0xff]  ;;  %v2487_v40 = vadd.f32 %v2483_v16, %v2456_v33  ;;  %v3937_v53 = vpack.c.bf16 %v2211_v34, %v2210_v42  ;;  %v2545_v29 = vld [vmem:[#allocation8 + $0xea0] sm:$0xff]  ;;  %v2546_v26 = vld [vmem:[#allocation8 + $0xea8] sm:$0xff] }
 0x1a8   :  { %3960 = vmatprep.subr.bf16.mxu1 %v3959_v49  ;;  %v2574_v49 = vld [vmem:[#allocation8 + $0xf88] sm:$0xff]  ;;  %v3969_v60 = vpack.c.bf16 %v2243_v21, %v2242_v37  ;;  %v2188_v8 = vadd.f32 %v2184_v41, %v2157_v45  ;;  %v4007_v33 = vpack.c.bf16 %v2576_v4, %v2575_v19  ;;  %v3979_v42 = vpack.c.bf16 %v2546_v26, %v2545_v29  ;;  %v2529_v34 = vld [vmem:[#allocation8 + $0xe20] sm:$0xff]  ;;  %v2548_v21 = vld [vmem:[#allocation8 + $0xeb8] sm:$0xff] }
 0x1a9   :  { %v4003_v63 = vpack.c.bf16 %v2574_v49, %v2573_v50  ;;  %v2518_v9 = vadd.f32 %v2514_v46, %v2487_v40  ;;  %v2530_v37 = vld [vmem:[#allocation8 + $0xe28] sm:$0xff]  ;;  %v2561_v45 = vld [vmem:[#allocation8 + $0xf20] sm:$0xff]  ;;  %v2531_v50 = vld [vmem:[#allocation8 + $0xe30] sm:$0xff]  ;;  %v2407_v4 = vrot.slane %v4652_v11, %v4281_v54 }
 0x1aa   :  { %3930 = vmatpush3.bf16.msra.mxu0 %v3929_v43  ;;  %v2190_v43 = vadd.f32 %v2186_v1, %v2159_v52  ;;  %v2192_v6 = vmax.f32 %v2188_v8, 0.0  ;;  %v2562_v16 = vld [vmem:[#allocation8 + $0xf28] sm:$0xff]  ;;  %v2579_v52 = vld [vmem:[#allocation8 + $0xfb0] sm:$0xff]  ;;  %v2580_v1 = vld [vmem:[#allocation8 + $0xfb8] sm:$0xff]  ;;  %v3981_v35 = vpack.c.bf16 %v2530_v37, %v2529_v34 }
 0x1ab   :  { %3962 = vmatpush3.bf16.msra.mxu1 %v3961_v5  ;;  %3932 = vmatprep.subr.bf16.mxu0 %v3931_v58  ;;  %v2557_v5 = vld [vmem:[#allocation8 + $0xf00] sm:$0xff]  ;;  %v2520_v58 = vadd.f32 %v2516_v59, %v2489_v24  ;;  %v2522_v23 = vmax.f32 %v2518_v9, 0.0  ;;  %v4013_v48 = vpack.c.bf16 %v2562_v16, %v2561_v45  ;;  %v2532_v49 = vld [vmem:[#allocation8 + $0xe38] sm:$0xff]  ;;  %v2563_v40 = vld [vmem:[#allocation8 + $0xf30] sm:$0xff]  ;;  %v4015_v46 = vpack.c.bf16 %v2580_v1, %v2579_v52 }
 0x1ac   :  { %3964 = vmatprep.subr.bf16.mxu1 %v3963_v25  ;;  %v4005_v20 = vpack.c.bf16 %v2558_v61, %v2557_v5  ;;  %v2528_v25 = vld [vmem:[#allocation8 + $0xe18] sm:$0xff]  ;;  %v2194_v0 = vmax.f32 %v2190_v43, 0.0  ;;  %v2549_v24 = vld [vmem:[#allocation8 + $0xec0] sm:$0xff]  ;;  %v2550_v59 = vld [vmem:[#allocation8 + $0xec8] sm:$0xff]  ;;  %v2473_v16 = vrot.slane %v4668_v44, %v4283_v55 }
 0x1ad   :  { %v3977_v17 = vpack.c.bf16 %v2528_v25, %v2527_v10  ;;  %v2582_v8 = vld [vmem:[#allocation8 + $0xfc8] sm:$0xff]  ;;  %v4710_v62 = vld [vmem:[#allocation6 + $0x80] ss:$4 sm:$0x3]  ;;  %v3987_v5 = vpack.c.bf16 %v2550_v59, %v2549_v24  ;;  %v2533_v61 = vld [vmem:[#allocation8 + $0xe40] sm:$0xff] }
 0x1ae   :  { %3934 = vmatpush3.bf16.msra.mxu0 %v3933_v28  ;;  %v2560_v28 = vld [vmem:[#allocation8 + $0xf18] sm:$0xff]  ;;  %v2534_v9 = vld [vmem:[#allocation8 + $0xe48] sm:$0xff]  ;;  %v2585_v37 = vld [vmem:[#allocation8 + $0xfe0] sm:$0xff] }
 0x1af   :  { %3966 = vmatpush3.bf16.msra.mxu1 %v3965_v38  ;;  %3936 = vmatprep.subr.bf16.mxu0 %v3935_v18  ;;  %v2578_v38 = vld [vmem:[#allocation8 + $0xfa8] sm:$0xff]  ;;  %v2524_v18 = vmax.f32 %v2520_v58, 0.0  ;;  %v4009_v39 = vpack.c.bf16 %v2560_v28, %v2559_v2  ;;  %v4712_v43 = vld [vmem:[#allocation6 + $0x81] ss:$4 sm:$0x3]  ;;  %v2551_v58 = vld [vmem:[#allocation8 + $0xed0] sm:$0xff]  ;;  %v3989_v2 = vpack.c.bf16 %v2534_v9, %v2533_v61 }
 0x1b0   :  { %3968 = vmatprep.subr.bf16.mxu1 %v3967_v15  ;;  %v4011_v41 = vpack.c.bf16 %v2578_v38, %v2577_v27  ;;  %v2547_v15 = vld [vmem:[#allocation8 + $0xeb0] sm:$0xff]  ;;  %v2552_v19 = vld [vmem:[#allocation8 + $0xed8] sm:$0xff]  ;;  %v2755_v25 = vrot.slane %v4712_v43, %v4277_v51  ;;  %v2740_v27 = vrot.slane %v4710_v62, %v4277_v51  ;;  %v2586_v45 = vld [vmem:[#allocation8 + $0xfe8] sm:$0xff] }
 0x1b1   :  { %v3983_v30 = vpack.c.bf16 %v2548_v21, %v2547_v15  ;;  %v2584_v10 = vld [vmem:[#allocation8 + $0xfd8] sm:$0xff]  ;;  %v3991_v26 = vpack.c.bf16 %v2552_v19, %v2551_v58  ;;  %v4027_v59 = vpack.c.bf16 %v2586_v45, %v2585_v37  ;;  %v2484_v58 = vmul.f32 %v2473_v16, %v4311_v14  ;;  %v2798_v37 = vld [vmem:[#allocation8 + $0x1000] sm:$0xff]  ;;  %v2799_v45 = vld [vmem:[#allocation8 + $0x1008] sm:$0xff] }
 0x1b2   :  { %3938 = vmatpush3.bf16.msra.mxu0 %v3937_v53  ;;  %v2564_v53 = vld [vmem:[#allocation8 + $0xf38] sm:$0xff]  ;;  %v2759_v15 = vmul.f32 %v2755_v25, %v4335_v31  ;;  %v2816_v16 = vld [vmem:[#allocation8 + $0x1090] sm:$0xff] }
 0x1b3   :  { %3970 = vmatpush3.bf16.msra.mxu1 %v3969_v60  ;;  %3972 = vmatprep.subr.bf16.mxu0 %v3971_v7  ;;  %v2581_v60 = vld [vmem:[#allocation8 + $0xfc0] sm:$0xff]  ;;  %v3985_v7 = vpack.c.bf16 %v2532_v49, %v2531_v50  ;;  %v4723_v28 = vld [vmem:[#allocation6 + $0x82] ss:$4 sm:$0x3] }
 0x1b4   :  { %4004 = vmatprep.subr.bf16.mxu1 %v4003_v63  ;;  %v4017_v63 = vpack.c.bf16 %v2564_v53, %v2563_v40  ;;  %v4019_v3 = vpack.c.bf16 %v2582_v8, %v2581_v60  ;;  %v2537_v49 = vld [vmem:[#allocation8 + $0xe60] sm:$0xff]  ;;  %v2538_v40 = vld [vmem:[#allocation8 + $0xe68] sm:$0xff]  ;;  %v2555_v8 = vld [vmem:[#allocation8 + $0xef0] sm:$0xff] }
 0x1b5   :  { %2325 = vmatmul.mubr.f32.vlgmr.msra.gmra.mrb[12].mxu0 %v2192_v6  ;;  %v2442_v6 = vrot.slane %v4654_v22, %v4283_v55  ;;  %v2536_v22 = vld [vmem:[#allocation8 + $0xe58] sm:$0xff]  ;;  %v2570_v60 = vld [vmem:[#allocation8 + $0xf68] sm:$0xff] }
 0x1b6   :  { %2395 = vmatmul.mubr.f32.vlgmr.msra.gmra.mrb[12].mxu1 %v2194_v0  ;;  %3974 = vmatpush3.bf16.msra.mxu0 %v3973_v12  ;;  %v2566_v12 = vld [vmem:[#allocation8 + $0xf48] sm:$0xff]  ;;  %v2451_v0 = vmul.f32 %v2434_v36, %v4335_v31 }
 0x1b7   :  { %2653 = vmatprep.mubr.f32.mxu0 %v2522_v23  ;;  %4006 = vmatpush3.bf16.msra.mxu1 %v4005_v20  ;;  %v2583_v20 = vld [vmem:[#allocation8 + $0xfd0] sm:$0xff]  ;;  %v4021_v29 = vpack.c.bf16 %v2566_v12, %v2565_v57  ;;  %v2453_v34 = vmul.f32 %v2442_v6, %v4335_v31 }
 0x1b8   :  { %2723 = vmatprep.mubr.f32.mxu1 %v2524_v18  ;;  %3976 = vmatprep.subr.bf16.mxu0 %v3975_v56  ;;  %v2415_v56 = vrot.slane %v4652_v11, %v4283_v55  ;;  %v2535_v23 = vld [vmem:[#allocation8 + $0xe50] sm:$0xff]  ;;  %v4023_v38 = vpack.c.bf16 %v2584_v10, %v2583_v20  ;;  %v2568_v18 = vld [vmem:[#allocation8 + $0xf58] sm:$0xff]  ;;  %v2465_v11 = vrot.slane %v4668_v44, %v4281_v54 }
 0x1b9   :  { %4008 = vmatprep.subr.bf16.mxu1 %v4007_v33  ;;  %v2567_v33 = vld [vmem:[#allocation8 + $0xf50] sm:$0xff]  ;;  %v3993_v21 = vpack.c.bf16 %v2536_v22, %v2535_v23  ;;  %v2744_v44 = vmul.f32 %v2740_v27, %v4309_v13  ;;  %v3997_v10 = vpack.c.bf16 %v2538_v40, %v2537_v49  ;;  %v2572_v22 = vld [vmem:[#allocation8 + $0xf78] sm:$0xff]  ;;  %v2814_v27 = vld [vmem:[#allocation8 + $0x1080] sm:$0xff] }
 0x1ba   :  { %3978 = vmatpush3.bf16.msra.mxu0 %v3977_v17  ;;  %v2553_v17 = vld [vmem:[#allocation8 + $0xee0] sm:$0xff]  ;;  %v2426_v1 = vmul.f32 %v2415_v56, %v4309_v13  ;;  %v2482_v36 = vmul.f32 %v2465_v11, %v4311_v14  ;;  %v2587_v57 = vld [vmem:[#allocation8 + $0xff0] sm:$0xff] }
 0x1bb   :  { %4010 = vmatpush3.bf16.msra.mxu1 %v4009_v39  ;;  %3980 = vmatprep.subr.bf16.mxu0 %v3979_v42  ;;  %v2554_v39 = vld [vmem:[#allocation8 + $0xee8] sm:$0xff]  ;;  %v2424_v42 = vmul.f32 %v2407_v4, %v4309_v13  ;;  %v2761_v19 = vadd.f32 %v2759_v15, %v2744_v44  ;;  %v2571_v56 = vld [vmem:[#allocation8 + $0xf70] sm:$0xff]  ;;  %v2817_v15 = vld [vmem:[#allocation8 + $0x1098] sm:$0xff] }
 0x1bc   :  { %4012 = vmatprep.subr.bf16.mxu1 %v4011_v41  ;;  %v2496_v41 = vrot.slane %v4688_v47, %v4281_v54  ;;  %v3995_v50 = vpack.c.bf16 %v2554_v39, %v2553_v17  ;;  %v2818_v40 = vld [vmem:[#allocation8 + $0x10a0] sm:$0xff] }
 0x1bd   :  { %v2455_v52 = vadd.f32 %v2451_v0, %v2424_v42  ;;  %v2540_v0 = vld [vmem:[#allocation8 + $0xe78] sm:$0xff]  ;;  %v4033_v42 = vpack.c.bf16 %v2572_v22, %v2571_v56  ;;  %v2826_v56 = vld [vmem:[#allocation8 + $0x10e0] sm:$0xff] }
 0x1be   :  { %3982 = vmatpush3.bf16.msra.mxu0 %v3981_v35  ;;  %v2772_v35 = vrot.slane %v4723_v28, %v4277_v51  ;;  %v2513_v12 = vmul.f32 %v2496_v41, %v4337_v32 }
 0x1bf   :  { %4014 = vmatpush3.bf16.msra.mxu1 %v4013_v48  ;;  %3984 = vmatprep.subr.bf16.mxu0 %v3983_v30  ;;  %v4739_v48 = vld [vmem:[#allocation6 + $0x83] ss:$4 sm:$0x3]  ;;  %v4025_v30 = vpack.c.bf16 %v2568_v18, %v2567_v33  ;;  %v2486_v25 = vadd.f32 %v2482_v36, %v2455_v52  ;;  %v4037_v52 = vpack.c.bf16 %v2799_v45, %v2798_v37 }
 0x1c0   :  { %4016 = vmatprep.subr.bf16.mxu1 %v4015_v46  ;;  %v2569_v46 = vld [vmem:[#allocation8 + $0xf60] sm:$0xff]  ;;  %v2789_v4 = vrot.slane %v4739_v48, %v4277_v51 }
 0x1c1   :  { %v2517_v11 = vadd.f32 %v2513_v12, %v2486_v25  ;;  %v2751_v12 = vrot.slane %v4712_v43, %v4281_v54  ;;  %v2768_v43 = vrot.slane %v4723_v28, %v4281_v54 }
 0x1c2   :  { %3986 = vmatpush3.bf16.msra.mxu0 %v3985_v7  ;;  %v2556_v7 = vld [vmem:[#allocation8 + $0xef8] sm:$0xff]  ;;  %v2793_v17 = vmul.f32 %v2789_v4, %v4337_v32  ;;  %v2807_v4 = vld [vmem:[#allocation8 + $0x1048] sm:$0xff] }
 0x1c3   :  { %4018 = vmatpush3.bf16.msra.mxu1 %v4017_v63  ;;  %3988 = vmatprep.subr.bf16.mxu0 %v3987_v5  ;;  %v2457_v63 = vadd.f32 %v2453_v34, %v2426_v1  ;;  %v2504_v5 = vrot.slane %v4688_v47, %v4283_v55  ;;  %v4029_v55 = vpack.c.bf16 %v2570_v60, %v2569_v46  ;;  %v2521_v1 = vmax.f32 %v2517_v11, 0.0  ;;  %v2819_v46 = vld [vmem:[#allocation8 + $0x10a8] sm:$0xff] }
 0x1c4   :  { %4020 = vmatprep.subr.bf16.mxu1 %v4019_v3  ;;  %v2588_v3 = vld [vmem:[#allocation8 + $0xff8] sm:$0xff]  ;;  %v3999_v47 = vpack.c.bf16 %v2556_v7, %v2555_v8  ;;  %v2803_v60 = vld [vmem:[#allocation8 + $0x1028] sm:$0xff]  ;;  %v2820_v8 = vld [vmem:[#allocation8 + $0x10b0] sm:$0xff]  ;;  %v2775_v28 = vmul.f32 %v2768_v43, %v4311_v14 }
 0x1c5   :  { %v4031_v23 = vpack.c.bf16 %v2588_v3, %v2587_v57  ;;  %v2488_v51 = vadd.f32 %v2484_v58, %v2457_v63  ;;  %v2515_v33 = vmul.f32 %v2504_v5, %v4337_v32  ;;  %v2821_v7 = vld [vmem:[#allocation8 + $0x10b8] sm:$0xff]  ;;  %v2804_v5 = vld [vmem:[#allocation8 + $0x1030] sm:$0xff]  ;;  %v2823_v57 = vld [vmem:[#allocation8 + $0x10c8] sm:$0xff] }
 0x1c6   :  { %3990 = vmatpush3.bf16.msra.mxu0 %v3989_v2  ;;  %v2539_v2 = vld [vmem:[#allocation8 + $0xe70] sm:$0xff]  ;;  %v4047_v63 = vpack.c.bf16 %v2821_v7, %v2820_v8 }
 0x1c7   :  { %4022 = vmatpush3.bf16.msra.mxu1 %v4021_v29  ;;  %3992 = vmatprep.subr.bf16.mxu0 %v3991_v26  ;;  %v2776_v29 = vmul.f32 %v2772_v35, %v4311_v14  ;;  %v4001_v39 = vpack.c.bf16 %v2540_v0, %v2539_v2  ;;  %v2519_v41 = vadd.f32 %v2515_v33, %v2488_v51  ;;  %v2809_v2 = vld [vmem:[#allocation8 + $0x1058] sm:$0xff]  ;;  %v2810_v33 = vld [vmem:[#allocation8 + $0x1060] sm:$0xff] }
 0x1c8   :  { %v2960_v53 = vpop.f32.mrb[0].mxu0  ;;  %v2995_v24 = vpop.f32.mrb[0].mxu1  ;;  %4024 = vmatprep.subr.bf16.mxu1 %v4023_v38  ;;  %v2815_v38 = vld [vmem:[#allocation8 + $0x1088] sm:$0xff]  ;;  %v4039_v35 = vpack.c.bf16 %v2817_v15, %v2816_v16  ;;  %v2758_v0 = vmul.f32 %v2751_v12, %v4335_v31  ;;  %v2828_v31 = vld [vmem:[#allocation8 + $0x10f0] sm:$0xff] }
 0x1c9   :  { %v2961_v61 = vpop.f32.mrb[1].mxu0  ;;  %v2996_v9 = vpop.f32.mrb[1].mxu1  ;;  %v2778_v18 = vadd.f32 %v2776_v29, %v2761_v19  ;;  %v4035_v34 = vpack.c.bf16 %v2815_v38, %v2814_v27  ;;  %v2523_v49 = vmax.f32 %v2519_v41, 0.0  ;;  %v2806_v19 = vld [vmem:[#allocation8 + $0x1040] sm:$0xff]  ;;  %v2827_v29 = vld [vmem:[#allocation8 + $0x10e8] sm:$0xff] }
 0x1ca   :  { %v2962_v6 = vadd.f32 %v2961_v61, %v2960_v53  ;;  %v2997_v20 = vadd.f32 %v2996_v9, %v2995_v24  ;;  %3994 = vmatpush3.bf16.msra.mxu0 %v3993_v21  ;;  %v4043_v24 = vpack.c.bf16 %v2819_v46, %v2818_v40  ;;  %v2805_v61 = vld [vmem:[#allocation8 + $0x1038] sm:$0xff]  ;;  %v2822_v9 = vld [vmem:[#allocation8 + $0x10c0] sm:$0xff]  ;;  %v4053_v25 = vpack.c.bf16 %v2807_v4, %v2806_v19  ;;  %v2811_v27 = vld [vmem:[#allocation8 + $0x1068] sm:$0xff] }
 0x1cb   :  { %4026 = vmatpush3.bf16.msra.mxu1 %v4025_v30  ;;  %3996 = vmatprep.subr.bf16.mxu0 %v3995_v50  ;;  %v2795_v21 = vadd.f32 %v2793_v17, %v2778_v18  ;;  %v2800_v30 = vld [vmem:[#allocation8 + $0x1010] sm:$0xff]  ;;  %v2801_v50 = vld [vmem:[#allocation8 + $0x1018] sm:$0xff]  ;;  %v4049_v3 = vpack.c.bf16 %v2805_v61, %v2804_v5  ;;  %v4051_v58 = vpack.c.bf16 %v2823_v57, %v2822_v9 }
 0x1cc   :  { %v4750_v26 = vadd.f32 %v2997_v20, %v2962_v6  ;;  %4028 = vmatprep.subr.bf16.mxu1 %v4027_v59  ;;  %v4041_v53 = vpack.c.bf16 %v2801_v50, %v2800_v30  ;;  %v2802_v59 = vld [vmem:[#allocation8 + $0x1020] sm:$0xff]  ;;  %v2824_v6 = vld [vmem:[#allocation8 + $0x10d0] sm:$0xff]  ;;  %v2825_v20 = vld [vmem:[#allocation8 + $0x10d8] sm:$0xff]  ;;  %v4059_v51 = vpack.c.bf16 %v2827_v29, %v2826_v56  ;;  %v4061_v37 = vpack.c.bf16 %v2811_v27, %v2810_v33 }
 0x1cd   :  { %v2797_v44 = vmax.f32 %v2795_v21, 0.0  ;;  %v4045_v36 = vpack.c.bf16 %v2803_v60, %v2802_v59 }
 0x1ce   :  { %3998 = vmatpush3.bf16.msra.mxu0 %v3997_v10  ;;  %v2736_v10 = vrot.slane %v4710_v62, %v4281_v54  ;;  %v2785_v62 = vrot.slane %v4739_v48, %v4281_v54  ;;  %v2812_v54 = vld [vmem:[#allocation8 + $0x1070] sm:$0xff]  ;;  %v2813_v48 = vld [vmem:[#allocation8 + $0x1078] sm:$0xff] }
 0x1cf   :  { %4030 = vmatpush3.bf16.msra.mxu1 %v4029_v55  ;;  %4000 = vmatprep.subr.bf16.mxu0 %v3999_v47  ;;  %v4055_v55 = vpack.c.bf16 %v2825_v20, %v2824_v6  ;;  %v2808_v47 = vld [vmem:[#allocation8 + $0x1050] sm:$0xff] }
 0x1d0   :  { %4032 = vmatprep.subr.bf16.mxu1 %v4031_v23  ;;  %v2743_v23 = vmul.f32 %v2736_v10, %v4309_v13  ;;  %v4057_v22 = vpack.c.bf16 %v2809_v2, %v2808_v47  ;;  %v2792_v16 = vmul.f32 %v2785_v62, %v4337_v32 }
 0x1d2   :  { %4002 = vmatpush3.bf16.msra.mxu0 %v4001_v39  ;;  %v2760_v38 = vadd.f32 %v2758_v0, %v2743_v23  ;;  %v2829_v39 = vld [vmem:[#allocation8 + $0x10f8] sm:$0xff] }
 0x1d3   :  { %4034 = vmatpush3.bf16.msra.mxu1 %v4033_v42  ;;  %4036 = vmatprep.subr.bf16.mxu0 %v4035_v34  ;;  %v4063_v45 = vpack.c.bf16 %v2829_v39, %v2828_v31 }
 0x1d4   :  { %v2777_v41 = vadd.f32 %v2775_v28, %v2760_v38 }
 0x1d5   :  { %2654 = vmatmul.mubr.f32.vlgmr.msra.gmra.mrb[14].mxu0 %v2521_v1 }
 0x1d6   :  { %2724 = vmatmul.mubr.f32.vlgmr.msra.gmra.mrb[14].mxu1 %v2523_v49  ;;  %4038 = vmatpush3.bf16.msra.mxu0 %v4037_v52  ;;  %v4065_v52 = vpack.c.bf16 %v2813_v48, %v2812_v54  ;;  %v2794_v1 = vadd.f32 %v2792_v16, %v2777_v41 }
 0x1d7   :  { %2894 = vmatprep.mubr.f32.mxu0 %v2797_v44  ;;  %4040 = vmatprep.subr.bf16.mxu0 %v4039_v35 }
 0x1d8   :  { %v2796_v14 = vmax.f32 %v2794_v1, 0.0 }
 0x1da   :  { %4042 = vmatpush3.bf16.msra.mxu0 %v4041_v53 }
 0x1db   :  { %4044 = vmatprep.subr.bf16.mxu0 %v4043_v24 }
 0x1de   :  { %4046 = vmatpush3.bf16.msra.mxu0 %v4045_v36 }
 0x1df   :  { %4048 = vmatprep.subr.bf16.mxu0 %v4047_v63 }
 0x1e2   :  { %4050 = vmatpush3.bf16.msra.mxu0 %v4049_v3 }
 0x1e3   :  { %4052 = vmatprep.subr.bf16.mxu0 %v4051_v58 }
 0x1e6   :  { %4054 = vmatpush3.bf16.msra.mxu0 %v4053_v25 }
 0x1e7   :  { %4056 = vmatprep.subr.bf16.mxu0 %v4055_v55 }
 0x1e8   :  { %v3030_v18 = vpop.f32.mrb[2].mxu0  ;;  %v3065_v17 = vpop.f32.mrb[2].mxu1 }
 0x1e9   :  { %v3031_v42 = vpop.f32.mrb[3].mxu0  ;;  %v3066_v11 = vpop.f32.mrb[3].mxu1 }
 0x1ea   :  { %v3032_v34 = vadd.f32 %v3031_v42, %v3030_v18  ;;  %v3067_v13 = vadd.f32 %v3066_v11, %v3065_v17  ;;  %4058 = vmatpush3.bf16.msra.mxu0 %v4057_v22 }
 0x1eb   :  { %4060 = vmatprep.subr.bf16.mxu0 %v4059_v51 }
 0x1ec   :  { %v683_v15 = vadd.f32 %v3032_v34, %v4750_v26  ;;  %v2927_v34 = vld [vmem:[#allocation9] ss:$0 sm:$0xff] }
 0x1ee   :  { %v753_v21 = vadd.f32 %v3067_v13, %v683_v15  ;;  %4062 = vmatpush3.bf16.msra.mxu0 %v4061_v37 }
 0x1ef   :  { %4064 = vmatprep.subr.bf16.mxu0 %v4063_v45 }
 0x1f2   :  { %4066 = vmatpush3.bf16.msra.mxu0 %v4065_v52 }
 0x1f5   :  { %2895 = vmatmul.mubr.f32.vlgmr.msra.gmra.mrb[16].mxu0 %v2796_v14 }
 0x208   :  { %v3100_v35 = vpop.f32.mrb[4].mxu0 }
 0x209   :  { %v3135_v30 = vpop.f32.mrb[4].mxu1  ;;  %v3101_v50 = vpop.f32.mrb[5].mxu0 }
 0x20a   :  { %v3102_v49 = vadd.f32 %v3101_v50, %v3100_v35  ;;  %v3136_v40 = vpop.f32.mrb[5].mxu1 }
 0x20b   :  { %v3137_v46 = vadd.f32 %v3136_v40, %v3135_v30 }
 0x20d   :  { %v1081_v44 = vadd.f32 %v3137_v46, %v3102_v49 }
 0x20f   :  { %v1084_v53 = vadd.f32 %v1081_v44, %v753_v21 }
 0x228   :  { %v3170_v24 = vpop.f32.mrb[6].mxu0 }
 0x229   :  { %v3205_v32 = vpop.f32.mrb[6].mxu1  ;;  %v3171_v59 = vpop.f32.mrb[7].mxu0 }
 0x22a   :  { %v3172_v26 = vadd.f32 %v3171_v59, %v3170_v24  ;;  %v3206_v60 = vpop.f32.mrb[7].mxu1 }
 0x22b   :  { %v3207_v8 = vadd.f32 %v3206_v60, %v3205_v32 }
 0x22d   :  { %v1410_v7 = vadd.f32 %v3207_v8, %v3172_v26 }
 0x22f   :  { %v1413_v36 = vadd.f32 %v1410_v7, %v1084_v53 }
 0x248   :  { %v3240_v63 = vpop.f32.mrb[8].mxu0 }
 0x249   :  { %v3275_v5 = vpop.f32.mrb[8].mxu1  ;;  %v3241_v61 = vpop.f32.mrb[9].mxu0 }
 0x24a   :  { %v3242_v9 = vadd.f32 %v3241_v61, %v3240_v63  ;;  %v3276_v57 = vpop.f32.mrb[9].mxu1 }
 0x24b   :  { %v3277_v3 = vadd.f32 %v3276_v57, %v3275_v5 }
 0x24d   :  { %v1739_v12 = vadd.f32 %v3277_v3, %v3242_v9 }
 0x24f   :  { %v1742_v58 = vadd.f32 %v1739_v12, %v1413_v36 }
 0x268   :  { %v3310_v19 = vpop.f32.mrb[10].mxu0 }
 0x269   :  { %v3345_v4 = vpop.f32.mrb[10].mxu1  ;;  %v3311_v6 = vpop.f32.mrb[11].mxu0 }
 0x26a   :  { %v3312_v20 = vadd.f32 %v3311_v6, %v3310_v19  ;;  %v3346_v10 = vpop.f32.mrb[11].mxu1 }
 0x26b   :  { %v3347_v25 = vadd.f32 %v3346_v10, %v3345_v4 }
 0x26d   :  { %v2068_v55 = vadd.f32 %v3347_v25, %v3312_v20 }
 0x26f   :  { %v2071_v47 = vadd.f32 %v2068_v55, %v1742_v58 }
 0x288   :  { %v3380_v2 = vpop.f32.mrb[12].mxu0 }
 0x289   :  { %v3415_v0 = vpop.f32.mrb[12].mxu1  ;;  %v3381_v56 = vpop.f32.mrb[13].mxu0 }
 0x28a   :  { %v3382_v29 = vadd.f32 %v3381_v56, %v3380_v2  ;;  %v3416_v43 = vpop.f32.mrb[13].mxu1 }
 0x28b   :  { %v3417_v23 = vadd.f32 %v3416_v43, %v3415_v0 }
 0x28d   :  { %v2397_v22 = vadd.f32 %v3417_v23, %v3382_v29 }
 0x28f   :  { %v2400_v62 = vadd.f32 %v2397_v22, %v2071_v47 }
 0x2a8   :  { %v3450_v51 = vpop.f32.mrb[14].mxu0 }
 0x2a9   :  { %v3485_v33 = vpop.f32.mrb[14].mxu1  ;;  %v3451_v27 = vpop.f32.mrb[15].mxu0 }
 0x2aa   :  { %v3452_v38 = vadd.f32 %v3451_v27, %v3450_v51  ;;  %v3486_v18 = vpop.f32.mrb[15].mxu1 }
 0x2ab   :  { %v3487_v17 = vadd.f32 %v3486_v18, %v3485_v33 }
 0x2ad   :  { %v2726_v31 = vadd.f32 %v3487_v17, %v3452_v38 }
 0x2af   :  { %v2729_v39 = vadd.f32 %v2726_v31, %v2400_v62 }
 0x2c8   :  { %v3520_v42 = vpop.f32.mrb[16].mxu0 }
 0x2c9   :  { %v3521_v11 = vpop.f32.mrb[17].mxu0 }
 0x2ca   :  { %v3522_v28 = vadd.f32 %v3521_v11, %v3520_v42 }
 0x2cc   :  { %v2900_v13 = vadd.f32 %v3522_v28, %v2729_v39 }
 0x2ce   :  { %v2908_v37 = vadd.f32 %v2927_v34, %v2900_v13 }
 0x2d0   :  { %2909 = vst [vmem:[#allocation11] sm:$0x3] %v2908_v37 }
 0x2d1   :  { %4174 = shalt.err (!%p4171_p8)
}
 0x2d2   :  { %s4175_s14 = scalar_lea.hbm %s4783_s4, 32 }
 0x2d3   :  { %p4176_p9 = scmp.ne.s32.totalorder %s4783_s4, %s4175_s14  ;;  %p4179_p10 = scmp.lt.u32.totalorder %s4175_s14, %s4783_s4 }
 0x2d5   :  { %p4181_p11 = pnand %p4179_p10, %p4176_p9 }
 0x2d7   :  { %4184 = shalt.err (!%p4181_p11)
}
 0x2d8   :  { %2919 = dma.vmem_to_hbm [thread:$0]  %s2917_s1, 32, %s4783_s4, [#allocation5]  }
 0x2d9   :  { %4191 = dma.done.wait [#allocation5], 32  }
 0x2da   :  { %4192 = vsyncadd [#allocation5], 4294967264 }
 0x2db   :  { %2923 = vsyncpa [#allocation4], 1 }
 0x2dc   :  { %2924 = vsyncpa [#allocation7], 1 }
 0x2dd   :  { %2925 = vsyncpa [#allocation10], 1 }
 0x2de   :  { %2926 = vsyncpa [#allocation5], 1 }

</bundles_post_ra>
